<compile_context>
chip_gen: v6e
topology: v6e:2x2x1
jax: 0.10.0
libtpu: 0.0.40
codegen_flags: <defaults>
</compile_context>

<pallas_src>
import math
import numpy as np

import jax
import jax.numpy as jnp
from jax import lax
from jax.experimental import pallas as pl
from jax.experimental.pallas import tpu as pltpu

# ---------------- config (small, synthetic LLaMA) ----------------
B = 2            # batch
S = 16           # seq_len
M = B * S        # flattened rows (batch folded into the matmul M dimension)
C = 128          # hidden_size
H = 2            # num attention heads
HD = C // H      # head_dim = 64
HALF = HD // 2   # 32
I = 256          # intermediate (MLP) size
V = 256          # vocab size
N_LAYERS = 2
N_CAUSAL = 4     # image tokens per sample
EPS = 1e-6
IGNORE_INDEX = -100
NEG_INF = -1e9

PAD_ID, BOS_ID, EOS_ID = 0, 1, 2
IMAGE_TOKEN_ID = 3    # '<image>'
IMG_TOKEN_ID = 4      # '[IMG]'
IMG_END_TOKEN_ID = 5  # '[/IMG]'

# static block-diagonal causal structure over flattened rows (host constant)
_BLOCK_CAUSAL = np.zeros((M, M), dtype=bool)
for _b in range(B):
    _BLOCK_CAUSAL[_b * S:(_b + 1) * S, _b * S:(_b + 1) * S] = np.tril(
        np.ones((S, S), dtype=bool))


# ---------------- in-kernel helpers ----------------
def _rms_norm(x, w):
    var = jnp.mean(x * x, axis=-1, keepdims=True)
    return x * lax.rsqrt(var + EPS) * w


# ---------------- fused forward kernel ----------------
def fused_forward_kernel(x_ref, bias_ref, cos_ref, sin_ref, hmask_ref,
                         wproj_ref, wgu_ref, wdown_ref,
                         ln1_ref, ln2_ref, fnorm_ref, wlmreg_ref,
                         labels_ref, tgt_ref, rmask_ref,
                         logits_ref, stats_ref):
    h = x_ref[...]                 # [M, C] f32 residual stream (VMEM resident)
    bias = bias_ref[...]           # [M, M] block-diag causal + key-padding bias
    cos = cos_ref[...]             # [M, C] f32, permuted lane layout
    sin = sin_ref[...]             # [M, C] f32, rotate_half sign folded in

    def rope(t):                   # full-width RoPE; shift == C/2 -> direction-safe
        return t * cos + pltpu.roll(t, C // 2, 1) * sin

    for l in range(N_LAYERS):      # static unroll; all weights VMEM-resident
        # --- self attention: one fused projection [ q | k | WvWo_h0 | WvWo_h1 ]
        xn = _rms_norm(h, ln1_ref[l]).astype(jnp.bfloat16)
        proj = jnp.dot(xn, wproj_ref[l], preferred_element_type=jnp.float32)  # [M,4C]
        q = rope(proj[:, 0:C])                        # 1/sqrt(HD) folded into Wq
        k = rope(proj[:, C:2 * C])

        attn = None
        for hh in range(H):                           # static head loop
            kh = k * hmask_ref[hh]                    # zero the other head's lanes
            s = lax.dot_general(q, kh, (((1,), (1,)), ((), ())),
                                preferred_element_type=jnp.float32) + bias
            mx = jnp.max(s, axis=-1, keepdims=True)
            e = jnp.exp(s - mx)
            p = e * pl.reciprocal(jnp.sum(e, axis=-1, keepdims=True), approx=True)
            vo = proj[:, (2 + hh) * C:(3 + hh) * C]   # == xn @ (Wv_h @ Wo_h)
            term = jnp.dot(p, vo, preferred_element_type=jnp.float32)
            attn = term if attn is None else attn + term
        h = h + attn

        # --- SwiGLU MLP (fused gate|up) ---
        hn = _rms_norm(h, ln2_ref[l]).astype(jnp.bfloat16)
        gu = jnp.dot(hn, wgu_ref[l], preferred_element_type=jnp.float32)   # [M, 2I]
        g = gu[:, :I]
        u = gu[:, I:]
        act = ((g * jax.nn.sigmoid(g)) * u).astype(jnp.bfloat16)
        h = h + jnp.dot(act, wdown_ref[l], preferred_element_type=jnp.float32)

    # --- final norm + fused lm_head | stu_regress_head ---
    hn = _rms_norm(h, fnorm_ref[...]).astype(jnp.bfloat16)
    heads = jnp.dot(hn, wlmreg_ref[...], preferred_element_type=jnp.float32)  # [M,V+C]
    logits = heads[:, :V]
    pred = heads[:, V:]
    logits_ref[...] = logits

    # --- cross entropy with ignore_index (labels pre-shifted by one position) ---
    labels = labels_ref[...]                                  # [M, 1] int32
    mx = jnp.max(logits, axis=-1, keepdims=True)
    lse = mx + jnp.log(jnp.sum(jnp.exp(logits - mx), axis=-1, keepdims=True))
    col = lax.broadcasted_iota(jnp.int32, logits.shape, 1)
    picked = jnp.sum(jnp.where(col == labels, logits, 0.0), axis=-1, keepdims=True)
    valid = (labels != IGNORE_INDEX).astype(jnp.float32)      # [M, 1]
    ce = (lse - picked) * valid

    # --- regression: regress head output at masked positions vs next embeds ---
    diff = pred - tgt_ref[...]
    rmask = rmask_ref[...]                                    # [M, 1]
    regsq = jnp.sum(diff * diff, axis=-1, keepdims=True) * rmask

    # --- reduce to final scalar losses in-kernel, pack lane-dense ---
    ce_sum = jnp.sum(ce, axis=0, keepdims=True)               # [1, 1]
    valid_sum = jnp.sum(valid, axis=0, keepdims=True)
    regsq_sum = jnp.sum(regsq, axis=0, keepdims=True)
    nreg = jnp.sum(rmask, axis=0, keepdims=True)
    llm_loss = ce_sum / jnp.maximum(valid_sum, 1.0)
    reg_loss = regsq_sum / jnp.maximum(nreg * float(C), 1.0)

    lane = lax.broadcasted_iota(jnp.int32, stats_ref.shape, 1)
    stats_ref[...] = (jnp.where(lane == 0, llm_loss, 0.0)
                      + jnp.where(lane == 1, reg_loss, 0.0))


def run_fused(x, attn_bias, params, labels, tgt, rmask):
    def full(a):
        nd = a.ndim
        return pl.BlockSpec(a.shape, lambda i, _n=nd: (0,) * _n)

    inputs = (x, attn_bias, params["cos"], params["sin"], params["hmask"],
              params["wproj"], params["wgu"], params["wdown"],
              params["ln1"], params["ln2"], params["final_norm"], params["wlmreg"],
              labels, tgt, rmask)

    return pl.pallas_call(
        fused_forward_kernel,
        out_shape=(jax.ShapeDtypeStruct((M, V), jnp.float32),
                   jax.ShapeDtypeStruct((1, 128), jnp.float32)),
        grid=(1,),   # weights (<1 MiB bf16) + activations fully VMEM-resident
        in_specs=[full(a) for a in inputs],
        out_specs=(pl.BlockSpec((M, V), lambda i: (0, 0)),
                   pl.BlockSpec((1, 128), lambda i: (0, 0))),
        compiler_params=pltpu.CompilerParams(
            dimension_semantics=("arbitrary",),
            vmem_limit_bytes=32 * 1024 * 1024),
    )(*inputs)


# ---------------- wrapper: full LLaMAForClsAndRegression.forward -----------
def llama_for_cls_and_regression(params, image_embeds, text_input, text_mask):
    Bx, n_causal, Cx = image_embeds.shape

    # targets: pad / <image> / [IMG] / [/IMG] -> IGNORE_INDEX (single fused mask)
    special = ((text_input == PAD_ID) | (text_input == IMAGE_TOKEN_ID)
               | (text_input == IMG_TOKEN_ID) | (text_input == IMG_END_TOKEN_ID))
    targets = jnp.where(special, IGNORE_INDEX, text_input)

    # embed_tokens lookup + scatter image_embeds into <image> positions (glue).
    # TODO(synk): could be moved into the kernel via scalar-prefetched token ids;
    # left to XLA since the whole wrapper is jit-fused.
    text_embeds = jnp.take(params["embed"], text_input, axis=0)          # [B,S,C]
    is_image = text_input == IMAGE_TOKEN_ID
    idx_within = jnp.clip(jnp.cumsum(is_image.astype(jnp.int32), axis=1) - 1,
                          0, n_causal - 1)
    gathered = jnp.take_along_axis(image_embeds, idx_within[..., None], axis=1)
    text_embeds = jnp.where(is_image[..., None], gathered, text_embeds)

    # regression masks / targets (see TODO(synk) at top of file)
    regress_mask = (is_image | (text_input == IMG_TOKEN_ID)).astype(jnp.float32)
    tgt_embeds = jnp.concatenate(
        [text_embeds[:, 1:, :], jnp.zeros((Bx, 1, Cx), text_embeds.dtype)], axis=1)

    # additive attention bias over flattened rows: static block-diag causal
    # structure (host constant) AND data-dependent key padding from text_mask.
    key_valid = text_mask.reshape(1, Bx * S) > 0
    attn_bias = jnp.where(jnp.asarray(_BLOCK_CAUSAL) & key_valid,
                          0.0, NEG_INF).astype(jnp.float32)              # [M, M]

    # shifted labels for the causal LM loss (shift within each sequence)
    shifted_labels = jnp.concatenate(
        [targets[:, 1:], jnp.full((Bx, 1), IGNORE_INDEX, targets.dtype)],
        axis=1).reshape(Bx * S, 1).astype(jnp.int32)                     # [M, 1]

    x = text_embeds.reshape(Bx * S, Cx).astype(jnp.float32)              # [M, C]
    tgt = tgt_embeds.reshape(Bx * S, Cx).astype(jnp.float32)             # [M, C]
    rmask = regress_mask.reshape(Bx * S, 1)                              # [M, 1]

    logits, stats = run_fused(x, attn_bias, params, shifted_labels, tgt, rmask)
    return {"logits": logits.reshape(Bx, S, V),
            "llm_loss": stats[0, 0],
            "regression_loss": stats[0, 1]}


# ---------------- deterministic parameter init ----------------
def _head_half_perm():
    """Lane permutation: natural per-head [first|second] half layout ->
    interleaved [h0a h1a | h0b h1b] so rotate_half == one roll by C//2."""
    perm = np.zeros(C, dtype=np.int64)
    for h in range(H):
        perm[h * HALF:(h + 1) * HALF] = np.arange(HALF) + h * HD
        perm[C // 2 + h * HALF:C // 2 + (h + 1) * HALF] = (
            np.arange(HALF) + h * HD + HALF)
    return perm


def _head_of_lane():
    hol = np.zeros(C, dtype=np.int64)
    for h in range(H):
        hol[h * HALF:(h + 1) * HALF] = h
        hol[C // 2 + h * HALF:C // 2 + (h + 1) * HALF] = h
    return hol


def init_params(key):
    keys = jax.random.split(key, 3 + N_LAYERS)

    def nrm(k, shape, scale=0.02):
        return scale * jax.random.normal(k, shape, dtype=jnp.float32)

    embed = nrm(keys[0], (V, C))                       # f32, used by glue gather
    wlm = nrm(keys[1], (C, V))                         # lm_head   [in, out]
    wreg = nrm(keys[2], (C, C))                        # stu_regress_head
    wlmreg = jnp.concatenate([wlm, wreg], axis=1).astype(jnp.bfloat16)   # [C, V+C]

    perm = _head_half_perm()
    hol = _head_of_lane()
    hmask = jnp.asarray(
        (hol[None, :] == np.arange(H)[:, None]).astype(np.float32))[:, None, :]

    projs, gus, downs = [], [], []
    for l in range(N_LAYERS):
        lk = jax.random.split(keys[3 + l], 7)
        wq = nrm(lk[0], (C, C)) * (1.0 / math.sqrt(HD))   # attn scale folded in
        wk = nrm(lk[1], (C, C))
        wv = nrm(lk[2], (C, C))
        wo = nrm(lk[3], (C, C))
        wg = nrm(lk[4], (C, I))
        wu = nrm(lk[5], (C, I))
        wd = nrm(lk[6], (I, C))
        # per-head Wv @ Wo fold (same param count; removes concat + Wo matmul)
        wvo = [wv[:, h * HD:(h + 1) * HD] @ wo[h * HD:(h + 1) * HD, :]
               for h in range(H)]
        projs.append(jnp.concatenate([wq[:, perm], wk[:, perm]] + wvo, axis=1))
        gus.append(jnp.concatenate([wg, wu], axis=1))
        downs.append(wd)

    wproj = jnp.stack(projs).astype(jnp.bfloat16)      # [L, C, 4C]
    wgu = jnp.stack(gus).astype(jnp.bfloat16)          # [L, C, 2I]
    wdown = jnp.stack(downs).astype(jnp.bfloat16)      # [L, I, C]

    # RoPE tables over flattened rows (row b*S+s uses position s), in the
    # PERMUTED lane layout; the rotate_half sign is folded into sin.
    pos = np.tile(np.arange(S, dtype=np.float32), B)[:, None]            # [M, 1]
    inv_freq = 1.0 / (10000.0 ** (np.arange(0, HD, 2, dtype=np.float32) / HD))
    ang = pos * inv_freq[None, :]                                        # [M, HALF]
    cos = jnp.asarray(np.tile(np.cos(ang), (1, 2 * H)), jnp.float32)     # [M, C]
    sin = jnp.asarray(np.concatenate([np.tile(-np.sin(ang), (1, H)),
                                      np.tile(np.sin(ang), (1, H))], axis=1),
                      jnp.float32)                                       # [M, C]

    return dict(embed=embed, wlmreg=wlmreg,
                wproj=wproj, wgu=wgu, wdown=wdown,
                ln1=jnp.ones((N_LAYERS, 1, C), jnp.float32),
                ln2=jnp.ones((N_LAYERS, 1, C), jnp.float32),
                final_norm=jnp.ones((1, C), jnp.float32),
                cos=cos, sin=sin, hmask=hmask)


if __name__ == "__main__":
    key = jax.random.PRNGKey(0)
    kp, ki = jax.random.split(key)
    params = init_params(kp)

    # text: <s> ... [IMG] <image>*4 [/IMG] ... </s> [PAD]*
    text_input = jnp.array([
        [BOS_ID, 10, 11, IMG_TOKEN_ID,
         IMAGE_TOKEN_ID, IMAGE_TOKEN_ID, IMAGE_TOKEN_ID, IMAGE_TOKEN_ID,
         IMG_END_TOKEN_ID, 12, 13, 14, EOS_ID, PAD_ID, PAD_ID, PAD_ID],
        [BOS_ID, 20, IMG_TOKEN_ID,
         IMAGE_TOKEN_ID, IMAGE_TOKEN_ID, IMAGE_TOKEN_ID, IMAGE_TOKEN_ID,
         IMG_END_TOKEN_ID, 21, 22, 23, 24, 25, EOS_ID, PAD_ID, PAD_ID],
    ], dtype=jnp.int32)
    text_mask = (text_input != PAD_ID).astype(jnp.float32)
    image_embeds = 0.02 * jax.random.normal(ki, (B, N_CAUSAL, C),
                                            dtype=jnp.float32)

    # same sanity check as the reference forward
    assert int(jnp.sum(text_input == IMAGE_TOKEN_ID)) == B * N_CAUSAL

    fwd = jax.jit(llama_for_cls_and_regression)
    out = jax.block_until_ready(fwd(params, image_embeds, text_input, text_mask))

    assert out["logits"].shape == (B, S, V)
    assert np.isfinite(float(out["llm_loss"]))
    assert np.isfinite(float(out["regression_loss"]))
    print("KERNEL_OK")
</pallas_src>

<mosaic_0001>
module attributes {stable_mosaic.version = 11 : i64} {
  func.func @fused_forward_kernel(%arg0: i32, %arg1: memref<32x128xf32, #tpu.memory_space<vmem>>, %arg2: memref<32x32xf32, #tpu.memory_space<vmem>>, %arg3: memref<32x128xf32, #tpu.memory_space<vmem>>, %arg4: memref<32x128xf32, #tpu.memory_space<vmem>>, %arg5: memref<2x1x128xf32, #tpu.memory_space<vmem>>, %arg6: memref<2x128x512xbf16, #tpu.memory_space<vmem>>, %arg7: memref<2x128x512xbf16, #tpu.memory_space<vmem>>, %arg8: memref<2x256x128xbf16, #tpu.memory_space<vmem>>, %arg9: memref<2x1x128xf32, #tpu.memory_space<vmem>>, %arg10: memref<2x1x128xf32, #tpu.memory_space<vmem>>, %arg11: memref<1x128xf32, #tpu.memory_space<vmem>>, %arg12: memref<128x384xbf16, #tpu.memory_space<vmem>>, %arg13: memref<32x1xi32, #tpu.memory_space<vmem>>, %arg14: memref<32x128xf32, #tpu.memory_space<vmem>>, %arg15: memref<32x1xf32, #tpu.memory_space<vmem>>, %arg16: memref<32x256xf32, #tpu.memory_space<vmem>>, %arg17: memref<1x128xf32, #tpu.memory_space<vmem>>) attributes {dimension_semantics = [#tpu.dimension_semantics<arbitrary>], iteration_bounds = array<i64: 1>, scalar_prefetch = 0 : i64, scratch_operands = 0 : i64, tpu.core_type = #tpu.core_type<tc>, window_params = [{pipeline_mode = #tpu.pipeline_mode<synchronous>, transform_indices = @transform_0, window_bounds = array<i64: 32, 128>}, {pipeline_mode = #tpu.pipeline_mode<synchronous>, transform_indices = @transform_1, window_bounds = array<i64: 32, 32>}, {pipeline_mode = #tpu.pipeline_mode<synchronous>, transform_indices = @transform_2, window_bounds = array<i64: 32, 128>}, {pipeline_mode = #tpu.pipeline_mode<synchronous>, transform_indices = @transform_3, window_bounds = array<i64: 32, 128>}, {pipeline_mode = #tpu.pipeline_mode<synchronous>, transform_indices = @transform_4, window_bounds = array<i64: 2, 1, 128>}, {pipeline_mode = #tpu.pipeline_mode<synchronous>, transform_indices = @transform_5, window_bounds = array<i64: 2, 128, 512>}, {pipeline_mode = #tpu.pipeline_mode<synchronous>, transform_indices = @transform_6, window_bounds = array<i64: 2, 128, 512>}, {pipeline_mode = #tpu.pipeline_mode<synchronous>, transform_indices = @transform_7, window_bounds = array<i64: 2, 256, 128>}, {pipeline_mode = #tpu.pipeline_mode<synchronous>, transform_indices = @transform_8, window_bounds = array<i64: 2, 1, 128>}, {pipeline_mode = #tpu.pipeline_mode<synchronous>, transform_indices = @transform_9, window_bounds = array<i64: 2, 1, 128>}, {pipeline_mode = #tpu.pipeline_mode<synchronous>, transform_indices = @transform_10, window_bounds = array<i64: 1, 128>}, {pipeline_mode = #tpu.pipeline_mode<synchronous>, transform_indices = @transform_11, window_bounds = array<i64: 128, 384>}, {pipeline_mode = #tpu.pipeline_mode<synchronous>, transform_indices = @transform_12, window_bounds = array<i64: 32, 1>}, {pipeline_mode = #tpu.pipeline_mode<synchronous>, transform_indices = @transform_13, window_bounds = array<i64: 32, 128>}, {pipeline_mode = #tpu.pipeline_mode<synchronous>, transform_indices = @transform_14, window_bounds = array<i64: 32, 1>}, {pipeline_mode = #tpu.pipeline_mode<synchronous>, transform_indices = @transform_15, window_bounds = array<i64: 32, 256>}, {pipeline_mode = #tpu.pipeline_mode<synchronous>, transform_indices = @transform_16, window_bounds = array<i64: 1, 128>}]} {
    %c0 = arith.constant 0 : index
    %c0_0 = arith.constant 0 : index
    %0 = vector.load %arg1[%c0, %c0_0] : memref<32x128xf32, #tpu.memory_space<vmem>>, vector<32x128xf32>
    %c0_1 = arith.constant 0 : index
    %c0_2 = arith.constant 0 : index
    %1 = vector.load %arg2[%c0_1, %c0_2] : memref<32x32xf32, #tpu.memory_space<vmem>>, vector<32x32xf32>
    %c0_3 = arith.constant 0 : index
    %c0_4 = arith.constant 0 : index
    %2 = vector.load %arg3[%c0_3, %c0_4] : memref<32x128xf32, #tpu.memory_space<vmem>>, vector<32x128xf32>
    %c0_5 = arith.constant 0 : index
    %c0_6 = arith.constant 0 : index
    %3 = vector.load %arg4[%c0_5, %c0_6] : memref<32x128xf32, #tpu.memory_space<vmem>>, vector<32x128xf32>
    %c0_7 = arith.constant 0 : index
    %c0_8 = arith.constant 0 : index
    %c0_9 = arith.constant 0 : index
    %4 = vector.load %arg9[%c0_7, %c0_8, %c0_9] : memref<2x1x128xf32, #tpu.memory_space<vmem>>, vector<1x1x128xf32>
    %5 = vector.shape_cast %4 : vector<1x1x128xf32> to vector<1x128xf32>
    %6 = arith.mulf %0, %0 : vector<32x128xf32>
    %cst = arith.constant dense<0.000000e+00> : vector<32xf32>
    %7 = vector.multi_reduction <add>, %6, %cst [1] : vector<32x128xf32> to vector<32xf32>
    %8 = vector.shape_cast %7 : vector<32xf32> to vector<32x1xf32>
    %cst_10 = arith.constant 1.280000e+02 : f32
    %9 = vector.broadcast %cst_10 : f32 to vector<32x1xf32>
    %10 = arith.divf %8, %9 : vector<32x1xf32>
    %cst_11 = arith.constant 9.99999997E-7 : f32
    %11 = vector.broadcast %cst_11 : f32 to vector<32x1xf32>
    %12 = arith.addf %10, %11 : vector<32x1xf32>
    %13 = math.rsqrt %12 : vector<32x1xf32>
    %14 = vector.broadcast %13 : vector<32x1xf32> to vector<32x128xf32>
    %15 = arith.mulf %0, %14 : vector<32x128xf32>
    %16 = vector.broadcast %5 : vector<1x128xf32> to vector<32x128xf32>
    %17 = arith.mulf %15, %16 : vector<32x128xf32>
    %18 = arith.truncf %17 : vector<32x128xf32> to vector<32x128xbf16>
    %c0_12 = arith.constant 0 : index
    %c0_13 = arith.constant 0 : index
    %c0_14 = arith.constant 0 : index
    %19 = vector.load %arg6[%c0_12, %c0_13, %c0_14] : memref<2x128x512xbf16, #tpu.memory_space<vmem>>, vector<1x128x512xbf16>
    %20 = vector.shape_cast %19 : vector<1x128x512xbf16> to vector<128x512xbf16>
    %cst_15 = arith.constant dense<0.000000e+00> : vector<32x512xf32>
    %21 = tpu.matmul %18, %20, %cst_15 {dimension_numbers = #tpu.dot_dimension_numbers<[1], [0], [0], [1], [0, 0, 1, 1], [], []>} : vector<32x128xbf16>, vector<128x512xbf16>, vector<32x512xf32> -> vector<32x512xf32>
    %22 = vector.extract_strided_slice %21 {offsets = [0, 0], sizes = [32, 128], strides = [1, 1]} : vector<32x512xf32> to vector<32x128xf32>
    %23 = arith.mulf %22, %2 : vector<32x128xf32>
    %c64_i32 = arith.constant 64 : i32
    %24 = tpu.dynamic_rotate %22 by %c64_i32 dim 1 : vector<32x128xf32>, i32 -> vector<32x128xf32>
    %25 = arith.mulf %24, %3 : vector<32x128xf32>
    %26 = arith.addf %23, %25 : vector<32x128xf32>
    %27 = vector.extract_strided_slice %21 {offsets = [0, 128], sizes = [32, 128], strides = [1, 1]} : vector<32x512xf32> to vector<32x128xf32>
    %28 = arith.mulf %27, %2 : vector<32x128xf32>
    %c64_i32_16 = arith.constant 64 : i32
    %29 = tpu.dynamic_rotate %27 by %c64_i32_16 dim 1 : vector<32x128xf32>, i32 -> vector<32x128xf32>
    %30 = arith.mulf %29, %3 : vector<32x128xf32>
    %31 = arith.addf %28, %30 : vector<32x128xf32>
    %c0_17 = arith.constant 0 : index
    %c0_18 = arith.constant 0 : index
    %c0_19 = arith.constant 0 : index
    %32 = vector.load %arg5[%c0_17, %c0_18, %c0_19] : memref<2x1x128xf32, #tpu.memory_space<vmem>>, vector<1x1x128xf32>
    %33 = vector.shape_cast %32 : vector<1x1x128xf32> to vector<1x128xf32>
    %34 = vector.broadcast %33 : vector<1x128xf32> to vector<32x128xf32>
    %35 = arith.mulf %31, %34 : vector<32x128xf32>
    %cst_20 = arith.constant dense<0.000000e+00> : vector<32x32xf32>
    %36 = tpu.matmul %26, %35, %cst_20 {dimension_numbers = #tpu.dot_dimension_numbers<[1], [1], [0], [0], [0, 0, 1, 0], [], []>} : vector<32x128xf32>, vector<32x128xf32>, vector<32x32xf32> -> vector<32x32xf32>
    %37 = arith.addf %36, %1 : vector<32x32xf32>
    %cst_21 = arith.constant dense<0xFF800000> : vector<32xf32>
    %38 = vector.multi_reduction <maximumf>, %37, %cst_21 [1] : vector<32x32xf32> to vector<32xf32>
    %39 = vector.shape_cast %38 : vector<32xf32> to vector<32x1xf32>
    %40 = vector.broadcast %39 : vector<32x1xf32> to vector<32x32xf32>
    %41 = arith.subf %37, %40 : vector<32x32xf32>
    %42 = math.exp %41 : vector<32x32xf32>
    %cst_22 = arith.constant dense<0.000000e+00> : vector<32xf32>
    %43 = vector.multi_reduction <add>, %42, %cst_22 [1] : vector<32x32xf32> to vector<32xf32>
    %44 = vector.shape_cast %43 : vector<32xf32> to vector<32x1xf32>
    %45 = tpu.reciprocal %44 {approx = true} : vector<32x1xf32> -> vector<32x1xf32>
    %46 = vector.broadcast %45 : vector<32x1xf32> to vector<32x32xf32>
    %47 = arith.mulf %42, %46 : vector<32x32xf32>
    %48 = vector.extract_strided_slice %21 {offsets = [0, 256], sizes = [32, 128], strides = [1, 1]} : vector<32x512xf32> to vector<32x128xf32>
    %cst_23 = arith.constant dense<0.000000e+00> : vector<32x128xf32>
    %49 = tpu.matmul %47, %48, %cst_23 {dimension_numbers = #tpu.dot_dimension_numbers<[1], [0], [0], [1], [0, 0, 1, 1], [], []>} : vector<32x32xf32>, vector<32x128xf32>, vector<32x128xf32> -> vector<32x128xf32>
    %c1 = arith.constant 1 : index
    %c0_24 = arith.constant 0 : index
    %c0_25 = arith.constant 0 : index
    %50 = vector.load %arg5[%c1, %c0_24, %c0_25] : memref<2x1x128xf32, #tpu.memory_space<vmem>>, vector<1x1x128xf32>
    %51 = vector.shape_cast %50 : vector<1x1x128xf32> to vector<1x128xf32>
    %52 = vector.broadcast %51 : vector<1x128xf32> to vector<32x128xf32>
    %53 = arith.mulf %31, %52 : vector<32x128xf32>
    %cst_26 = arith.constant dense<0.000000e+00> : vector<32x32xf32>
    %54 = tpu.matmul %26, %53, %cst_26 {dimension_numbers = #tpu.dot_dimension_numbers<[1], [1], [0], [0], [0, 0, 1, 0], [], []>} : vector<32x128xf32>, vector<32x128xf32>, vector<32x32xf32> -> vector<32x32xf32>
    %55 = arith.addf %54, %1 : vector<32x32xf32>
    %cst_27 = arith.constant dense<0xFF800000> : vector<32xf32>
    %56 = vector.multi_reduction <maximumf>, %55, %cst_27 [1] : vector<32x32xf32> to vector<32xf32>
    %57 = vector.shape_cast %56 : vector<32xf32> to vector<32x1xf32>
    %58 = vector.broadcast %57 : vector<32x1xf32> to vector<32x32xf32>
    %59 = arith.subf %55, %58 : vector<32x32xf32>
    %60 = math.exp %59 : vector<32x32xf32>
    %cst_28 = arith.constant dense<0.000000e+00> : vector<32xf32>
    %61 = vector.multi_reduction <add>, %60, %cst_28 [1] : vector<32x32xf32> to vector<32xf32>
    %62 = vector.shape_cast %61 : vector<32xf32> to vector<32x1xf32>
    %63 = tpu.reciprocal %62 {approx = true} : vector<32x1xf32> -> vector<32x1xf32>
    %64 = vector.broadcast %63 : vector<32x1xf32> to vector<32x32xf32>
    %65 = arith.mulf %60, %64 : vector<32x32xf32>
    %66 = vector.extract_strided_slice %21 {offsets = [0, 384], sizes = [32, 128], strides = [1, 1]} : vector<32x512xf32> to vector<32x128xf32>
    %cst_29 = arith.constant dense<0.000000e+00> : vector<32x128xf32>
    %67 = tpu.matmul %65, %66, %cst_29 {dimension_numbers = #tpu.dot_dimension_numbers<[1], [0], [0], [1], [0, 0, 1, 1], [], []>} : vector<32x32xf32>, vector<32x128xf32>, vector<32x128xf32> -> vector<32x128xf32>
    %68 = arith.addf %49, %67 : vector<32x128xf32>
    %69 = arith.addf %0, %68 : vector<32x128xf32>
    %c0_30 = arith.constant 0 : index
    %c0_31 = arith.constant 0 : index
    %c0_32 = arith.constant 0 : index
    %70 = vector.load %arg10[%c0_30, %c0_31, %c0_32] : memref<2x1x128xf32, #tpu.memory_space<vmem>>, vector<1x1x128xf32>
    %71 = vector.shape_cast %70 : vector<1x1x128xf32> to vector<1x128xf32>
    %72 = arith.mulf %69, %69 : vector<32x128xf32>
    %cst_33 = arith.constant dense<0.000000e+00> : vector<32xf32>
    %73 = vector.multi_reduction <add>, %72, %cst_33 [1] : vector<32x128xf32> to vector<32xf32>
    %74 = vector.shape_cast %73 : vector<32xf32> to vector<32x1xf32>
    %cst_34 = arith.constant 1.280000e+02 : f32
    %75 = vector.broadcast %cst_34 : f32 to vector<32x1xf32>
    %76 = arith.divf %74, %75 : vector<32x1xf32>
    %cst_35 = arith.constant 9.99999997E-7 : f32
    %77 = vector.broadcast %cst_35 : f32 to vector<32x1xf32>
    %78 = arith.addf %76, %77 : vector<32x1xf32>
    %79 = math.rsqrt %78 : vector<32x1xf32>
    %80 = vector.broadcast %79 : vector<32x1xf32> to vector<32x128xf32>
    %81 = arith.mulf %69, %80 : vector<32x128xf32>
    %82 = vector.broadcast %71 : vector<1x128xf32> to vector<32x128xf32>
    %83 = arith.mulf %81, %82 : vector<32x128xf32>
    %84 = arith.truncf %83 : vector<32x128xf32> to vector<32x128xbf16>
    %c0_36 = arith.constant 0 : index
    %c0_37 = arith.constant 0 : index
    %c0_38 = arith.constant 0 : index
    %85 = vector.load %arg7[%c0_36, %c0_37, %c0_38] : memref<2x128x512xbf16, #tpu.memory_space<vmem>>, vector<1x128x512xbf16>
    %86 = vector.shape_cast %85 : vector<1x128x512xbf16> to vector<128x512xbf16>
    %cst_39 = arith.constant dense<0.000000e+00> : vector<32x512xf32>
    %87 = tpu.matmul %84, %86, %cst_39 {dimension_numbers = #tpu.dot_dimension_numbers<[1], [0], [0], [1], [0, 0, 1, 1], [], []>} : vector<32x128xbf16>, vector<128x512xbf16>, vector<32x512xf32> -> vector<32x512xf32>
    %88 = vector.extract_strided_slice %87 {offsets = [0, 0], sizes = [32, 256], strides = [1, 1]} : vector<32x512xf32> to vector<32x256xf32>
    %89 = vector.extract_strided_slice %87 {offsets = [0, 256], sizes = [32, 256], strides = [1, 1]} : vector<32x512xf32> to vector<32x256xf32>
    %90 = arith.negf %88 : vector<32x256xf32>
    %91 = math.exp %90 : vector<32x256xf32>
    %cst_40 = arith.constant 1.000000e+00 : f32
    %92 = vector.broadcast %cst_40 : f32 to vector<32x256xf32>
    %93 = arith.addf %92, %91 : vector<32x256xf32>
    %94 = arith.divf %92, %93 : vector<32x256xf32>
    %95 = arith.mulf %88, %94 : vector<32x256xf32>
    %96 = arith.mulf %95, %89 : vector<32x256xf32>
    %97 = arith.truncf %96 : vector<32x256xf32> to vector<32x256xbf16>
    %c0_41 = arith.constant 0 : index
    %c0_42 = arith.constant 0 : index
    %c0_43 = arith.constant 0 : index
    %98 = vector.load %arg8[%c0_41, %c0_42, %c0_43] : memref<2x256x128xbf16, #tpu.memory_space<vmem>>, vector<1x256x128xbf16>
    %99 = vector.shape_cast %98 : vector<1x256x128xbf16> to vector<256x128xbf16>
    %cst_44 = arith.constant dense<0.000000e+00> : vector<32x128xf32>
    %100 = tpu.matmul %97, %99, %cst_44 {dimension_numbers = #tpu.dot_dimension_numbers<[1], [0], [0], [1], [0, 0, 1, 1], [], []>} : vector<32x256xbf16>, vector<256x128xbf16>, vector<32x128xf32> -> vector<32x128xf32>
    %101 = arith.addf %69, %100 : vector<32x128xf32>
    %c1_45 = arith.constant 1 : index
    %c0_46 = arith.constant 0 : index
    %c0_47 = arith.constant 0 : index
    %102 = vector.load %arg9[%c1_45, %c0_46, %c0_47] : memref<2x1x128xf32, #tpu.memory_space<vmem>>, vector<1x1x128xf32>
    %103 = vector.shape_cast %102 : vector<1x1x128xf32> to vector<1x128xf32>
    %104 = arith.mulf %101, %101 : vector<32x128xf32>
    %cst_48 = arith.constant dense<0.000000e+00> : vector<32xf32>
    %105 = vector.multi_reduction <add>, %104, %cst_48 [1] : vector<32x128xf32> to vector<32xf32>
    %106 = vector.shape_cast %105 : vector<32xf32> to vector<32x1xf32>
    %cst_49 = arith.constant 1.280000e+02 : f32
    %107 = vector.broadcast %cst_49 : f32 to vector<32x1xf32>
    %108 = arith.divf %106, %107 : vector<32x1xf32>
    %cst_50 = arith.constant 9.99999997E-7 : f32
    %109 = vector.broadcast %cst_50 : f32 to vector<32x1xf32>
    %110 = arith.addf %108, %109 : vector<32x1xf32>
    %111 = math.rsqrt %110 : vector<32x1xf32>
    %112 = vector.broadcast %111 : vector<32x1xf32> to vector<32x128xf32>
    %113 = arith.mulf %101, %112 : vector<32x128xf32>
    %114 = vector.broadcast %103 : vector<1x128xf32> to vector<32x128xf32>
    %115 = arith.mulf %113, %114 : vector<32x128xf32>
    %116 = arith.truncf %115 : vector<32x128xf32> to vector<32x128xbf16>
    %c1_51 = arith.constant 1 : index
    %c0_52 = arith.constant 0 : index
    %c0_53 = arith.constant 0 : index
    %117 = vector.load %arg6[%c1_51, %c0_52, %c0_53] : memref<2x128x512xbf16, #tpu.memory_space<vmem>>, vector<1x128x512xbf16>
    %118 = vector.shape_cast %117 : vector<1x128x512xbf16> to vector<128x512xbf16>
    %cst_54 = arith.constant dense<0.000000e+00> : vector<32x512xf32>
    %119 = tpu.matmul %116, %118, %cst_54 {dimension_numbers = #tpu.dot_dimension_numbers<[1], [0], [0], [1], [0, 0, 1, 1], [], []>} : vector<32x128xbf16>, vector<128x512xbf16>, vector<32x512xf32> -> vector<32x512xf32>
    %120 = vector.extract_strided_slice %119 {offsets = [0, 0], sizes = [32, 128], strides = [1, 1]} : vector<32x512xf32> to vector<32x128xf32>
    %121 = arith.mulf %120, %2 : vector<32x128xf32>
    %c64_i32_55 = arith.constant 64 : i32
    %122 = tpu.dynamic_rotate %120 by %c64_i32_55 dim 1 : vector<32x128xf32>, i32 -> vector<32x128xf32>
    %123 = arith.mulf %122, %3 : vector<32x128xf32>
    %124 = arith.addf %121, %123 : vector<32x128xf32>
    %125 = vector.extract_strided_slice %119 {offsets = [0, 128], sizes = [32, 128], strides = [1, 1]} : vector<32x512xf32> to vector<32x128xf32>
    %126 = arith.mulf %125, %2 : vector<32x128xf32>
    %c64_i32_56 = arith.constant 64 : i32
    %127 = tpu.dynamic_rotate %125 by %c64_i32_56 dim 1 : vector<32x128xf32>, i32 -> vector<32x128xf32>
    %128 = arith.mulf %127, %3 : vector<32x128xf32>
    %129 = arith.addf %126, %128 : vector<32x128xf32>
    %c0_57 = arith.constant 0 : index
    %c0_58 = arith.constant 0 : index
    %c0_59 = arith.constant 0 : index
    %130 = vector.load %arg5[%c0_57, %c0_58, %c0_59] : memref<2x1x128xf32, #tpu.memory_space<vmem>>, vector<1x1x128xf32>
    %131 = vector.shape_cast %130 : vector<1x1x128xf32> to vector<1x128xf32>
    %132 = vector.broadcast %131 : vector<1x128xf32> to vector<32x128xf32>
    %133 = arith.mulf %129, %132 : vector<32x128xf32>
    %cst_60 = arith.constant dense<0.000000e+00> : vector<32x32xf32>
    %134 = tpu.matmul %124, %133, %cst_60 {dimension_numbers = #tpu.dot_dimension_numbers<[1], [1], [0], [0], [0, 0, 1, 0], [], []>} : vector<32x128xf32>, vector<32x128xf32>, vector<32x32xf32> -> vector<32x32xf32>
    %135 = arith.addf %134, %1 : vector<32x32xf32>
    %cst_61 = arith.constant dense<0xFF800000> : vector<32xf32>
    %136 = vector.multi_reduction <maximumf>, %135, %cst_61 [1] : vector<32x32xf32> to vector<32xf32>
    %137 = vector.shape_cast %136 : vector<32xf32> to vector<32x1xf32>
    %138 = vector.broadcast %137 : vector<32x1xf32> to vector<32x32xf32>
    %139 = arith.subf %135, %138 : vector<32x32xf32>
    %140 = math.exp %139 : vector<32x32xf32>
    %cst_62 = arith.constant dense<0.000000e+00> : vector<32xf32>
    %141 = vector.multi_reduction <add>, %140, %cst_62 [1] : vector<32x32xf32> to vector<32xf32>
    %142 = vector.shape_cast %141 : vector<32xf32> to vector<32x1xf32>
    %143 = tpu.reciprocal %142 {approx = true} : vector<32x1xf32> -> vector<32x1xf32>
    %144 = vector.broadcast %143 : vector<32x1xf32> to vector<32x32xf32>
    %145 = arith.mulf %140, %144 : vector<32x32xf32>
    %146 = vector.extract_strided_slice %119 {offsets = [0, 256], sizes = [32, 128], strides = [1, 1]} : vector<32x512xf32> to vector<32x128xf32>
    %cst_63 = arith.constant dense<0.000000e+00> : vector<32x128xf32>
    %147 = tpu.matmul %145, %146, %cst_63 {dimension_numbers = #tpu.dot_dimension_numbers<[1], [0], [0], [1], [0, 0, 1, 1], [], []>} : vector<32x32xf32>, vector<32x128xf32>, vector<32x128xf32> -> vector<32x128xf32>
    %c1_64 = arith.constant 1 : index
    %c0_65 = arith.constant 0 : index
    %c0_66 = arith.constant 0 : index
    %148 = vector.load %arg5[%c1_64, %c0_65, %c0_66] : memref<2x1x128xf32, #tpu.memory_space<vmem>>, vector<1x1x128xf32>
    %149 = vector.shape_cast %148 : vector<1x1x128xf32> to vector<1x128xf32>
    %150 = vector.broadcast %149 : vector<1x128xf32> to vector<32x128xf32>
    %151 = arith.mulf %129, %150 : vector<32x128xf32>
    %cst_67 = arith.constant dense<0.000000e+00> : vector<32x32xf32>
    %152 = tpu.matmul %124, %151, %cst_67 {dimension_numbers = #tpu.dot_dimension_numbers<[1], [1], [0], [0], [0, 0, 1, 0], [], []>} : vector<32x128xf32>, vector<32x128xf32>, vector<32x32xf32> -> vector<32x32xf32>
    %153 = arith.addf %152, %1 : vector<32x32xf32>
    %cst_68 = arith.constant dense<0xFF800000> : vector<32xf32>
    %154 = vector.multi_reduction <maximumf>, %153, %cst_68 [1] : vector<32x32xf32> to vector<32xf32>
    %155 = vector.shape_cast %154 : vector<32xf32> to vector<32x1xf32>
    %156 = vector.broadcast %155 : vector<32x1xf32> to vector<32x32xf32>
    %157 = arith.subf %153, %156 : vector<32x32xf32>
    %158 = math.exp %157 : vector<32x32xf32>
    %cst_69 = arith.constant dense<0.000000e+00> : vector<32xf32>
    %159 = vector.multi_reduction <add>, %158, %cst_69 [1] : vector<32x32xf32> to vector<32xf32>
    %160 = vector.shape_cast %159 : vector<32xf32> to vector<32x1xf32>
    %161 = tpu.reciprocal %160 {approx = true} : vector<32x1xf32> -> vector<32x1xf32>
    %162 = vector.broadcast %161 : vector<32x1xf32> to vector<32x32xf32>
    %163 = arith.mulf %158, %162 : vector<32x32xf32>
    %164 = vector.extract_strided_slice %119 {offsets = [0, 384], sizes = [32, 128], strides = [1, 1]} : vector<32x512xf32> to vector<32x128xf32>
    %cst_70 = arith.constant dense<0.000000e+00> : vector<32x128xf32>
    %165 = tpu.matmul %163, %164, %cst_70 {dimension_numbers = #tpu.dot_dimension_numbers<[1], [0], [0], [1], [0, 0, 1, 1], [], []>} : vector<32x32xf32>, vector<32x128xf32>, vector<32x128xf32> -> vector<32x128xf32>
    %166 = arith.addf %147, %165 : vector<32x128xf32>
    %167 = arith.addf %101, %166 : vector<32x128xf32>
    %c1_71 = arith.constant 1 : index
    %c0_72 = arith.constant 0 : index
    %c0_73 = arith.constant 0 : index
    %168 = vector.load %arg10[%c1_71, %c0_72, %c0_73] : memref<2x1x128xf32, #tpu.memory_space<vmem>>, vector<1x1x128xf32>
    %169 = vector.shape_cast %168 : vector<1x1x128xf32> to vector<1x128xf32>
    %170 = arith.mulf %167, %167 : vector<32x128xf32>
    %cst_74 = arith.constant dense<0.000000e+00> : vector<32xf32>
    %171 = vector.multi_reduction <add>, %170, %cst_74 [1] : vector<32x128xf32> to vector<32xf32>
    %172 = vector.shape_cast %171 : vector<32xf32> to vector<32x1xf32>
    %cst_75 = arith.constant 1.280000e+02 : f32
    %173 = vector.broadcast %cst_75 : f32 to vector<32x1xf32>
    %174 = arith.divf %172, %173 : vector<32x1xf32>
    %cst_76 = arith.constant 9.99999997E-7 : f32
    %175 = vector.broadcast %cst_76 : f32 to vector<32x1xf32>
    %176 = arith.addf %174, %175 : vector<32x1xf32>
    %177 = math.rsqrt %176 : vector<32x1xf32>
    %178 = vector.broadcast %177 : vector<32x1xf32> to vector<32x128xf32>
    %179 = arith.mulf %167, %178 : vector<32x128xf32>
    %180 = vector.broadcast %169 : vector<1x128xf32> to vector<32x128xf32>
    %181 = arith.mulf %179, %180 : vector<32x128xf32>
    %182 = arith.truncf %181 : vector<32x128xf32> to vector<32x128xbf16>
    %c1_77 = arith.constant 1 : index
    %c0_78 = arith.constant 0 : index
    %c0_79 = arith.constant 0 : index
    %183 = vector.load %arg7[%c1_77, %c0_78, %c0_79] : memref<2x128x512xbf16, #tpu.memory_space<vmem>>, vector<1x128x512xbf16>
    %184 = vector.shape_cast %183 : vector<1x128x512xbf16> to vector<128x512xbf16>
    %cst_80 = arith.constant dense<0.000000e+00> : vector<32x512xf32>
    %185 = tpu.matmul %182, %184, %cst_80 {dimension_numbers = #tpu.dot_dimension_numbers<[1], [0], [0], [1], [0, 0, 1, 1], [], []>} : vector<32x128xbf16>, vector<128x512xbf16>, vector<32x512xf32> -> vector<32x512xf32>
    %186 = vector.extract_strided_slice %185 {offsets = [0, 0], sizes = [32, 256], strides = [1, 1]} : vector<32x512xf32> to vector<32x256xf32>
    %187 = vector.extract_strided_slice %185 {offsets = [0, 256], sizes = [32, 256], strides = [1, 1]} : vector<32x512xf32> to vector<32x256xf32>
    %188 = arith.negf %186 : vector<32x256xf32>
    %189 = math.exp %188 : vector<32x256xf32>
    %cst_81 = arith.constant 1.000000e+00 : f32
    %190 = vector.broadcast %cst_81 : f32 to vector<32x256xf32>
    %191 = arith.addf %190, %189 : vector<32x256xf32>
    %192 = arith.divf %190, %191 : vector<32x256xf32>
    %193 = arith.mulf %186, %192 : vector<32x256xf32>
    %194 = arith.mulf %193, %187 : vector<32x256xf32>
    %195 = arith.truncf %194 : vector<32x256xf32> to vector<32x256xbf16>
    %c1_82 = arith.constant 1 : index
    %c0_83 = arith.constant 0 : index
    %c0_84 = arith.constant 0 : index
    %196 = vector.load %arg8[%c1_82, %c0_83, %c0_84] : memref<2x256x128xbf16, #tpu.memory_space<vmem>>, vector<1x256x128xbf16>
    %197 = vector.shape_cast %196 : vector<1x256x128xbf16> to vector<256x128xbf16>
    %cst_85 = arith.constant dense<0.000000e+00> : vector<32x128xf32>
    %198 = tpu.matmul %195, %197, %cst_85 {dimension_numbers = #tpu.dot_dimension_numbers<[1], [0], [0], [1], [0, 0, 1, 1], [], []>} : vector<32x256xbf16>, vector<256x128xbf16>, vector<32x128xf32> -> vector<32x128xf32>
    %199 = arith.addf %167, %198 : vector<32x128xf32>
    %c0_86 = arith.constant 0 : index
    %c0_87 = arith.constant 0 : index
    %200 = vector.load %arg11[%c0_86, %c0_87] : memref<1x128xf32, #tpu.memory_space<vmem>>, vector<1x128xf32>
    %201 = arith.mulf %199, %199 : vector<32x128xf32>
    %cst_88 = arith.constant dense<0.000000e+00> : vector<32xf32>
    %202 = vector.multi_reduction <add>, %201, %cst_88 [1] : vector<32x128xf32> to vector<32xf32>
    %203 = vector.shape_cast %202 : vector<32xf32> to vector<32x1xf32>
    %cst_89 = arith.constant 1.280000e+02 : f32
    %204 = vector.broadcast %cst_89 : f32 to vector<32x1xf32>
    %205 = arith.divf %203, %204 : vector<32x1xf32>
    %cst_90 = arith.constant 9.99999997E-7 : f32
    %206 = vector.broadcast %cst_90 : f32 to vector<32x1xf32>
    %207 = arith.addf %205, %206 : vector<32x1xf32>
    %208 = math.rsqrt %207 : vector<32x1xf32>
    %209 = vector.broadcast %208 : vector<32x1xf32> to vector<32x128xf32>
    %210 = arith.mulf %199, %209 : vector<32x128xf32>
    %211 = vector.broadcast %200 : vector<1x128xf32> to vector<32x128xf32>
    %212 = arith.mulf %210, %211 : vector<32x128xf32>
    %213 = arith.truncf %212 : vector<32x128xf32> to vector<32x128xbf16>
    %c0_91 = arith.constant 0 : index
    %c0_92 = arith.constant 0 : index
    %214 = vector.load %arg12[%c0_91, %c0_92] : memref<128x384xbf16, #tpu.memory_space<vmem>>, vector<128x384xbf16>
    %cst_93 = arith.constant dense<0.000000e+00> : vector<32x384xf32>
    %215 = tpu.matmul %213, %214, %cst_93 {dimension_numbers = #tpu.dot_dimension_numbers<[1], [0], [0], [1], [0, 0, 1, 1], [], []>} : vector<32x128xbf16>, vector<128x384xbf16>, vector<32x384xf32> -> vector<32x384xf32>
    %216 = vector.extract_strided_slice %215 {offsets = [0, 0], sizes = [32, 256], strides = [1, 1]} : vector<32x384xf32> to vector<32x256xf32>
    %217 = vector.extract_strided_slice %215 {offsets = [0, 256], sizes = [32, 128], strides = [1, 1]} : vector<32x384xf32> to vector<32x128xf32>
    %c0_94 = arith.constant 0 : index
    %c0_95 = arith.constant 0 : index
    %218 = vector.load %arg16[%c0_94, %c0_95] : memref<32x256xf32, #tpu.memory_space<vmem>>, vector<32x256xf32>
    tpu.vector_store %arg16[%c0_94, %c0_95], %216 {strides = array<i32>} : memref<32x256xf32, #tpu.memory_space<vmem>>, vector<32x256xf32>,
    %c0_96 = arith.constant 0 : index
    %c0_97 = arith.constant 0 : index
    %219 = vector.load %arg13[%c0_96, %c0_97] : memref<32x1xi32, #tpu.memory_space<vmem>>, vector<32x1xi32>
    %cst_98 = arith.constant dense<0xFF800000> : vector<32xf32>
    %220 = vector.multi_reduction <maximumf>, %216, %cst_98 [1] : vector<32x256xf32> to vector<32xf32>
    %221 = vector.shape_cast %220 : vector<32xf32> to vector<32x1xf32>
    %222 = vector.broadcast %221 : vector<32x1xf32> to vector<32x256xf32>
    %223 = arith.subf %216, %222 : vector<32x256xf32>
    %224 = math.exp %223 : vector<32x256xf32>
    %cst_99 = arith.constant dense<0.000000e+00> : vector<32xf32>
    %225 = vector.multi_reduction <add>, %224, %cst_99 [1] : vector<32x256xf32> to vector<32xf32>
    %226 = vector.shape_cast %225 : vector<32xf32> to vector<32x1xf32>
    %227 = math.log %226 : vector<32x1xf32>
    %228 = arith.addf %221, %227 : vector<32x1xf32>
    %229 = tpu.iota {dimensions = array<i32: 1>} : vector<32x256xi32>
    %230 = vector.broadcast %219 : vector<32x1xi32> to vector<32x256xi32>
    %231 = arith.cmpi eq, %229, %230 : vector<32x256xi32>
    %cst_100 = arith.constant 0.000000e+00 : f32
    %232 = vector.broadcast %cst_100 : f32 to vector<32x256xf32>
    %233 = arith.select %231, %216, %232 : vector<32x256xi1>, vector<32x256xf32>
    %cst_101 = arith.constant dense<0.000000e+00> : vector<32xf32>
    %234 = vector.multi_reduction <add>, %233, %cst_101 [1] : vector<32x256xf32> to vector<32xf32>
    %235 = vector.shape_cast %234 : vector<32xf32> to vector<32x1xf32>
    %c-100_i32 = arith.constant -100 : i32
    %236 = vector.broadcast %c-100_i32 : i32 to vector<32x1xi32>
    %237 = arith.cmpi ne, %219, %236 : vector<32x1xi32>
    %238 = arith.extui %237 : vector<32x1xi1> to vector<32x1xi32>
    %239 = arith.sitofp %238 : vector<32x1xi32> to vector<32x1xf32>
    %240 = arith.subf %228, %235 : vector<32x1xf32>
    %241 = arith.mulf %240, %239 : vector<32x1xf32>
    %c0_102 = arith.constant 0 : index
    %c0_103 = arith.constant 0 : index
    %242 = vector.load %arg14[%c0_102, %c0_103] : memref<32x128xf32, #tpu.memory_space<vmem>>, vector<32x128xf32>
    %243 = arith.subf %217, %242 : vector<32x128xf32>
    %c0_104 = arith.constant 0 : index
    %c0_105 = arith.constant 0 : index
    %244 = vector.load %arg15[%c0_104, %c0_105] : memref<32x1xf32, #tpu.memory_space<vmem>>, vector<32x1xf32>
    %245 = arith.mulf %243, %243 : vector<32x128xf32>
    %cst_106 = arith.constant dense<0.000000e+00> : vector<32xf32>
    %246 = vector.multi_reduction <add>, %245, %cst_106 [1] : vector<32x128xf32> to vector<32xf32>
    %247 = vector.shape_cast %246 : vector<32xf32> to vector<32x1xf32>
    %248 = arith.mulf %247, %244 : vector<32x1xf32>
    %cst_107 = arith.constant dense<0.000000e+00> : vector<1xf32>
    %249 = vector.multi_reduction <add>, %241, %cst_107 [0] : vector<32x1xf32> to vector<1xf32>
    %250 = vector.shape_cast %249 : vector<1xf32> to vector<1x1xf32>
    %cst_108 = arith.constant dense<0.000000e+00> : vector<1xf32>
    %251 = vector.multi_reduction <add>, %239, %cst_108 [0] : vector<32x1xf32> to vector<1xf32>
    %252 = vector.shape_cast %251 : vector<1xf32> to vector<1x1xf32>
    %cst_109 = arith.constant dense<0.000000e+00> : vector<1xf32>
    %253 = vector.multi_reduction <add>, %248, %cst_109 [0] : vector<32x1xf32> to vector<1xf32>
    %254 = vector.shape_cast %253 : vector<1xf32> to vector<1x1xf32>
    %cst_110 = arith.constant dense<0.000000e+00> : vector<1xf32>
    %255 = vector.multi_reduction <add>, %244, %cst_110 [0] : vector<32x1xf32> to vector<1xf32>
    %256 = vector.shape_cast %255 : vector<1xf32> to vector<1x1xf32>
    %cst_111 = arith.constant 1.000000e+00 : f32
    %257 = vector.broadcast %cst_111 : f32 to vector<1x1xf32>
    %258 = arith.maximumf %252, %257 : vector<1x1xf32>
    %259 = arith.divf %250, %258 : vector<1x1xf32>
    %cst_112 = arith.constant 1.280000e+02 : f32
    %260 = vector.broadcast %cst_112 : f32 to vector<1x1xf32>
    %261 = arith.mulf %256, %260 : vector<1x1xf32>
    %cst_113 = arith.constant 1.000000e+00 : f32
    %262 = vector.broadcast %cst_113 : f32 to vector<1x1xf32>
    %263 = arith.maximumf %261, %262 : vector<1x1xf32>
    %264 = arith.divf %254, %263 : vector<1x1xf32>
    %265 = tpu.iota {dimensions = array<i32: 1>} : vector<1x128xi32>
    %c0_i32 = arith.constant 0 : i32
    %266 = vector.broadcast %c0_i32 : i32 to vector<1x128xi32>
    %267 = arith.cmpi eq, %265, %266 : vector<1x128xi32>
    %cst_114 = arith.constant 0.000000e+00 : f32
    %268 = vector.shape_cast %259 : vector<1x1xf32> to vector<1x1xf32>
    %269 = vector.broadcast %268 : vector<1x1xf32> to vector<1x128xf32>
    %270 = vector.broadcast %cst_114 : f32 to vector<1x128xf32>
    %271 = arith.select %267, %269, %270 : vector<1x128xi1>, vector<1x128xf32>
    %c1_i32 = arith.constant 1 : i32
    %272 = vector.broadcast %c1_i32 : i32 to vector<1x128xi32>
    %273 = arith.cmpi eq, %265, %272 : vector<1x128xi32>
    %cst_115 = arith.constant 0.000000e+00 : f32
    %274 = vector.shape_cast %264 : vector<1x1xf32> to vector<1x1xf32>
    %275 = vector.broadcast %274 : vector<1x1xf32> to vector<1x128xf32>
    %276 = vector.broadcast %cst_115 : f32 to vector<1x128xf32>
    %277 = arith.select %273, %275, %276 : vector<1x128xi1>, vector<1x128xf32>
    %278 = arith.addf %271, %277 : vector<1x128xf32>
    %c0_116 = arith.constant 0 : index
    %c0_117 = arith.constant 0 : index
    %279 = vector.load %arg17[%c0_116, %c0_117] : memref<1x128xf32, #tpu.memory_space<vmem>>, vector<1x128xf32>
    tpu.vector_store %arg17[%c0_116, %c0_117], %278 {strides = array<i32>} : memref<1x128xf32, #tpu.memory_space<vmem>>, vector<1x128xf32>,
    return
  }
  func.func @transform_0(%arg0: i32) -> (i32, i32) {
    %c0_i32 = arith.constant 0 : i32
    %c0_i32_0 = arith.constant 0 : i32
    %c0_i32_1 = arith.constant 0 : i32
    return %c0_i32, %c0_i32_0 : i32, i32
  }
  func.func @transform_1(%arg0: i32) -> (i32, i32) {
    %c0_i32 = arith.constant 0 : i32
    %c0_i32_0 = arith.constant 0 : i32
    %c0_i32_1 = arith.constant 0 : i32
    return %c0_i32, %c0_i32_0 : i32, i32
  }
  func.func @transform_2(%arg0: i32) -> (i32, i32) {
    %c0_i32 = arith.constant 0 : i32
    %c0_i32_0 = arith.constant 0 : i32
    %c0_i32_1 = arith.constant 0 : i32
    return %c0_i32, %c0_i32_0 : i32, i32
  }
  func.func @transform_3(%arg0: i32) -> (i32, i32) {
    %c0_i32 = arith.constant 0 : i32
    %c0_i32_0 = arith.constant 0 : i32
    %c0_i32_1 = arith.constant 0 : i32
    return %c0_i32, %c0_i32_0 : i32, i32
  }
  func.func @transform_4(%arg0: i32) -> (i32, i32, i32) {
    %c0_i32 = arith.constant 0 : i32
    %c0_i32_0 = arith.constant 0 : i32
    %c0_i32_1 = arith.constant 0 : i32
    %c0_i32_2 = arith.constant 0 : i32
    return %c0_i32, %c0_i32_0, %c0_i32_1 : i32, i32, i32
  }
  func.func @transform_5(%arg0: i32) -> (i32, i32, i32) {
    %c0_i32 = arith.constant 0 : i32
    %c0_i32_0 = arith.constant 0 : i32
    %c0_i32_1 = arith.constant 0 : i32
    %c0_i32_2 = arith.constant 0 : i32
    return %c0_i32, %c0_i32_0, %c0_i32_1 : i32, i32, i32
  }
  func.func @transform_6(%arg0: i32) -> (i32, i32, i32) {
    %c0_i32 = arith.constant 0 : i32
    %c0_i32_0 = arith.constant 0 : i32
    %c0_i32_1 = arith.constant 0 : i32
    %c0_i32_2 = arith.constant 0 : i32
    return %c0_i32, %c0_i32_0, %c0_i32_1 : i32, i32, i32
  }
  func.func @transform_7(%arg0: i32) -> (i32, i32, i32) {
    %c0_i32 = arith.constant 0 : i32
    %c0_i32_0 = arith.constant 0 : i32
    %c0_i32_1 = arith.constant 0 : i32
    %c0_i32_2 = arith.constant 0 : i32
    return %c0_i32, %c0_i32_0, %c0_i32_1 : i32, i32, i32
  }
  func.func @transform_8(%arg0: i32) -> (i32, i32, i32) {
    %c0_i32 = arith.constant 0 : i32
    %c0_i32_0 = arith.constant 0 : i32
    %c0_i32_1 = arith.constant 0 : i32
    %c0_i32_2 = arith.constant 0 : i32
    return %c0_i32, %c0_i32_0, %c0_i32_1 : i32, i32, i32
  }
  func.func @transform_9(%arg0: i32) -> (i32, i32, i32) {
    %c0_i32 = arith.constant 0 : i32
    %c0_i32_0 = arith.constant 0 : i32
    %c0_i32_1 = arith.constant 0 : i32
    %c0_i32_2 = arith.constant 0 : i32
    return %c0_i32, %c0_i32_0, %c0_i32_1 : i32, i32, i32
  }
  func.func @transform_10(%arg0: i32) -> (i32, i32) {
    %c0_i32 = arith.constant 0 : i32
    %c0_i32_0 = arith.constant 0 : i32
    %c0_i32_1 = arith.constant 0 : i32
    return %c0_i32, %c0_i32_0 : i32, i32
  }
  func.func @transform_11(%arg0: i32) -> (i32, i32) {
    %c0_i32 = arith.constant 0 : i32
    %c0_i32_0 = arith.constant 0 : i32
    %c0_i32_1 = arith.constant 0 : i32
    return %c0_i32, %c0_i32_0 : i32, i32
  }
  func.func @transform_12(%arg0: i32) -> (i32, i32) {
    %c0_i32 = arith.constant 0 : i32
    %c0_i32_0 = arith.constant 0 : i32
    %c0_i32_1 = arith.constant 0 : i32
    return %c0_i32, %c0_i32_0 : i32, i32
  }
  func.func @transform_13(%arg0: i32) -> (i32, i32) {
    %c0_i32 = arith.constant 0 : i32
    %c0_i32_0 = arith.constant 0 : i32
    %c0_i32_1 = arith.constant 0 : i32
    return %c0_i32, %c0_i32_0 : i32, i32
  }
  func.func @transform_14(%arg0: i32) -> (i32, i32) {
    %c0_i32 = arith.constant 0 : i32
    %c0_i32_0 = arith.constant 0 : i32
    %c0_i32_1 = arith.constant 0 : i32
    return %c0_i32, %c0_i32_0 : i32, i32
  }
  func.func @transform_15(%arg0: i32) -> (i32, i32) {
    %c0_i32 = arith.constant 0 : i32
    %c0_i32_0 = arith.constant 0 : i32
    %c0_i32_1 = arith.constant 0 : i32
    return %c0_i32, %c0_i32_0 : i32, i32
  }
  func.func @transform_16(%arg0: i32) -> (i32, i32) {
    %c0_i32 = arith.constant 0 : i32
    %c0_i32_0 = arith.constant 0 : i32
    %c0_i32_1 = arith.constant 0 : i32
    return %c0_i32, %c0_i32_0 : i32, i32
  }
}

</mosaic_0001>

<bundles_post_ra>
// kernel: llama_for_cls_and_regression.1
= control target key start
LH: loop header
LB: loop body
LE: loop exit
PB: predicated region body
PF: predicated region fallthrough
CT: control target
= control target key end

     0   :  { %s5611_s0 = inlined_call_operand.vmem [shape: f32[32,128], index: 0, kind: input, shape index: {}]   ;;  %s5612_s1 = inlined_call_operand.vmem [shape: f32[32,32], index: 1, kind: input, shape index: {}]   ;;  %s5613_s2 = inlined_call_operand.vmem [shape: f32[32,128], index: 2, kind: input, shape index: {}]   ;;  %s5614_s3 = inlined_call_operand.vmem [shape: f32[32,128], index: 3, kind: input, shape index: {}]   ;;  %s5615_s4 = inlined_call_operand.vmem [shape: f32[2,1,128], index: 4, kind: input, shape index: {}]   ;;  %s5616_s5 = inlined_call_operand.vmem [shape: bf16[2,128,512], index: 5, kind: input, shape index: {}]   ;;  %s5617_s6 = inlined_call_operand.hbm [shape: bf16[2,128,512], index: 6, kind: input, shape index: {}]   ;;  %s5618_s7 = inlined_call_operand.vmem [shape: bf16[2,256,128], index: 7, kind: input, shape index: {}]   ;;  %s5619_s8 = inlined_call_operand.vmem [shape: f32[2,1,128], index: 8, kind: input, shape index: {}]   ;;  %s5620_s9 = inlined_call_operand.vmem [shape: f32[2,1,128], index: 9, kind: input, shape index: {}]   ;;  %s5621_s10 = inlined_call_operand.vmem [shape: f32[1,128], index: 10, kind: input, shape index: {}]   ;;  %s5622_s11 = inlined_call_operand.hbm [shape: bf16[128,384], index: 11, kind: input, shape index: {}]   ;;  %s5623_s12 = inlined_call_operand.vmem [shape: s32[32,1], index: 12, kind: input, shape index: {}]   ;;  %s5624_s13 = inlined_call_operand.vmem [shape: f32[32,128], index: 13, kind: input, shape index: {}]   ;;  %s5625_s14 = inlined_call_operand.vmem [shape: f32[32,1], index: 14, kind: input, shape index: {}]   ;;  %s5626_s15 = inlined_call_operand.hbm [shape: f32[32,256], index: 15, kind: output, shape index: {0}]   ;;  %s5627_s16 = inlined_call_operand.vmem [shape: f32[1,128], index: 16, kind: output, shape index: {1}]  }
   0x1   :  { %5629 = sst [smem:[#allocation11_spill]] %s5611_s0 }
   0x2   :  { %22 = vsyncpa [#allocation3], 0 }
   0x3   :  { %23 = vsyncpa [#allocation6], 0 }
   0x4   :  { %24 = vsyncpa [#allocation4], 0  ;;  %s4650_s21 = smov [#allocation2]  }
   0x5   :  { %s42_s22 = sshll.u32 %s4650_s21, 4  ;;  %s43_s22 = int_to_ptr.vmem [resolvable:$true] %s42_s22 }
   0x6   :  { %s4592_s23 = scalar_lea.vmem %s43_s22, 8192  ;;  %p4597_p1 = scmp.lt.s32.totalorder %s43_s22, %s43_s22 }
   0x7   :  { %p4593_p0 = scmp.ne.s32.totalorder %s43_s22, %s4592_s23  ;;  %p4598_p2 = scmp.lt.s32.totalorder %s4592_s23, %s4592_s23 }
   0x9   :  { %p4599_p3 = por %p4598_p2, %p4597_p1 }
   0xb   :  { %p4600_p4 = pnand %p4599_p3, %p4593_p0 }
   0xd   :  { %4603 = shalt.err (!%p4600_p4)
}
   0xe   :  { %s4651_s24 = smov 256   ;;  %s4652_s25 = smov 16  }
   0xf   :  { %48 = dma.hbm_to_vmem [thread:$0]  %s5617_s6, 8192, %s43_s22, [#allocation3], %s4651_s24, %s4651_s24, %s4652_s25  }
  0x10   :  { %s4653_s28 = smov [#allocation5]  }
  0x11   :  { %s62_s29 = sshll.u32 %s4653_s28, 4  ;;  %s63_s29 = int_to_ptr.vmem [resolvable:$true] %s62_s29 }
  0x12   :  { %s4612_s30 = scalar_lea.vmem %s63_s29, 3072  ;;  %p4617_p6 = scmp.lt.s32.totalorder %s63_s29, %s63_s29 }
  0x13   :  { %p4613_p5 = scmp.ne.s32.totalorder %s63_s29, %s4612_s30  ;;  %p4618_p7 = scmp.lt.s32.totalorder %s4612_s30, %s4612_s30 }
  0x15   :  { %p4619_p8 = por %p4618_p7, %p4617_p6 }
  0x17   :  { %p4620_p9 = pnand %p4619_p8, %p4613_p5 }
  0x19   :  { %4623 = shalt.err (!%p4620_p9)
}
  0x1a   :  { %s4654_s0 = smov 192   ;;  %s4655_s17 = smov 12  }
  0x1b   :  { %68 = dma.hbm_to_vmem [thread:$0]  %s5622_s11, 3072, %s63_s29, [#allocation6], %s4654_s0, %s4654_s0, %s4655_s17  }
  0x1c   :  { %4644 = dma.done.wait [#allocation3], 8192  }
  0x1d   :  { %4645 = vsyncadd [#allocation3], 4294959104 }
  0x1e   :  { %4646 = dma.done.wait [#allocation6], 3072  }
  0x1f   :  { %4647 = vsyncadd [#allocation6], 4294964224  ;;  %s5630_s21 = sld [smem:[#allocation11_spill]]  ;;  %v4114_v6 = vld [vmem:[%s5616_s5 + $0xe4] ss:$16 sps:$4 sm:$0xff]   ;;  %v4656_v36 = vmov 0  }
  0x20   :  { %v4116_v9 = vld [vmem:[%s5616_s5 + $0xec] ss:$16 sps:$4 sm:$0xff]   ;;  %v4118_v10 = vld [vmem:[%s5616_s5 + $0xe0] ss:$16 sps:$4 sm:$0xff]   ;;  %v4119_v11 = vld [vmem:[%s5616_s5 + $0xe8] ss:$16 sps:$4 sm:$0xff]   ;;  %332 = vmatprep.subr.bf16.mxu0 %v4114_v6  ;;  %364 = vmatprep.mubr.bf16.mxu0 %v4656_v36 }
  0x21   :  { %385 = vmatprep.subr.bf16.mxu1 %v4116_v9  ;;  %333 = vmatpush1.bf16.msra.mxu0 %v4118_v10  ;;  %v4120_v12 = vld [vmem:[%s5616_s5 + $0xc4] ss:$16 sps:$4 sm:$0xff]   ;;  %v4122_v13 = vld [vmem:[%s5616_s5 + $0xcc] ss:$16 sps:$4 sm:$0xff]   ;;  %v4124_v14 = vld [vmem:[%s5616_s5 + $0xc0] ss:$16 sps:$4 sm:$0xff]  }
  0x22   :  { %386 = vmatpush1.bf16.msra.mxu1 %v4119_v11  ;;  %v4125_v15 = vld [vmem:[%s5616_s5 + $0xc8] ss:$16 sps:$4 sm:$0xff]   ;;  %334 = vmatprep.subr.bf16.mxu0 %v4120_v12  ;;  %v4126_v16 = vld [vmem:[%s5616_s5 + $0xa4] ss:$16 sps:$4 sm:$0xff]   ;;  %v4128_v17 = vld [vmem:[%s5616_s5 + $0xac] ss:$16 sps:$4 sm:$0xff]  }
  0x23   :  { %387 = vmatprep.subr.bf16.mxu1 %v4122_v13  ;;  %v4130_v18 = vld [vmem:[%s5616_s5 + $0xa0] ss:$16 sps:$4 sm:$0xff]   ;;  %v4131_v19 = vld [vmem:[%s5616_s5 + $0xa8] ss:$16 sps:$4 sm:$0xff]   ;;  %v4132_v20 = vld [vmem:[%s5616_s5 + $0x84] ss:$16 sps:$4 sm:$0xff]   ;;  %417 = vmatprep.mubr.bf16.mxu1 %v4656_v36 }
  0x24   :  { %v4134_v21 = vld [vmem:[%s5616_s5 + $0x8c] ss:$16 sps:$4 sm:$0xff]   ;;  %v4136_v22 = vld [vmem:[%s5616_s5 + $0x80] ss:$16 sps:$4 sm:$0xff]   ;;  %v4137_v23 = vld [vmem:[%s5616_s5 + $0x88] ss:$16 sps:$4 sm:$0xff]   ;;  %4113 = vset.pattern.permute.xlu1 %v4656_v36  ;;  %4112 = vset.pattern.permute.xlu0 %v4656_v36 }
  0x25   :  { %v4757_v0 = vld [vmem:[%s5630_s21] sm:$0xff]  ;;  %v4762_v1 = vld [vmem:[%s5630_s21 + $0x10] sm:$0xff]  ;;  %v4767_v2 = vld [vmem:[%s5630_s21 + $0x8] sm:$0xff]  ;;  %335 = vmatpush1.bf16.msra.mxu0 %v4124_v14  ;;  %s4657_s26 = smov 64   ;;  %vm574_vm0 = vcmask 261120   ;;  %vm3448_vm11 = vcmask 7168  }
  0x26   :  { %v99_v3 = vmul.f32 %v4757_v0, %v4757_v0  ;;  %v101_v4 = vmul.f32 %v4762_v1, %v4762_v1  ;;  %v4776_v5 = vld [vmem:[%s5630_s21 + $0x18] sm:$0xff]  ;;  %v100_v7 = vmul.f32 %v4767_v2, %v4767_v2  ;;  %388 = vmatpush1.bf16.msra.mxu1 %v4125_v15  ;;  %336 = vmatprep.subr.bf16.mxu0 %v4126_v16  ;;  %v4138_v24 = vld [vmem:[%s5616_s5 + $0x64] ss:$16 sps:$4 sm:$0xff]   ;;  %v4142_v26 = vld [vmem:[%s5616_s5 + $0x60] ss:$16 sps:$4 sm:$0xff]  }
  0x27   :  { %v102_v8 = vmul.f32 %v4776_v5, %v4776_v5  ;;  %389 = vmatprep.subr.bf16.mxu1 %v4128_v17  ;;  %v4140_v25 = vld [vmem:[%s5616_s5 + $0x6c] ss:$16 sps:$4 sm:$0xff]   ;;  %v4143_v27 = vld [vmem:[%s5616_s5 + $0x68] ss:$16 sps:$4 sm:$0xff]   ;;  %v4144_v28 = vld [vmem:[%s5616_s5 + $0x44] ss:$16 sps:$4 sm:$0xff]  }
  0x28   :  { %103 = vadd.xlane.f32.xlu0 %v99_v3  ;;  %107 = vadd.xlane.f32.xlu1 %v101_v4  ;;  %v4146_v29 = vld [vmem:[%s5616_s5 + $0x4c] ss:$16 sps:$4 sm:$0xff]   ;;  %v4148_v30 = vld [vmem:[%s5616_s5 + $0x40] ss:$16 sps:$4 sm:$0xff]   ;;  %v4149_v31 = vld [vmem:[%s5616_s5 + $0x48] ss:$16 sps:$4 sm:$0xff]  }
  0x29   :  { %337 = vmatpush1.bf16.msra.mxu0 %v4130_v18  ;;  %v4150_v32 = vld [vmem:[%s5616_s5 + $0x24] ss:$16 sps:$4 sm:$0xff]   ;;  %v4152_v33 = vld [vmem:[%s5616_s5 + $0x2c] ss:$16 sps:$4 sm:$0xff]   ;;  %v4154_v34 = vld [vmem:[%s5616_s5 + $0x20] ss:$16 sps:$4 sm:$0xff]  }
  0x2a   :  { %390 = vmatpush1.bf16.msra.mxu1 %v4131_v19  ;;  %338 = vmatprep.subr.bf16.mxu0 %v4132_v20  ;;  %v4155_v35 = vld [vmem:[%s5616_s5 + $0x28] ss:$16 sps:$4 sm:$0xff]   ;;  %v4156_v37 = vld [vmem:[%s5616_s5 + $0x4] ss:$16 sps:$4 sm:$0xff]   ;;  %v4158_v38 = vld [vmem:[%s5616_s5 + $0xc] ss:$16 sps:$4 sm:$0xff]  }
  0x2b   :  { %391 = vmatprep.subr.bf16.mxu1 %v4134_v21  ;;  %v4160_v39 = vld [vmem:[%s5616_s5] ss:$16 sps:$4 sm:$0xff]   ;;  %v4161_v40 = vld [vmem:[%s5616_s5 + $0x8] ss:$16 sps:$4 sm:$0xff]  }
  0x2c   :  { %105 = vadd.xlane.f32.xlu0 %v100_v7  ;;  %109 = vadd.xlane.f32.xlu1 %v102_v8  ;;  %v3546_v56 = vld [vmem:[%s5619_s8] ss:$0 sm:$0xff]  ;;  %v96_v14 = vld [vmem:[%s5614_s3 + $0x10] sm:$0xff]  ;;  %v4918_v17 = vld [vmem:[%s5614_s3 + $0x18] sm:$0xff] }
  0x2d   :  { %339 = vmatpush1.bf16.msra.mxu0 %v4136_v22  ;;  %v92_v19 = vld [vmem:[%s5613_s2 + $0x10] sm:$0xff]  ;;  %v4928_v21 = vld [vmem:[%s5613_s2 + $0x18] sm:$0xff]  ;;  %v95_v22 = vld [vmem:[%s5614_s3 + $0x8] sm:$0xff] }
  0x2e   :  { %392 = vmatpush1.bf16.msra.mxu1 %v4137_v23  ;;  %340 = vmatprep.subr.bf16.mxu0 %v4138_v24 }
  0x2f   :  { %393 = vmatprep.subr.bf16.mxu1 %v4140_v25  ;;  %v90_v25 = vld [vmem:[%s5613_s2] sm:$0xff] }
  0x31   :  { %341 = vmatpush1.bf16.msra.mxu0 %v4142_v26 }
  0x32   :  { %394 = vmatpush1.bf16.msra.mxu1 %v4143_v27  ;;  %342 = vmatprep.subr.bf16.mxu0 %v4144_v28 }
  0x33   :  { %395 = vmatprep.subr.bf16.mxu1 %v4146_v29  ;;  %v94_v29 = vld [vmem:[%s5614_s3] sm:$0xff] }
  0x35   :  { %343 = vmatpush1.bf16.msra.mxu0 %v4148_v30 }
  0x36   :  { %396 = vmatpush1.bf16.msra.mxu1 %v4149_v31  ;;  %344 = vmatprep.subr.bf16.mxu0 %v4150_v32 }
  0x37   :  { %397 = vmatprep.subr.bf16.mxu1 %v4152_v33  ;;  %v3579_v33 = vld [vmem:[%s5615_s4] ss:$0 sm:$0xff] }
  0x39   :  { %345 = vmatpush1.bf16.msra.mxu0 %v4154_v34 }
  0x3a   :  { %398 = vmatpush1.bf16.msra.mxu1 %v4155_v35  ;;  %346 = vmatprep.subr.bf16.mxu0 %v4156_v37  ;;  %v91_v35 = vld [vmem:[%s5613_s2 + $0x8] sm:$0xff] }
  0x3b   :  { %399 = vmatprep.subr.bf16.mxu1 %v4158_v38 }
  0x3d   :  { %347 = vmatpush1.bf16.msra.mxu0 %v4160_v39  ;;  %v3581_v39 = vld [vmem:[%s5615_s4 + $0x1] ss:$0 sm:$0xff] }
  0x3e   :  { %400 = vmatpush1.bf16.msra.mxu1 %v4161_v40 }
  0xb1   :  { %v104_v41 = vpop.xlane.xlu0 %103  ;;  %v108_v42 = vpop.xlane.xlu1 %107 }
  0xb2   :  { %v112_v43 = vmul.f32 0.0078125, %v104_v41  ;;  %v114_v44 = vmul.f32 0.0078125, %v108_v42 }
  0xb4   :  { %v116_v45 = vadd.f32 1e-06, %v112_v43  ;;  %v118_v50 = vadd.f32 1e-06, %v114_v44 }
  0xb5   :  { %v106_v46 = vpop.xlane.xlu0 %105  ;;  %v110_v47 = vpop.xlane.xlu1 %109 }
  0xb6   :  { %4370 = vrsqrt.f32 %v116_v45  ;;  %v113_v48 = vmul.f32 0.0078125, %v106_v46  ;;  %v115_v49 = vmul.f32 0.0078125, %v110_v47 }
  0xb8   :  { %v117_v51 = vadd.f32 1e-06, %v113_v48  ;;  %v119_v52 = vadd.f32 1e-06, %v115_v49 }
  0xba   :  { %4372 = vrsqrt.f32 %v117_v51 }
  0xbb   :  { %4374 = vrsqrt.f32 %v118_v50 }
  0xbc   :  { %4376 = vrsqrt.f32 %v119_v52 }
  0xc3   :  { %v4371_v53 = vpop.eup %4370 }
  0xc4   :  { %v124_v54 = vmul.f32 %v4371_v53, %v4757_v0 }
  0xc6   :  { %v134_v60 = vmul.f32 %v3546_v56, %v124_v54 }
  0xc7   :  { %v4373_v55 = vpop.eup %4372 }
  0xc8   :  { %v4375_v57 = vpop.eup %4374  ;;  %v125_v58 = vmul.f32 %v4373_v55, %v4767_v2 }
  0xc9   :  { %v4377_v59 = vpop.eup %4376  ;;  %v126_v63 = vmul.f32 %v4375_v57, %v4762_v1 }
  0xca   :  { %v135_v61 = vmul.f32 %v3546_v56, %v125_v58  ;;  %v127_v3 = vmul.f32 %v4377_v59, %v4776_v5 }
  0xcb   :  { %v136_v0 = vmul.f32 %v3546_v56, %v126_v63 }
  0xcc   :  { %v138_v62 = vpack.c.bf16 %v135_v61, %v134_v60  ;;  %v137_v4 = vmul.f32 %v3546_v56, %v127_v3 }
  0xce   :  { %365 = vmatmul.mubr.bf16.vlgmr.msra.gmra.mxu0 %v138_v62  ;;  %418 = vmatmul.mubr.bf16.vlgmr.msra.gmra.mxu1 %v138_v62  ;;  %v139_v6 = vpack.c.bf16 %v137_v4, %v136_v0 }
  0xcf   :  { %374 = vmatprep.mubr.bf16.mxu0 %v4656_v36  ;;  %427 = vmatprep.mubr.bf16.mxu1 %v4656_v36 }
  0xd6   :  { %375 = vmatmul.mubr.bf16.gmra.mxu0 %v139_v6  ;;  %428 = vmatmul.mubr.bf16.gmra.mxu1 %v139_v6 }
 0x18e   :  { %v366_v2 = vpop.f32.mrf.mxu0  ;;  %v4908_v12 = vpop.f32.mrf.mxu1 }
 0x18f   :  { %v438_v34 = vmul.f32 %v366_v2, %v90_v25 }
 0x190   :  { %v368_v7 = vpop.f32.mrf.mxu0  ;;  %v4910_v13 = vpop.f32.mrf.mxu1 }
 0x191   :  { %v458_v50 = vmul.f32 %v368_v7, %v90_v25 }
 0x192   :  { %v4891_v8 = vpop.f32.mrf.mxu0  ;;  %v4920_v18 = vpop.f32.mrf.mxu1 }
 0x193   :  { %v439_v63 = vmul.f32 %v4891_v8, %v91_v35 }
 0x194   :  { %v372_v9 = vpop.f32.mrf.mxu0  ;;  %v4941_v30 = vpop.f32.mrf.mxu1 }
 0x195   :  { %v459_v40 = vmul.f32 %v372_v9, %v91_v35 }
 0x196   :  { %v4893_v10 = vpop.f32.mrf.mxu0  ;;  %v4952_v48 = vpop.f32.mrf.mxu1 }
 0x197   :  { %v440_v3 = vmul.f32 %v4893_v10, %v92_v19 }
 0x198   :  { %v378_v1 = vpop.f32.mrf.mxu0  ;;  %v431_v54 = vpop.f32.mrf.mxu1 }
 0x199   :  { %466 = vrot.lane.b32.xlu1 %v378_v1, %s4657_s26  ;;  %v460_v20 = vmul.f32 %v378_v1, %v92_v19 }
 0x19a   :  { %v4896_v5 = vpop.f32.mrf.mxu0  ;;  %v4954_v59 = vpop.f32.mrf.mxu1 }
 0x19c   :  { %v382_v11 = vpop.f32.mrf.mxu0  ;;  %v435_v0 = vpop.f32.mrf.mxu1 }
 0x19d   :  { %464 = vrot.lane.b32.xlu1 %v372_v9, %s4657_s26  ;;  %468 = vrot.lane.b32.xlu0 %v382_v11, %s4657_s26  ;;  %v461_v26 = vmul.f32 %v382_v11, %v4928_v21 }
 0x1a1   :  { %462 = vrot.lane.b32.xlu1 %v368_v7, %s4657_s26  ;;  %442 = vrot.lane.b32.xlu0 %v366_v2, %s4657_s26  ;;  %v441_v7 = vmul.f32 %v4896_v5, %v4928_v21 }
 0x1a5   :  { %444 = vrot.lane.b32.xlu1 %v4891_v8, %s4657_s26  ;;  %446 = vrot.lane.b32.xlu0 %v4893_v10, %s4657_s26  ;;  %v87_v8 = vld [vmem:[%s5612_s1 + $0x8] sm:$0xff] }
 0x1a9   :  { %448 = vrot.lane.b32.xlu1 %v4896_v5, %s4657_s26  ;;  %v86_v5 = vld [vmem:[%s5612_s1] sm:$0xff] }
 0x20b   :  { %v467_v15 = vpop.permute.xlu1 %466 }
 0x20c   :  { %v472_v16 = vmul.f32 %v467_v15, %v96_v14 }
 0x20e   :  { %v476_v28 = vadd.f32 %v472_v16, %v460_v20 }
 0x20f   :  { %v465_v23 = vpop.permute.xlu1 %464  ;;  %v469_v24 = vpop.permute.xlu0 %468 }
 0x210   :  { %v473_v27 = vmul.f32 %v469_v24, %v4918_v17  ;;  %v471_v31 = vmul.f32 %v465_v23, %v95_v22  ;;  %v487_v44 = vmul.f32 %v3579_v33, %v476_v28  ;;  %v629_v49 = vmul.f32 %v3581_v39, %v476_v28  ;;  %v88_v24 = vld [vmem:[%s5612_s1 + $0x10] sm:$0xff] }
 0x212   :  { %v477_v32 = vadd.f32 %v473_v27, %v461_v26  ;;  %v475_v45 = vadd.f32 %v471_v31, %v459_v40 }
 0x213   :  { %v463_v37 = vpop.permute.xlu1 %462  ;;  %v443_v38 = vpop.permute.xlu0 %442 }
 0x214   :  { %v450_v41 = vmul.f32 %v443_v38, %v94_v29  ;;  %v488_v42 = vmul.f32 %v3579_v33, %v477_v32  ;;  %v630_v43 = vmul.f32 %v3581_v39, %v477_v32  ;;  %v470_v46 = vmul.f32 %v463_v37, %v94_v29 }
 0x215   :  { %v486_v52 = vmul.f32 %v3579_v33, %v475_v45  ;;  %v628_v53 = vmul.f32 %v3581_v39, %v475_v45 }
 0x216   :  { %v454_v47 = vadd.f32 %v450_v41, %v438_v34  ;;  %3970 = vmatprep.subr.mxu0 %v488_v42  ;;  %3984 = vmatprep.subr.mxu1 %v630_v43  ;;  %v474_v51 = vadd.f32 %v470_v46, %v458_v50 }
 0x217   :  { %3971 = vmatpush3.xpose.msra.mxu0 %v488_v42  ;;  %3985 = vmatpush3.xpose.msra.mxu1 %v630_v43  ;;  %v445_v55 = vpop.permute.xlu1 %444  ;;  %v447_v56 = vpop.permute.xlu0 %446 }
 0x218   :  { %3972 = vmatprep.subr.mxu0 %v487_v44  ;;  %3978 = vmatprep.mubr.f32.mxu0 %v454_v47  ;;  %v485_v57 = vmul.f32 %v3579_v33, %v474_v51  ;;  %v627_v58 = vmul.f32 %v3581_v39, %v474_v51  ;;  %v451_v60 = vmul.f32 %v445_v55, %v95_v22 }
 0x219   :  { %3986 = vmatprep.subr.mxu1 %v629_v49  ;;  %3992 = vmatprep.mubr.f32.mxu1 %v454_v47  ;;  %v452_v61 = vmul.f32 %v447_v56, %v96_v14 }
 0x21a   :  { %v455_v4 = vadd.f32 %v451_v60, %v439_v63 }
 0x21b   :  { %3973 = vmatpush3.xpose.msra.mxu0 %v487_v44  ;;  %3987 = vmatpush3.xpose.msra.mxu1 %v629_v49  ;;  %v449_v62 = vpop.permute.xlu1 %448  ;;  %v456_v2 = vadd.f32 %v452_v61, %v440_v3 }
 0x21c   :  { %3974 = vmatprep.subr.mxu0 %v486_v52  ;;  %3988 = vmatprep.subr.mxu1 %v628_v53  ;;  %v453_v6 = vmul.f32 %v449_v62, %v4918_v17 }
 0x21e   :  { %v457_v9 = vadd.f32 %v453_v6, %v441_v7 }
 0x21f   :  { %3975 = vmatpush3.xpose.msra.mxu0 %v486_v52  ;;  %3989 = vmatpush3.xpose.msra.mxu1 %v628_v53 }
 0x220   :  { %3976 = vmatprep.subr.mxu0 %v485_v57  ;;  %3990 = vmatprep.subr.mxu1 %v627_v58 }
 0x223   :  { %3977 = vmatpush3.xpose.msra.mxu0 %v485_v57  ;;  %3991 = vmatpush3.xpose.msra.mxu1 %v627_v58 }
 0x224   :  { %3998 = vmatprep.subr.mxu0 %v435_v0 }
 0x226   :  { %3979 = vmatmul.mubr.f32.vlgmr.msra.gmra.mxu0 %v455_v4  ;;  %3993 = vmatmul.mubr.f32.vlgmr.msra.gmra.mxu1 %v455_v4 }
 0x227   :  { %3981 = vmatprep.mubr.f32.mxu0 %v456_v2  ;;  %3995 = vmatprep.mubr.f32.mxu1 %v456_v2 }
 0x228   :  { %3999 = vmatpush3.msra.mxu0 %v435_v0 }
 0x229   :  { %4000 = vmatprep.subr.mxu0 %v431_v54 }
 0x22a   :  { %4001 = vmatpush3.msra.mxu0 %v431_v54  ;;  %3996 = vmatmul.mubr.f32.gmra.mxu1 %v457_v9 }
 0x22b   :  { %3982 = vmatmul.mubr.f32.gmra.mxu0 %v457_v9  ;;  %4002 = vmatprep.subr.mxu0 %v4941_v30 }
 0x22c   :  { %4003 = vmatpush3.msra.mxu0 %v4941_v30  ;;  %1276 = vmatprep.mubr.bf16.mxu1 %v4656_v36 }
 0x22d   :  { %4004 = vmatprep.subr.mxu0 %v4910_v13 }
 0x22e   :  { %4005 = vmatpush3.msra.mxu0 %v4910_v13  ;;  %v89_v13 = vld [vmem:[%s5612_s1 + $0x18] sm:$0xff] }
 0x22f   :  { %4012 = vmatprep.subr.mxu0 %v4954_v59 }
 0x2e6   :  { %v3980_v10 = vpop.f32.mrf.mxu0  ;;  %v3994_v1 = vpop.f32.mrf.mxu1 }
 0x2e7   :  { %v703_v11 = vadd.f32 %v3994_v1, %v87_v8  ;;  %v561_v16 = vadd.f32 %v3980_v10, %v87_v8 }
 0x2e8   :  { %v555_v14 = vpop.f32.mrf.mxu0  ;;  %v697_v15 = vpop.f32.mrf.mxu1 }
 0x2e9   :  { %v698_v17 = vadd.f32 %v697_v15, %v86_v5  ;;  %v719_v19 = vsel %vm574_vm0, %v703_v11, -inf  ;;  %v578_v27 = vsel %vm574_vm0, %v561_v16, -inf  ;;  %v556_v31 = vadd.f32 %v555_v14, %v86_v5 }
 0x2ea   :  { %720 = vmax.xlane.f32.xlu1 %v719_v19  ;;  %v3997_v20 = vpop.f32.mrf.mxu1 }
 0x2eb   :  { %v3983_v21 = vpop.f32.mrf.mxu0  ;;  %v713_v22 = vadd.f32 %v3997_v20, %v89_v13  ;;  %v716_v23 = vsel %vm574_vm0, %v698_v17, -inf  ;;  %v575_v35 = vsel %vm574_vm0, %v556_v31, -inf }
 0x2ec   :  { %v707_v25 = vpop.f32.mrf.mxu1  ;;  %717 = vmax.xlane.f32.xlu0 %v716_v23  ;;  %v571_v26 = vadd.f32 %v3983_v21, %v89_v13 }
 0x2ed   :  { %v708_v28 = vadd.f32 %v707_v25, %v88_v24  ;;  %v725_v29 = vsel %vm574_vm0, %v713_v22, -inf  ;;  %v565_v33 = vpop.f32.mrf.mxu0 }
 0x2ee   :  { %579 = vmax.xlane.f32.xlu1 %v578_v27  ;;  %v584_v30 = vsel %vm574_vm0, %v571_v26, -inf  ;;  %v566_v34 = vadd.f32 %v565_v33, %v88_v24 }
 0x2ef   :  { %v722_v32 = vsel %vm574_vm0, %v708_v28, -inf }
 0x2f0   :  { %726 = vmax.xlane.f32.xlu0 %v725_v29  ;;  %v581_v37 = vsel %vm574_vm0, %v566_v34, -inf }
 0x2f2   :  { %585 = vmax.xlane.f32.xlu1 %v584_v30 }
 0x2f4   :  { %723 = vmax.xlane.f32.xlu0 %v722_v32 }
 0x2f8   :  { %576 = vmax.xlane.f32.xlu0 %v575_v35 }
 0x2fc   :  { %582 = vmax.xlane.f32.xlu0 %v581_v37 }
 0x373   :  { %v721_v38 = vpop.xlane.xlu1 %720 }
 0x374   :  { %v729_v39 = vsub.f32 %v703_v11, %v721_v38 }
 0x375   :  { %v718_v40 = vpop.xlane.xlu0 %717 }
 0x376   :  { %v734_v41 = vmul.f32 1.442695, %v729_v39  ;;  %v728_v42 = vsub.f32 %v698_v17, %v718_v40  ;;  %v4164_v40 = vld [vmem:[#allocation2 + $0xe4] ss:$16 sps:$4 sm:$0xff]  }
 0x377   :  { %v580_v43 = vpop.xlane.xlu1 %579 }
 0x378   :  { %4378 = vpow2.f32 %v734_v41  ;;  %v732_v44 = vmul.f32 1.442695, %v728_v42  ;;  %v588_v45 = vsub.f32 %v561_v16, %v580_v43  ;;  %v4165_v41 = vld [vmem:[#allocation2 + $0xe8] ss:$16 sps:$4 sm:$0xff]   ;;  %v4167_v42 = vld [vmem:[#allocation2 + $0xec] ss:$16 sps:$4 sm:$0xff]  }
 0x379   :  { %v727_v46 = vpop.xlane.xlu0 %726  ;;  %v4170_v43 = vld [vmem:[#allocation2 + $0xc4] ss:$16 sps:$4 sm:$0xff]   ;;  %1244 = vmatprep.subr.bf16.mxu1 %v4167_v42 }
 0x37a   :  { %4380 = vpow2.f32 %v732_v44  ;;  %v731_v47 = vsub.f32 %v713_v22, %v727_v46  ;;  %v593_v50 = vmul.f32 1.442695, %v588_v45  ;;  %v4173_v44 = vld [vmem:[#allocation2 + $0xcc] ss:$16 sps:$4 sm:$0xff]   ;;  %v4168_v45 = vld [vmem:[#allocation2 + $0xc0] ss:$16 sps:$4 sm:$0xff]   ;;  %1245 = vmatpush1.bf16.msra.mxu1 %v4165_v41 }
 0x37b   :  { %v586_v49 = vpop.xlane.xlu1 %585  ;;  %v4171_v46 = vld [vmem:[#allocation2 + $0xc8] ss:$16 sps:$4 sm:$0xff]   ;;  %1246 = vmatprep.subr.bf16.mxu1 %v4173_v44 }
 0x37c   :  { %v738_v51 = vmul.f32 1.442695, %v731_v47  ;;  %v590_v52 = vsub.f32 %v571_v26, %v586_v49 }
 0x37d   :  { %v724_v53 = vpop.xlane.xlu0 %723 }
 0x37e   :  { %4382 = vpow2.f32 %v738_v51  ;;  %v730_v54 = vsub.f32 %v708_v28, %v724_v53  ;;  %v597_v55 = vmul.f32 1.442695, %v590_v52  ;;  %1247 = vmatpush1.bf16.msra.mxu1 %v4171_v46 }
 0x37f   :  { %4384 = vpow2.f32 %v593_v50 }
 0x380   :  { %v736_v56 = vmul.f32 1.442695, %v730_v54 }
 0x381   :  { %v577_v57 = vpop.xlane.xlu0 %576 }
 0x382   :  { %4386 = vpow2.f32 %v736_v56  ;;  %v587_v58 = vsub.f32 %v556_v31, %v577_v57 }
 0x383   :  { %4388 = vpow2.f32 %v597_v55  ;;  %v4566_v55 = vld [vmem:[%s5630_s21 + $0x8] sm:$0xff] }
 0x384   :  { %v591_v60 = vmul.f32 1.442695, %v587_v58 }
 0x385   :  { %v4379_v61 = vpop.eup %4378  ;;  %v583_v62 = vpop.xlane.xlu0 %582 }
 0x386   :  { %4390 = vpow2.f32 %v591_v60  ;;  %v589_v63 = vsub.f32 %v566_v34, %v583_v62  ;;  %v743_v3 = vsel %vm574_vm0, %v4379_v61, 0.0  ;;  %v4567_v60 = vld [vmem:[%s5630_s21] sm:$0xff] }
 0x387   :  { %v4381_v0 = vpop.eup %4380  ;;  %744 = vadd.xlane.f32.xlu1 %v743_v3 }
 0x388   :  { %v595_v4 = vmul.f32 1.442695, %v589_v63  ;;  %v740_v6 = vsel %vm574_vm0, %v4381_v0, 0.0 }
 0x389   :  { %741 = vadd.xlane.f32.xlu0 %v740_v6 }
 0x38a   :  { %4392 = vpow2.f32 %v595_v4 }
 0x38b   :  { %v4383_v2 = vpop.eup %4382 }
 0x38c   :  { %v749_v7 = vsel %vm574_vm0, %v4383_v2, 0.0  ;;  %v4385_v9 = vpop.eup %4384 }
 0x38d   :  { %750 = vadd.xlane.f32.xlu1 %v749_v7  ;;  %v602_v10 = vsel %vm574_vm0, %v4385_v9, 0.0  ;;  %v4569_v7 = vld [vmem:[%s5630_s21 + $0x10] sm:$0xff] }
 0x38f   :  { %v4387_v8 = vpop.eup %4386 }
 0x390   :  { %v746_v1 = vsel %vm574_vm0, %v4387_v8, 0.0  ;;  %v4389_v5 = vpop.eup %4388 }
 0x391   :  { %603 = vadd.xlane.f32.xlu1 %v602_v10  ;;  %747 = vadd.xlane.f32.xlu0 %v746_v1  ;;  %v608_v14 = vsel %vm574_vm0, %v4389_v5, 0.0  ;;  %v4176_v1 = vld [vmem:[#allocation2 + $0xa4] ss:$16 sps:$4 sm:$0xff]  }
 0x393   :  { %v4391_v11 = vpop.eup %4390 }
 0x394   :  { %v599_v15 = vsel %vm574_vm0, %v4391_v11, 0.0 }
 0x395   :  { %609 = vadd.xlane.f32.xlu1 %v608_v14  ;;  %600 = vadd.xlane.f32.xlu0 %v599_v15  ;;  %v4177_v14 = vld [vmem:[#allocation2 + $0xa8] ss:$16 sps:$4 sm:$0xff]   ;;  %v4182_v15 = vld [vmem:[#allocation2 + $0x84] ss:$16 sps:$4 sm:$0xff]  }
 0x397   :  { %v4393_v13 = vpop.eup %4392 }
 0x398   :  { %v605_v16 = vsel %vm574_vm0, %v4393_v13, 0.0 }
 0x399   :  { %606 = vadd.xlane.f32.xlu0 %v605_v16  ;;  %v4180_v16 = vld [vmem:[#allocation2 + $0x80] ss:$16 sps:$4 sm:$0xff]  }
 0x410   :  { %v745_v17 = vpop.xlane.xlu1 %744 }
 0x411   :  { %4394 = vrcp.f32 %v745_v17  ;;  %v4183_v17 = vld [vmem:[#allocation2 + $0x88] ss:$16 sps:$4 sm:$0xff]  }
 0x412   :  { %v742_v19 = vpop.xlane.xlu0 %741 }
 0x413   :  { %4396 = vrcp.f32 %v742_v19  ;;  %v4188_v19 = vld [vmem:[#allocation2 + $0x64] ss:$16 sps:$4 sm:$0xff]  }
 0x416   :  { %v751_v20 = vpop.xlane.xlu1 %750 }
 0x417   :  { %4398 = vrcp.f32 %v751_v20  ;;  %v4191_v20 = vld [vmem:[#allocation2 + $0x6c] ss:$16 sps:$4 sm:$0xff]  }
 0x41a   :  { %v604_v21 = vpop.xlane.xlu1 %603  ;;  %v748_v22 = vpop.xlane.xlu0 %747 }
 0x41b   :  { %4400 = vrcp.f32 %v748_v22  ;;  %v4189_v22 = vld [vmem:[#allocation2 + $0x68] ss:$16 sps:$4 sm:$0xff]  }
 0x41c   :  { %4402 = vrcp.f32 %v604_v21  ;;  %v4186_v21 = vld [vmem:[#allocation2 + $0x60] ss:$16 sps:$4 sm:$0xff]  }
 0x41e   :  { %v601_v23 = vpop.xlane.xlu0 %600  ;;  %v4395_v24 = vpop.eup %4394 }
 0x41f   :  { %v610_v25 = vpop.xlane.xlu1 %609  ;;  %4404 = vrcp.f32 %v601_v23  ;;  %v757_v28 = vmul.f32 %v4395_v24, %v4379_v61  ;;  %v4194_v23 = vld [vmem:[#allocation2 + $0x44] ss:$16 sps:$4 sm:$0xff]   ;;  %v4197_v24 = vld [vmem:[#allocation2 + $0x4c] ss:$16 sps:$4 sm:$0xff]  }
 0x420   :  { %v4397_v26 = vpop.eup %4396  ;;  %4406 = vrcp.f32 %v610_v25  ;;  %v4192_v25 = vld [vmem:[#allocation2 + $0x40] ss:$16 sps:$4 sm:$0xff]  }
 0x421   :  { %v756_v27 = vmul.f32 %v4397_v26, %v4381_v0  ;;  %v4568_v0 = vld [vmem:[%s5630_s21 + $0x18] sm:$0xff] }
 0x422   :  { %v607_v29 = vpop.xlane.xlu0 %606  ;;  %v4195_v26 = vld [vmem:[#allocation2 + $0x48] ss:$16 sps:$4 sm:$0xff]  }
 0x423   :  { %4408 = vrcp.f32 %v607_v29  ;;  %4006 = vmatprep.mubr.msk.f32.mxu0 %vm574_vm0, %v756_v27  ;;  %v4200_v27 = vld [vmem:[#allocation2 + $0x24] ss:$16 sps:$4 sm:$0xff]   ;;  %v4198_v29 = vld [vmem:[#allocation2 + $0x20] ss:$16 sps:$4 sm:$0xff]  }
 0x424   :  { %4007 = vmatmul.mubr.msk.f32.vlgmr.msra.gmra.mxu0 %vm574_vm0, %v757_v28  ;;  %v4399_v30 = vpop.eup %4398  ;;  %v4203_v28 = vld [vmem:[#allocation2 + $0x2c] ss:$16 sps:$4 sm:$0xff]  }
 0x425   :  { %4013 = vmatpush3.msra.mxu0 %v4954_v59  ;;  %v759_v33 = vmul.f32 %v4399_v30, %v4383_v2  ;;  %v4201_v30 = vld [vmem:[#allocation2 + $0x28] ss:$16 sps:$4 sm:$0xff]  }
 0x426   :  { %4014 = vmatprep.subr.mxu0 %v4952_v48 }
 0x427   :  { %4015 = vmatpush3.msra.mxu0 %v4952_v48 }
 0x428   :  { %4016 = vmatprep.subr.mxu0 %v4920_v18  ;;  %v4401_v31 = vpop.eup %4400 }
 0x429   :  { %4017 = vmatpush3.msra.mxu0 %v4920_v18  ;;  %v758_v32 = vmul.f32 %v4401_v31, %v4387_v8  ;;  %v4403_v34 = vpop.eup %4402  ;;  %v4204_v31 = vld [vmem:[#allocation2] ss:$16 sps:$4 sm:$0xff]  }
 0x42a   :  { %4018 = vmatprep.subr.mxu0 %v4908_v12  ;;  %v616_v37 = vmul.f32 %v4403_v34, %v4385_v9  ;;  %v4209_v34 = vld [vmem:[#allocation2 + $0xc] ss:$16 sps:$4 sm:$0xff]  }
 0x42b   :  { %4019 = vmatpush3.msra.mxu0 %v4908_v12  ;;  %4009 = vmatprep.mubr.msk.f32.mxu0 %vm574_vm0, %v758_v32  ;;  %v4162_v12 = vld [vmem:[#allocation2 + $0xe0] ss:$16 sps:$4 sm:$0xff]   ;;  %v4206_v32 = vld [vmem:[#allocation2 + $0x4] ss:$16 sps:$4 sm:$0xff]  }
 0x42c   :  { %v4405_v59 = vpop.eup %4404  ;;  %4010 = vmatmul.mubr.msk.f32.gmra.mxu0 %vm574_vm0, %v759_v33  ;;  %1191 = vmatprep.subr.bf16.mxu0 %v4164_v40  ;;  %v4207_v33 = vld [vmem:[#allocation2 + $0x8] ss:$16 sps:$4 sm:$0xff]  }
 0x42d   :  { %v615_v35 = vmul.f32 %v4405_v59, %v4391_v11  ;;  %v4407_v48 = vpop.eup %4406  ;;  %v4174_v11 = vld [vmem:[#allocation2 + $0xa0] ss:$16 sps:$4 sm:$0xff]  }
 0x42e   :  { %v618_v39 = vmul.f32 %v4407_v48, %v4389_v5  ;;  %v4179_v5 = vld [vmem:[#allocation2 + $0xac] ss:$16 sps:$4 sm:$0xff]  }
 0x42f   :  { %4020 = vmatprep.mubr.msk.f32.mxu0 %vm574_vm0, %v615_v35  ;;  %1248 = vmatprep.subr.bf16.mxu1 %v4179_v5  ;;  %v4219_v5 = vld [vmem:[%s5618_s7 + $0x18] sm:$0xff]  }
 0x430   :  { %v4409_v38 = vpop.eup %4408  ;;  %4021 = vmatmul.mubr.msk.f32.vlgmr.msra.gmra.mxu0 %vm574_vm0, %v616_v37  ;;  %1249 = vmatpush1.bf16.msra.mxu1 %v4177_v14  ;;  %v4221_v14 = vld [vmem:[%s5618_s7 + $0x10] sm:$0xff]  }
 0x431   :  { %v617_v18 = vmul.f32 %v4409_v38, %v4393_v13  ;;  %1192 = vmatpush1.bf16.msra.mxu0 %v4162_v12  ;;  %v4185_v13 = vld [vmem:[#allocation2 + $0x8c] ss:$16 sps:$4 sm:$0xff]  }
 0x432   :  { %1193 = vmatprep.subr.bf16.mxu0 %v4170_v43  ;;  %1250 = vmatprep.subr.bf16.mxu1 %v4185_v13  ;;  %v4223_v13 = vld [vmem:[%s5618_s7 + $0x8] sm:$0xff]  }
 0x433   :  { %4023 = vmatprep.mubr.msk.f32.mxu0 %vm574_vm0, %v617_v18 }
 0x434   :  { %4024 = vmatmul.mubr.msk.f32.gmra.mxu0 %vm574_vm0, %v618_v39  ;;  %1251 = vmatpush1.bf16.msra.mxu1 %v4183_v17  ;;  %v4225_v17 = vld [vmem:[%s5618_s7] sm:$0xff]  }
 0x435   :  { %1223 = vmatprep.mubr.bf16.mxu0 %v4656_v36  ;;  %1194 = vmatpush1.bf16.msra.mxu0 %v4168_v45 }
 0x436   :  { %1195 = vmatprep.subr.bf16.mxu0 %v4176_v1  ;;  %1252 = vmatprep.subr.bf16.mxu1 %v4191_v20  ;;  %v4218_v1 = vld [vmem:[%s5618_s7 + $0x58] sm:$0xff]  }
 0x438   :  { %1253 = vmatpush1.bf16.msra.mxu1 %v4189_v22 }
 0x439   :  { %1196 = vmatpush1.bf16.msra.mxu0 %v4174_v11  ;;  %1254 = vmatprep.subr.bf16.mxu1 %v4197_v24  ;;  %v4220_v11 = vld [vmem:[%s5618_s7 + $0x50] sm:$0xff]  }
 0x43a   :  { %1197 = vmatprep.subr.bf16.mxu0 %v4182_v15  ;;  %v4222_v15 = vld [vmem:[%s5618_s7 + $0x48] sm:$0xff]  }
 0x43c   :  { %1255 = vmatpush1.bf16.msra.mxu1 %v4195_v26 }
 0x43d   :  { %1198 = vmatpush1.bf16.msra.mxu0 %v4180_v16  ;;  %1256 = vmatprep.subr.bf16.mxu1 %v4203_v28  ;;  %v4224_v16 = vld [vmem:[%s5618_s7 + $0x40] sm:$0xff]  }
 0x43e   :  { %1199 = vmatprep.subr.bf16.mxu0 %v4188_v19 }
 0x440   :  { %1257 = vmatpush1.bf16.msra.mxu1 %v4201_v30 }
 0x441   :  { %1200 = vmatpush1.bf16.msra.mxu0 %v4186_v21  ;;  %1258 = vmatprep.subr.bf16.mxu1 %v4209_v34 }
 0x442   :  { %1201 = vmatprep.subr.bf16.mxu0 %v4194_v23 }
 0x444   :  { %1259 = vmatpush1.bf16.msra.mxu1 %v4207_v33 }
 0x445   :  { %1202 = vmatpush1.bf16.msra.mxu0 %v4192_v25 }
 0x446   :  { %1203 = vmatprep.subr.bf16.mxu0 %v4200_v27 }
 0x449   :  { %1204 = vmatpush1.bf16.msra.mxu0 %v4198_v29 }
 0x44a   :  { %1205 = vmatprep.subr.bf16.mxu0 %v4206_v32 }
 0x44d   :  { %1206 = vmatpush1.bf16.msra.mxu0 %v4204_v31 }
 0x4e4   :  { %v4008_v47 = vpop.f32.mrf.mxu0 }
 0x4e6   :  { %v838_v49 = vpop.f32.mrf.mxu0 }
 0x4ec   :  { %v4011_v50 = vpop.f32.mrf.mxu0 }
 0x4ee   :  { %v848_v51 = vpop.f32.mrf.mxu0 }
 0x4f0   :  { %v4022_v52 = vpop.f32.mrf.mxu0 }
 0x4f1   :  { %v941_v53 = vadd.f32 %v4022_v52, %v4008_v47  ;;  %v3590_v47 = vld [vmem:[%s5620_s9] ss:$0 sm:$0xff] }
 0x4f2   :  { %v935_v54 = vpop.f32.mrf.mxu0 }
 0x4f3   :  { %v5014_v56 = vadd.f32 %v4566_v55, %v941_v53  ;;  %v936_v57 = vadd.f32 %v935_v54, %v838_v49 }
 0x4f4   :  { %v4025_v58 = vpop.f32.mrf.mxu0 }
 0x4f5   :  { %v5019_v61 = vadd.f32 %v4567_v60, %v936_v57  ;;  %v951_v62 = vadd.f32 %v4025_v58, %v4011_v50  ;;  %v960_v63 = vmul.f32 %v5014_v56, %v5014_v56 }
 0x4f6   :  { %v945_v3 = vpop.f32.mrf.mxu0 }
 0x4f7   :  { %v5026_v4 = vadd.f32 %v4568_v0, %v951_v62  ;;  %v946_v6 = vadd.f32 %v945_v3, %v848_v51  ;;  %965 = vadd.xlane.f32.xlu1 %v960_v63  ;;  %v959_v2 = vmul.f32 %v5019_v61, %v5019_v61  ;;  %v4210_v63 = vld [vmem:[%s5618_s7 + $0x78] sm:$0xff]   ;;  %v4212_v0 = vld [vmem:[%s5618_s7 + $0x70] sm:$0xff]  }
 0x4f8   :  { %v4211_v3 = vld [vmem:[%s5618_s7 + $0x38] sm:$0xff]   ;;  %3872 = vmatprep.subr.bf16.mxu0 %v4210_v63 }
 0x4f9   :  { %v5033_v9 = vadd.f32 %v4569_v7, %v946_v6  ;;  %963 = vadd.xlane.f32.xlu0 %v959_v2  ;;  %v962_v8 = vmul.f32 %v5026_v4, %v5026_v4  ;;  %v4213_v6 = vld [vmem:[%s5618_s7 + $0x30] sm:$0xff]   ;;  %v4214_v2 = vld [vmem:[%s5618_s7 + $0x68] sm:$0xff]  }
 0x4fa   :  { %v4215_v7 = vld [vmem:[%s5618_s7 + $0x28] sm:$0xff]  }
 0x4fb   :  { %969 = vadd.xlane.f32.xlu1 %v962_v8  ;;  %v961_v10 = vmul.f32 %v5033_v9, %v5033_v9  ;;  %v4216_v8 = vld [vmem:[%s5618_s7 + $0x60] sm:$0xff]  }
 0x4fd   :  { %967 = vadd.xlane.f32.xlu0 %v961_v10  ;;  %v4217_v10 = vld [vmem:[%s5618_s7 + $0x20] sm:$0xff]  }
 0x580   :  { %v966_v59 = vpop.xlane.xlu1 %965 }
 0x581   :  { %v972_v35 = vmul.f32 0.0078125, %v966_v59 }
 0x582   :  { %v964_v48 = vpop.xlane.xlu0 %963 }
 0x583   :  { %v976_v37 = vadd.f32 1e-06, %v972_v35  ;;  %v971_v38 = vmul.f32 0.0078125, %v964_v48 }
 0x584   :  { %v970_v18 = vpop.xlane.xlu1 %969 }
 0x585   :  { %4410 = vrsqrt.f32 %v976_v37  ;;  %v975_v39 = vadd.f32 1e-06, %v971_v38  ;;  %v974_v12 = vmul.f32 0.0078125, %v970_v18 }
 0x586   :  { %v968_v40 = vpop.xlane.xlu0 %967 }
 0x587   :  { %4412 = vrsqrt.f32 %v975_v39  ;;  %v978_v41 = vadd.f32 1e-06, %v974_v12  ;;  %v973_v42 = vmul.f32 0.0078125, %v968_v40 }
 0x589   :  { %v977_v43 = vadd.f32 1e-06, %v973_v42  ;;  %4414 = vrsqrt.f32 %v978_v41 }
 0x58b   :  { %4416 = vrsqrt.f32 %v977_v43 }
 0x592   :  { %v4411_v44 = vpop.eup %4410 }
 0x593   :  { %v984_v45 = vmul.f32 %v4411_v44, %v5014_v56 }
 0x594   :  { %v4413_v46 = vpop.eup %4412 }
 0x595   :  { %v983_v49 = vmul.f32 %v4413_v46, %v5019_v61  ;;  %v994_v52 = vmul.f32 %v3590_v47, %v984_v45 }
 0x596   :  { %v4415_v50 = vpop.eup %4414 }
 0x597   :  { %v993_v51 = vmul.f32 %v3590_v47, %v983_v49  ;;  %v986_v57 = vmul.f32 %v4415_v50, %v5026_v4 }
 0x598   :  { %v4417_v53 = vpop.eup %4416 }
 0x599   :  { %v997_v54 = vpack.c.bf16 %v994_v52, %v993_v51  ;;  %v985_v55 = vmul.f32 %v4417_v53, %v5033_v9  ;;  %v996_v60 = vmul.f32 %v3590_v47, %v986_v57 }
 0x59b   :  { %1224 = vmatmul.mubr.bf16.vlgmr.msra.gmra.mxu0 %v997_v54  ;;  %1277 = vmatmul.mubr.bf16.vlgmr.msra.gmra.mxu1 %v997_v54  ;;  %v995_v58 = vmul.f32 %v3590_v47, %v985_v55 }
 0x59c   :  { %1233 = vmatprep.mubr.bf16.mxu0 %v4656_v36  ;;  %1286 = vmatprep.mubr.bf16.mxu1 %v4656_v36 }
 0x59d   :  { %v998_v62 = vpack.c.bf16 %v996_v60, %v995_v58  ;;  %3873 = vmatpush3.bf16.msra.mxu0 %v4211_v3 }
 0x59e   :  { %3874 = vmatprep.subr.bf16.mxu0 %v4212_v0 }
 0x5a1   :  { %3875 = vmatpush3.bf16.msra.mxu0 %v4213_v6 }
 0x5a2   :  { %3876 = vmatprep.subr.bf16.mxu0 %v4214_v2 }
 0x5a3   :  { %1234 = vmatmul.mubr.bf16.gmra.mxu0 %v998_v62  ;;  %1287 = vmatmul.mubr.bf16.gmra.mxu1 %v998_v62 }
 0x5a4   :  { %1813 = vmatprep.mubr.bf16.mxu1 %v4656_v36 }
 0x5a5   :  { %3877 = vmatpush3.bf16.msra.mxu0 %v4215_v7 }
 0x5a6   :  { %3878 = vmatprep.subr.bf16.mxu0 %v4216_v8 }
 0x5a9   :  { %3879 = vmatpush3.bf16.msra.mxu0 %v4217_v10 }
 0x5aa   :  { %3880 = vmatprep.subr.bf16.mxu0 %v4218_v1 }
 0x5ad   :  { %3881 = vmatpush3.bf16.msra.mxu0 %v4219_v5 }
 0x5ae   :  { %3882 = vmatprep.subr.bf16.mxu0 %v4220_v11 }
 0x5b1   :  { %3883 = vmatpush3.bf16.msra.mxu0 %v4221_v14 }
 0x5b2   :  { %3884 = vmatprep.subr.bf16.mxu0 %v4222_v15 }
 0x5b5   :  { %3885 = vmatpush3.bf16.msra.mxu0 %v4223_v13 }
 0x5b6   :  { %3886 = vmatprep.subr.bf16.mxu0 %v4224_v16 }
 0x5b9   :  { %3887 = vmatpush3.bf16.msra.mxu0 %v4225_v17 }
 0x65b   :  { %v1225_v19 = vpop.f32.mrf.mxu0  ;;  %v1278_v18 = vpop.f32.mrf.mxu1 }
 0x65c   :  { %v3623_v20 = vmul.f32 -1.442695, %v1225_v19 }
 0x65d   :  { %v1227_v21 = vpop.f32.mrf.mxu0  ;;  %v1280_v42 = vpop.f32.mrf.mxu1 }
 0x65e   :  { %4418 = vpow2.f32 %v3623_v20  ;;  %v3624_v22 = vmul.f32 -1.442695, %v1227_v21 }
 0x65f   :  { %v1229_v23 = vpop.f32.mrf.mxu0  ;;  %v1282_v47 = vpop.f32.mrf.mxu1 }
 0x660   :  { %4420 = vpow2.f32 %v3624_v22  ;;  %v3625_v24 = vmul.f32 -1.442695, %v1229_v23 }
 0x661   :  { %v1231_v25 = vpop.f32.mrf.mxu0  ;;  %v1284_v52 = vpop.f32.mrf.mxu1 }
 0x662   :  { %4422 = vpow2.f32 %v3625_v24  ;;  %v3626_v26 = vmul.f32 -1.442695, %v1231_v25 }
 0x663   :  { %v5097_v27 = vpop.f32.mrf.mxu0  ;;  %v1288_v57 = vpop.f32.mrf.mxu1 }
 0x664   :  { %4424 = vpow2.f32 %v3626_v26  ;;  %v3627_v28 = vmul.f32 -1.442695, %v5097_v27 }
 0x665   :  { %v1237_v29 = vpop.f32.mrf.mxu0  ;;  %v1290_v6 = vpop.f32.mrf.mxu1 }
 0x666   :  { %4426 = vpow2.f32 %v3627_v28  ;;  %v3628_v30 = vmul.f32 -1.442695, %v1237_v29 }
 0x667   :  { %v1239_v31 = vpop.f32.mrf.mxu0  ;;  %v1292_v15 = vpop.f32.mrf.mxu1 }
 0x668   :  { %4428 = vpow2.f32 %v3628_v30  ;;  %v3629_v32 = vmul.f32 -1.442695, %v1239_v31  ;;  %v4229_v30 = vld [vmem:[%s5616_s5 + $0x1e8] ss:$16 sps:$4 sm:$0xff]  }
 0x669   :  { %v1241_v33 = vpop.f32.mrf.mxu0  ;;  %v1294_v22 = vpop.f32.mrf.mxu1 }
 0x66a   :  { %4430 = vpow2.f32 %v3629_v32  ;;  %v3630_v34 = vmul.f32 -1.442695, %v1241_v33 }
 0x66b   :  { %v4419_v59 = vpop.eup %4418 }
 0x66c   :  { %4432 = vpow2.f32 %v3630_v34  ;;  %v1321_v48 = vadd.f32 1.0, %v4419_v59 }
 0x66d   :  { %v4421_v35 = vpop.eup %4420 }
 0x66e   :  { %v1322_v37 = vadd.f32 1.0, %v4421_v35 }
 0x66f   :  { %v4423_v38 = vpop.eup %4422 }
 0x670   :  { %4434 = vrcp.f32 %v1322_v37  ;;  %v1323_v39 = vadd.f32 1.0, %v4423_v38 }
 0x671   :  { %v4425_v12 = vpop.eup %4424  ;;  %4436 = vrcp.f32 %v1321_v48 }
 0x672   :  { %4438 = vrcp.f32 %v1323_v39  ;;  %v1324_v40 = vadd.f32 1.0, %v4425_v12 }
 0x673   :  { %v4427_v41 = vpop.eup %4426 }
 0x674   :  { %4440 = vrcp.f32 %v1324_v40  ;;  %v1325_v44 = vadd.f32 1.0, %v4427_v41 }
 0x675   :  { %v4429_v43 = vpop.eup %4428 }
 0x676   :  { %v1326_v45 = vadd.f32 1.0, %v4429_v43 }
 0x677   :  { %v4431_v46 = vpop.eup %4430 }
 0x678   :  { %4442 = vrcp.f32 %v1326_v45  ;;  %v1327_v49 = vadd.f32 1.0, %v4431_v46 }
 0x679   :  { %v4433_v50 = vpop.eup %4432  ;;  %4444 = vrcp.f32 %v1325_v44 }
 0x67a   :  { %4446 = vrcp.f32 %v1327_v49  ;;  %v1328_v51 = vadd.f32 1.0, %v4433_v50  ;;  %v4235_v49 = vld [vmem:[%s5616_s5 + $0x1c8] ss:$16 sps:$4 sm:$0xff]   ;;  %v4240_v50 = vld [vmem:[%s5616_s5 + $0x1a4] ss:$16 sps:$4 sm:$0xff]  }
 0x67c   :  { %4448 = vrcp.f32 %v1328_v51  ;;  %v4243_v51 = vld [vmem:[%s5616_s5 + $0x1ac] ss:$16 sps:$4 sm:$0xff]  }
 0x67d   :  { %v4435_v53 = vpop.eup %4434 }
 0x67e   :  { %v4437_v54 = vpop.eup %4436  ;;  %v1346_v58 = vmul.f32 %v4435_v53, %v1227_v21  ;;  %v4241_v53 = vld [vmem:[%s5616_s5 + $0x1a8] ss:$16 sps:$4 sm:$0xff]  }
 0x67f   :  { %v4439_v55 = vpop.eup %4438  ;;  %v1345_v63 = vmul.f32 %v4437_v54, %v1225_v19  ;;  %v4246_v54 = vld [vmem:[%s5616_s5 + $0x184] ss:$16 sps:$4 sm:$0xff]  }
 0x680   :  { %v1347_v60 = vmul.f32 %v4439_v55, %v1229_v23  ;;  %v1354_v2 = vmul.f32 %v1346_v58, %v1280_v42  ;;  %v4249_v55 = vld [vmem:[%s5616_s5 + $0x18c] ss:$16 sps:$4 sm:$0xff]   ;;  %v4247_v58 = vld [vmem:[%s5616_s5 + $0x188] ss:$16 sps:$4 sm:$0xff]  }
 0x681   :  { %v4441_v62 = vpop.eup %4440  ;;  %v1353_v10 = vmul.f32 %v1345_v63, %v1278_v18  ;;  %v4250_v63 = vld [vmem:[%s5616_s5 + $0x160] ss:$16 sps:$4 sm:$0xff]  }
 0x682   :  { %v1348_v3 = vmul.f32 %v4441_v62, %v1231_v25  ;;  %v1355_v0 = vmul.f32 %v1347_v60, %v1282_v47  ;;  %v4237_v47 = vld [vmem:[%s5616_s5 + $0x1cc] ss:$16 sps:$4 sm:$0xff]   ;;  %v4252_v60 = vld [vmem:[%s5616_s5 + $0x164] ss:$16 sps:$4 sm:$0xff]  }
 0x683   :  { %v4255_v62 = vld [vmem:[%s5616_s5 + $0x16c] ss:$16 sps:$4 sm:$0xff]  }
 0x684   :  { %v1356_v7 = vmul.f32 %v1348_v3, %v1284_v52  ;;  %v1361_v14 = vpack.c.bf16 %v1355_v0, %v1353_v10  ;;  %v4238_v52 = vld [vmem:[%s5616_s5 + $0x1a0] ss:$16 sps:$4 sm:$0xff]   ;;  %v4253_v3 = vld [vmem:[%s5616_s5 + $0x168] ss:$16 sps:$4 sm:$0xff]   ;;  %v4258_v0 = vld [vmem:[%s5616_s5 + $0x144] ss:$16 sps:$4 sm:$0xff]  }
 0x685   :  { %v4443_v8 = vpop.eup %4442  ;;  %v4267_v10 = vld [vmem:[%s5616_s5 + $0x12c] ss:$16 sps:$4 sm:$0xff]  }
 0x686   :  { %v4445_v1 = vpop.eup %4444  ;;  %v1362_v5 = vpack.c.bf16 %v1356_v7, %v1354_v2  ;;  %v1350_v13 = vmul.f32 %v4443_v8, %v1237_v29  ;;  %v4226_v29 = vld [vmem:[%s5616_s5 + $0x1e0] ss:$16 sps:$4 sm:$0xff]   ;;  %v4259_v7 = vld [vmem:[%s5616_s5 + $0x148] ss:$16 sps:$4 sm:$0xff]   ;;  %v4264_v8 = vld [vmem:[%s5616_s5 + $0x124] ss:$16 sps:$4 sm:$0xff]  }
 0x687   :  { %v4447_v11 = vpop.eup %4446  ;;  %v1349_v20 = vmul.f32 %v4445_v1, %v5097_v27  ;;  %v4228_v27 = vld [vmem:[%s5616_s5 + $0x1e4] ss:$16 sps:$4 sm:$0xff]   ;;  %v4256_v2 = vld [vmem:[%s5616_s5 + $0x140] ss:$16 sps:$4 sm:$0xff]  }
 0x688   :  { %v1351_v16 = vmul.f32 %v4447_v11, %v1239_v31  ;;  %1525 = vmatprep.mubr.bf16.mxu0 %v1362_v5  ;;  %v1358_v23 = vmul.f32 %v1350_v13, %v1290_v6  ;;  %v4231_v31 = vld [vmem:[%s5616_s5 + $0x1ec] ss:$16 sps:$4 sm:$0xff]   ;;  %1781 = vmatprep.subr.bf16.mxu1 %v4228_v27  ;;  %v4262_v1 = vld [vmem:[%s5616_s5 + $0x120] ss:$16 sps:$4 sm:$0xff]   ;;  %v4265_v5 = vld [vmem:[%s5616_s5 + $0x128] ss:$16 sps:$4 sm:$0xff]  }
 0x689   :  { %v4449_v17 = vpop.eup %4448  ;;  %1526 = vmatmul.mubr.bf16.vlgmr.msra.gmra.mxu0 %v1361_v14  ;;  %v1357_v25 = vmul.f32 %v1349_v20, %v1288_v57  ;;  %1834 = vmatprep.subr.bf16.mxu0 %v4231_v31  ;;  %v4244_v57 = vld [vmem:[%s5616_s5 + $0x180] ss:$16 sps:$4 sm:$0xff]   ;;  %v4261_v6 = vld [vmem:[%s5616_s5 + $0x14c] ss:$16 sps:$4 sm:$0xff]   ;;  %v4270_v14 = vld [vmem:[%s5616_s5 + $0x104] ss:$16 sps:$4 sm:$0xff]  }
 0x68a   :  { %v1352_v19 = vmul.f32 %v4449_v17, %v1241_v33  ;;  %v1359_v21 = vmul.f32 %v1351_v16, %v1292_v15  ;;  %1782 = vmatpush1.bf16.msra.mxu1 %v4226_v29  ;;  %1835 = vmatpush1.bf16.msra.mxu0 %v4229_v30  ;;  %v4268_v11 = vld [vmem:[%s5616_s5 + $0x100] ss:$16 sps:$4 sm:$0xff]   ;;  %v4271_v15 = vld [vmem:[%s5616_s5 + $0x108] ss:$16 sps:$4 sm:$0xff]   ;;  %v4273_v13 = vld [vmem:[%s5616_s5 + $0x10c] ss:$16 sps:$4 sm:$0xff]  }
 0x68b   :  { %1836 = vmatprep.subr.bf16.mxu0 %v4237_v47 }
 0x68c   :  { %v1360_v24 = vmul.f32 %v1352_v19, %v1294_v22  ;;  %v1363_v28 = vpack.c.bf16 %v1359_v21, %v1357_v25 }
 0x68e   :  { %v1364_v26 = vpack.c.bf16 %v1360_v24, %v1358_v23  ;;  %1837 = vmatpush1.bf16.msra.mxu0 %v4235_v49 }
 0x68f   :  { %1838 = vmatprep.subr.bf16.mxu0 %v4243_v51 }
 0x690   :  { %1533 = vmatprep.mubr.bf16.mxu0 %v1364_v26 }
 0x691   :  { %1534 = vmatmul.mubr.bf16.gmra.mxu0 %v1363_v28 }
 0x692   :  { %1866 = vmatprep.mubr.bf16.mxu0 %v4656_v36  ;;  %1839 = vmatpush1.bf16.msra.mxu0 %v4241_v53 }
 0x693   :  { %1840 = vmatprep.subr.bf16.mxu0 %v4249_v55 }
 0x696   :  { %1841 = vmatpush1.bf16.msra.mxu0 %v4247_v58 }
 0x697   :  { %1842 = vmatprep.subr.bf16.mxu0 %v4255_v62 }
 0x69a   :  { %1843 = vmatpush1.bf16.msra.mxu0 %v4253_v3 }
 0x69b   :  { %1844 = vmatprep.subr.bf16.mxu0 %v4261_v6 }
 0x69e   :  { %1845 = vmatpush1.bf16.msra.mxu0 %v4259_v7 }
 0x69f   :  { %1846 = vmatprep.subr.bf16.mxu0 %v4267_v10 }
 0x6a2   :  { %1847 = vmatpush1.bf16.msra.mxu0 %v4265_v5  ;;  %v4574_v5 = vld [vmem:[%s5614_s3 + $0x8] sm:$0xff] }
 0x6a3   :  { %1848 = vmatprep.subr.bf16.mxu0 %v4273_v13 }
 0x6a6   :  { %1849 = vmatpush1.bf16.msra.mxu0 %v4271_v15 }
 0x749   :  { %v3888_v32 = vpop.f32.mrf.mxu0 }
 0x74b   :  { %v3889_v33 = vpop.f32.mrf.mxu0 }
 0x74c   :  { %v3890_v34 = vadd.f32 %v3889_v33, %v3888_v32  ;;  %v3648_v32 = vld [vmem:[%s5619_s8 + $0x1] ss:$0 sm:$0xff] }
 0x74d   :  { %v3891_v59 = vpop.f32.mrf.mxu0 }
 0x74e   :  { %v5115_v35 = vadd.f32 %v3890_v34, %v5019_v61 }
 0x74f   :  { %v3892_v48 = vpop.f32.mrf.mxu0 }
 0x750   :  { %v3893_v37 = vadd.f32 %v3892_v48, %v3891_v59  ;;  %v1548_v38 = vmul.f32 %v5115_v35, %v5115_v35 }
 0x751   :  { %v3894_v18 = vpop.f32.mrf.mxu0 }
 0x752   :  { %v5120_v39 = vadd.f32 %v3893_v37, %v5014_v56  ;;  %1552 = vadd.xlane.f32.xlu0 %v1548_v38  ;;  %v4234_v56 = vld [vmem:[%s5616_s5 + $0x1c4] ss:$16 sps:$4 sm:$0xff]  }
 0x753   :  { %v3895_v12 = vpop.f32.mrf.mxu0  ;;  %1783 = vmatprep.subr.bf16.mxu1 %v4234_v56 }
 0x754   :  { %v3896_v40 = vadd.f32 %v3895_v12, %v3894_v18  ;;  %v1549_v41 = vmul.f32 %v5120_v39, %v5120_v39 }
 0x755   :  { %v3897_v42 = vpop.f32.mrf.mxu0 }
 0x756   :  { %v5125_v43 = vadd.f32 %v3896_v40, %v5033_v9  ;;  %1554 = vadd.xlane.f32.xlu1 %v1549_v41  ;;  %v4232_v9 = vld [vmem:[%s5616_s5 + $0x1c0] ss:$16 sps:$4 sm:$0xff]  }
 0x757   :  { %v3898_v61 = vpop.f32.mrf.mxu0  ;;  %1784 = vmatpush1.bf16.msra.mxu1 %v4232_v9 }
 0x758   :  { %v3899_v44 = vadd.f32 %v3898_v61, %v3897_v42  ;;  %v1550_v45 = vmul.f32 %v5125_v43, %v5125_v43  ;;  %1785 = vmatprep.subr.bf16.mxu1 %v4240_v50 }
 0x75a   :  { %v5130_v46 = vadd.f32 %v3899_v44, %v5026_v4  ;;  %1556 = vadd.xlane.f32.xlu0 %v1550_v45 }
 0x75b   :  { %1786 = vmatpush1.bf16.msra.mxu1 %v4238_v52 }
 0x75c   :  { %v1551_v4 = vmul.f32 %v5130_v46, %v5130_v46  ;;  %1787 = vmatprep.subr.bf16.mxu1 %v4246_v54 }
 0x75e   :  { %1558 = vadd.xlane.f32.xlu1 %v1551_v4 }
 0x75f   :  { %1788 = vmatpush1.bf16.msra.mxu1 %v4244_v57 }
 0x760   :  { %1789 = vmatprep.subr.bf16.mxu1 %v4252_v60  ;;  %v4570_v60 = vld [vmem:[%s5614_s3 + $0x10] sm:$0xff] }
 0x763   :  { %1790 = vmatpush1.bf16.msra.mxu1 %v4250_v63 }
 0x764   :  { %1791 = vmatprep.subr.bf16.mxu1 %v4258_v0  ;;  %v4571_v0 = vld [vmem:[%s5613_s2 + $0x10] sm:$0xff] }
 0x767   :  { %1792 = vmatpush1.bf16.msra.mxu1 %v4256_v2  ;;  %v4572_v2 = vld [vmem:[%s5613_s2 + $0x18] sm:$0xff] }
 0x768   :  { %1793 = vmatprep.subr.bf16.mxu1 %v4264_v8  ;;  %v4573_v8 = vld [vmem:[%s5614_s3 + $0x18] sm:$0xff] }
 0x76b   :  { %1794 = vmatpush1.bf16.msra.mxu1 %v4262_v1 }
 0x76c   :  { %1795 = vmatprep.subr.bf16.mxu1 %v4270_v14 }
 0x76f   :  { %1796 = vmatpush1.bf16.msra.mxu1 %v4268_v11 }
 0x7db   :  { %v1553_v16 = vpop.xlane.xlu0 %1552 }
 0x7dc   :  { %v1560_v17 = vmul.f32 0.0078125, %v1553_v16  ;;  %v4575_v16 = vld [vmem:[%s5613_s2] sm:$0xff] }
 0x7de   :  { %v1564_v20 = vadd.f32 1e-06, %v1560_v17 }
 0x7df   :  { %v1555_v19 = vpop.xlane.xlu1 %1554 }
 0x7e0   :  { %4450 = vrsqrt.f32 %v1564_v20  ;;  %v1561_v21 = vmul.f32 0.0078125, %v1555_v19  ;;  %v4576_v20 = vld [vmem:[%s5613_s2 + $0x8] sm:$0xff] }
 0x7e2   :  { %v1565_v22 = vadd.f32 1e-06, %v1561_v21  ;;  %v4577_v21 = vld [vmem:[%s5614_s3] sm:$0xff] }
 0x7e3   :  { %v1557_v23 = vpop.xlane.xlu0 %1556 }
 0x7e4   :  { %4452 = vrsqrt.f32 %v1565_v22  ;;  %v1562_v24 = vmul.f32 0.0078125, %v1557_v23  ;;  %v4578_v23 = vld [vmem:[%s5615_s4] ss:$0 sm:$0xff] }
 0x7e6   :  { %v1566_v25 = vadd.f32 1e-06, %v1562_v24 }
 0x7e7   :  { %v1559_v26 = vpop.xlane.xlu1 %1558 }
 0x7e8   :  { %4454 = vrsqrt.f32 %v1566_v25  ;;  %v1563_v28 = vmul.f32 0.0078125, %v1559_v26 }
 0x7ea   :  { %v1567_v29 = vadd.f32 1e-06, %v1563_v28 }
 0x7ec   :  { %4456 = vrsqrt.f32 %v1567_v29 }
 0x7ed   :  { %v4451_v27 = vpop.eup %4450 }
 0x7ee   :  { %v1572_v30 = vmul.f32 %v4451_v27, %v5115_v35 }
 0x7f0   :  { %v1582_v34 = vmul.f32 %v3648_v32, %v1572_v30 }
 0x7f1   :  { %v4453_v31 = vpop.eup %4452 }
 0x7f2   :  { %v1573_v33 = vmul.f32 %v4453_v31, %v5120_v39 }
 0x7f4   :  { %v1583_v59 = vmul.f32 %v3648_v32, %v1573_v33 }
 0x7f5   :  { %v4455_v48 = vpop.eup %4454 }
 0x7f6   :  { %v1586_v37 = vpack.c.bf16 %v1583_v59, %v1582_v34  ;;  %v1574_v38 = vmul.f32 %v4455_v48, %v5125_v43 }
 0x7f8   :  { %1814 = vmatmul.mubr.bf16.vlgmr.msra.gmra.mxu1 %v1586_v37  ;;  %1867 = vmatmul.mubr.bf16.vlgmr.msra.gmra.mxu0 %v1586_v37  ;;  %v1584_v40 = vmul.f32 %v3648_v32, %v1574_v38 }
 0x7f9   :  { %v4457_v18 = vpop.eup %4456  ;;  %1823 = vmatprep.mubr.bf16.mxu1 %v4656_v36  ;;  %1876 = vmatprep.mubr.bf16.mxu0 %v4656_v36 }
 0x7fa   :  { %v1575_v12 = vmul.f32 %v4457_v18, %v5130_v46  ;;  %v4579_v18 = vld [vmem:[%s5615_s4 + $0x1] ss:$0 sm:$0xff] }
 0x7fc   :  { %v1585_v41 = vmul.f32 %v3648_v32, %v1575_v12 }
 0x7fe   :  { %v1587_v42 = vpack.c.bf16 %v1585_v41, %v1584_v40 }
 0x800   :  { %1824 = vmatmul.mubr.bf16.gmra.mxu1 %v1587_v42  ;;  %1877 = vmatmul.mubr.bf16.gmra.mxu0 %v1587_v42 }
 0x8b8   :  { %v1815_v61 = vpop.f32.mrf.mxu1  ;;  %v1868_v44 = vpop.f32.mrf.mxu0 }
 0x8b9   :  { %v1887_v17 = vmul.f32 %v4575_v16, %v1815_v61 }
 0x8ba   :  { %v1817_v45 = vpop.f32.mrf.mxu1  ;;  %v5227_v56 = vpop.f32.mrf.mxu0 }
 0x8bb   :  { %v1907_v27 = vmul.f32 %v4575_v16, %v1817_v45 }
 0x8bc   :  { %v5229_v47 = vpop.f32.mrf.mxu1  ;;  %v1872_v9 = vpop.f32.mrf.mxu0 }
 0x8bd   :  { %v1888_v38 = vmul.f32 %v4576_v20, %v5229_v47 }
 0x8be   :  { %v1821_v49 = vpop.f32.mrf.mxu1  ;;  %v5231_v4 = vpop.f32.mrf.mxu0 }
 0x8bf   :  { %v1908_v19 = vmul.f32 %v4576_v20, %v1821_v49 }
 0x8c0   :  { %v5233_v50 = vpop.f32.mrf.mxu1  ;;  %v1878_v51 = vpop.f32.mrf.mxu0 }
 0x8c1   :  { %v1889_v40 = vmul.f32 %v4571_v0, %v5233_v50 }
 0x8c2   :  { %v1827_v52 = vpop.f32.mrf.mxu1  ;;  %v5235_v53 = vpop.f32.mrf.mxu0 }
 0x8c3   :  { %1915 = vrot.lane.b32.xlu1 %v1827_v52, %s4657_s26  ;;  %v1909_v6 = vmul.f32 %v4571_v0, %v1827_v52  ;;  %v4582_v0 = vld [vmem:[%s5612_s1 + $0x10] sm:$0xff] }
 0x8c4   :  { %v5238_v54 = vpop.f32.mrf.mxu1  ;;  %v1882_v55 = vpop.f32.mrf.mxu0 }
 0x8c5   :  { %4068 = vmatprep.subr.mxu0 %v1882_v55 }
 0x8c6   :  { %v1831_v57 = vpop.f32.mrf.mxu1  ;;  %4069 = vmatpush3.msra.mxu0 %v1882_v55 }
 0x8c7   :  { %4070 = vmatprep.subr.mxu0 %v1878_v51  ;;  %1913 = vrot.lane.b32.xlu1 %v1821_v49, %s4657_s26  ;;  %v1910_v7 = vmul.f32 %v4572_v2, %v1831_v57 }
 0x8c8   :  { %1917 = vrot.lane.b32.xlu0 %v1831_v57, %s4657_s26  ;;  %4071 = vmatpush3.msra.mxu0 %v1878_v51 }
 0x8c9   :  { %4072 = vmatprep.subr.mxu0 %v1872_v9 }
 0x8ca   :  { %4073 = vmatpush3.msra.mxu0 %v1872_v9 }
 0x8cb   :  { %4074 = vmatprep.subr.mxu0 %v1868_v44  ;;  %1911 = vrot.lane.b32.xlu1 %v1817_v45, %s4657_s26 }
 0x8cc   :  { %1891 = vrot.lane.b32.xlu0 %v1815_v61, %s4657_s26  ;;  %4075 = vmatpush3.msra.mxu0 %v1868_v44  ;;  %v1890_v44 = vmul.f32 %v4572_v2, %v5238_v54 }
 0x8cf   :  { %1893 = vrot.lane.b32.xlu1 %v5229_v47, %s4657_s26 }
 0x8d0   :  { %1895 = vrot.lane.b32.xlu0 %v5233_v50, %s4657_s26  ;;  %v1884_v50 = vpop.f32.mrf.mxu0 }
 0x8d3   :  { %1897 = vrot.lane.b32.xlu1 %v5238_v54, %s4657_s26  ;;  %v4580_v54 = vld [vmem:[%s5612_s1] sm:$0xff] }
 0x935   :  { %v1916_v58 = vpop.permute.xlu1 %1915 }
 0x936   :  { %v1921_v62 = vmul.f32 %v4570_v60, %v1916_v58 }
 0x938   :  { %v1925_v1 = vadd.f32 %v1921_v62, %v1909_v6 }
 0x939   :  { %v1914_v63 = vpop.permute.xlu1 %1913 }
 0x93a   :  { %v1918_v3 = vpop.permute.xlu0 %1917  ;;  %v1920_v11 = vmul.f32 %v4574_v5, %v1914_v63  ;;  %v1929_v29 = vmul.f32 %v4578_v23, %v1925_v1  ;;  %v2062_v45 = vmul.f32 %v4579_v18, %v1925_v1 }
 0x93b   :  { %v1922_v10 = vmul.f32 %v4573_v8, %v1918_v3 }
 0x93c   :  { %v1924_v25 = vadd.f32 %v1920_v11, %v1908_v19 }
 0x93d   :  { %v1926_v14 = vadd.f32 %v1922_v10, %v1910_v7  ;;  %v1912_v15 = vpop.permute.xlu1 %1911 }
 0x93e   :  { %v1892_v13 = vpop.permute.xlu0 %1891  ;;  %v1919_v26 = vmul.f32 %v4577_v21, %v1912_v15  ;;  %v1928_v31 = vmul.f32 %v4578_v23, %v1924_v25  ;;  %v2061_v47 = vmul.f32 %v4579_v18, %v1924_v25 }
 0x93f   :  { %v1899_v22 = vmul.f32 %v4577_v21, %v1892_v13  ;;  %v1930_v24 = vmul.f32 %v4578_v23, %v1926_v14  ;;  %v2063_v12 = vmul.f32 %v4579_v18, %v1926_v14 }
 0x940   :  { %v1923_v30 = vadd.f32 %v1919_v26, %v1907_v27 }
 0x941   :  { %v1903_v28 = vadd.f32 %v1899_v22, %v1887_v17  ;;  %4026 = vmatprep.subr.mxu1 %v1930_v24  ;;  %v1894_v32 = vpop.permute.xlu1 %1893 }
 0x942   :  { %4027 = vmatpush3.xpose.msra.mxu1 %v1930_v24  ;;  %v1896_v33 = vpop.permute.xlu0 %1895  ;;  %v1927_v34 = vmul.f32 %v4578_v23, %v1923_v30  ;;  %v1900_v59 = vmul.f32 %v4574_v5, %v1894_v32  ;;  %v2060_v49 = vmul.f32 %v4579_v18, %v1923_v30  ;;  %v4583_v5 = vld [vmem:[%s5612_s1 + $0x18] sm:$0xff] }
 0x943   :  { %4028 = vmatprep.subr.mxu1 %v1929_v29  ;;  %4034 = vmatprep.mubr.f32.mxu1 %v1903_v28  ;;  %v1901_v48 = vmul.f32 %v4570_v60, %v1896_v33 }
 0x944   :  { %v1904_v41 = vadd.f32 %v1900_v59, %v1888_v38 }
 0x945   :  { %v1898_v37 = vpop.permute.xlu1 %1897  ;;  %v1905_v61 = vadd.f32 %v1901_v48, %v1889_v40 }
 0x946   :  { %4029 = vmatpush3.xpose.msra.mxu1 %v1929_v29  ;;  %v1902_v42 = vmul.f32 %v4573_v8, %v1898_v37 }
 0x947   :  { %4030 = vmatprep.subr.mxu1 %v1928_v31 }
 0x948   :  { %v1906_v9 = vadd.f32 %v1902_v42, %v1890_v44 }
 0x94a   :  { %4031 = vmatpush3.xpose.msra.mxu1 %v1928_v31 }
 0x94b   :  { %4032 = vmatprep.subr.mxu1 %v1927_v34 }
 0x94e   :  { %4033 = vmatpush3.xpose.msra.mxu1 %v1927_v34 }
 0x94f   :  { %4040 = vmatprep.subr.mxu1 %v2063_v12 }
 0x951   :  { %4035 = vmatmul.mubr.f32.vlgmr.msra.gmra.mxu1 %v1904_v41 }
 0x952   :  { %4037 = vmatprep.mubr.f32.mxu1 %v1905_v61  ;;  %4041 = vmatpush3.xpose.msra.mxu1 %v2063_v12 }
 0x953   :  { %4042 = vmatprep.subr.mxu1 %v2062_v45 }
 0x955   :  { %4038 = vmatmul.mubr.f32.gmra.mxu1 %v1906_v9 }
 0x956   :  { %4043 = vmatpush3.xpose.msra.mxu1 %v2062_v45  ;;  %4048 = vmatprep.mubr.f32.mxu1 %v1903_v28 }
 0x957   :  { %4044 = vmatprep.subr.mxu1 %v2061_v47 }
 0x95a   :  { %4045 = vmatpush3.xpose.msra.mxu1 %v2061_v47 }
 0x95b   :  { %4046 = vmatprep.subr.mxu1 %v2060_v49 }
 0x95e   :  { %4047 = vmatpush3.xpose.msra.mxu1 %v2060_v49 }
 0x95f   :  { %4054 = vmatprep.subr.mxu1 %v1884_v50 }
 0x961   :  { %4049 = vmatmul.mubr.f32.vlgmr.msra.gmra.mxu1 %v1904_v41 }
 0x962   :  { %4051 = vmatprep.mubr.f32.mxu1 %v1905_v61  ;;  %4055 = vmatpush3.msra.mxu1 %v1884_v50 }
 0x963   :  { %4056 = vmatprep.subr.mxu1 %v5235_v53 }
 0x964   :  { %4057 = vmatpush3.msra.mxu1 %v5235_v53  ;;  %v4581_v53 = vld [vmem:[%s5612_s1 + $0x8] sm:$0xff] }
 0x965   :  { %4052 = vmatmul.mubr.f32.gmra.mxu1 %v1906_v9  ;;  %4058 = vmatprep.subr.mxu1 %v5231_v4 }
 0x966   :  { %4059 = vmatpush3.msra.mxu1 %v5231_v4 }
 0x967   :  { %4060 = vmatprep.subr.mxu1 %v5227_v56 }
 0x968   :  { %4061 = vmatpush3.msra.mxu1 %v5227_v56 }
 0xa11   :  { %v4036_v51 = vpop.f32.mrf.mxu1 }
 0xa12   :  { %v2003_v57 = vadd.f32 %v4581_v53, %v4036_v51 }
 0xa13   :  { %v1997_v52 = vpop.f32.mrf.mxu1 }
 0xa14   :  { %v1998_v55 = vadd.f32 %v4580_v54, %v1997_v52  ;;  %v2019_v4 = vsel %vm574_vm0, %v2003_v57, -inf }
 0xa15   :  { %v4039_v60 = vpop.f32.mrf.mxu1 }
 0xa16   :  { %v2016_v58 = vsel %vm574_vm0, %v1998_v55, -inf  ;;  %v2013_v11 = vadd.f32 %v4583_v5, %v4039_v60 }
 0xa17   :  { %2017 = vmax.xlane.f32.xlu0 %v2016_v58  ;;  %v2007_v56 = vpop.f32.mrf.mxu1 }
 0xa18   :  { %v2008_v6 = vadd.f32 %v4582_v0, %v2007_v56  ;;  %v2025_v17 = vsel %vm574_vm0, %v2013_v11, -inf }
 0xa1a   :  { %v2022_v15 = vsel %vm574_vm0, %v2008_v6, -inf }
 0xa1b   :  { %2020 = vmax.xlane.f32.xlu0 %v2019_v4 }
 0xa21   :  { %v4050_v62 = vpop.f32.mrf.mxu1 }
 0xa22   :  { %v2136_v63 = vadd.f32 %v4581_v53, %v4050_v62 }
 0xa23   :  { %v2130_v3 = vpop.f32.mrf.mxu1 }
 0xa24   :  { %v2131_v2 = vadd.f32 %v4580_v54, %v2130_v3  ;;  %v2152_v7 = vsel %vm574_vm0, %v2136_v63, -inf }
 0xa25   :  { %v4053_v8 = vpop.f32.mrf.mxu1  ;;  %2153 = vmax.xlane.f32.xlu0 %v2152_v7 }
 0xa26   :  { %v2149_v10 = vsel %vm574_vm0, %v2131_v2, -inf  ;;  %v2146_v13 = vadd.f32 %v4583_v5, %v4053_v8 }
 0xa27   :  { %v2140_v1 = vpop.f32.mrf.mxu1  ;;  %2150 = vmax.xlane.f32.xlu1 %v2149_v10 }
 0xa28   :  { %v2141_v14 = vadd.f32 %v4582_v0, %v2140_v1  ;;  %v2158_v20 = vsel %vm574_vm0, %v2146_v13, -inf }
 0xa29   :  { %2023 = vmax.xlane.f32.xlu0 %v2022_v15 }
 0xa2a   :  { %v2155_v16 = vsel %vm574_vm0, %v2141_v14, -inf }
 0xa2b   :  { %2156 = vmax.xlane.f32.xlu1 %v2155_v16 }
 0xa2d   :  { %2026 = vmax.xlane.f32.xlu0 %v2025_v17 }
 0xa2f   :  { %2159 = vmax.xlane.f32.xlu1 %v2158_v20 }
 0xaa0   :  { %v2018_v19 = vpop.xlane.xlu0 %2017 }
 0xaa1   :  { %v2028_v21 = vsub.f32 %v1998_v55, %v2018_v19 }
 0xaa3   :  { %v2032_v22 = vmul.f32 1.442695, %v2028_v21 }
 0xaa4   :  { %v2021_v23 = vpop.xlane.xlu0 %2020 }
 0xaa5   :  { %4458 = vpow2.f32 %v2032_v22  ;;  %v2029_v24 = vsub.f32 %v2003_v57, %v2021_v23 }
 0xaa7   :  { %v2034_v25 = vmul.f32 1.442695, %v2029_v24 }
 0xaa9   :  { %4460 = vpow2.f32 %v2034_v25  ;;  %v4274_v25 = vld [vmem:[#allocation2 + $0x1e0] ss:$16 sps:$4 sm:$0xff]  }
 0xaae   :  { %v2154_v26 = vpop.xlane.xlu0 %2153 }
 0xaaf   :  { %v2162_v28 = vsub.f32 %v2136_v63, %v2154_v26  ;;  %v4276_v26 = vld [vmem:[#allocation2 + $0x1e4] ss:$16 sps:$4 sm:$0xff]  }
 0xab0   :  { %v2151_v29 = vpop.xlane.xlu1 %2150  ;;  %2626 = vmatprep.subr.bf16.mxu1 %v4276_v26 }
 0xab1   :  { %v2161_v27 = vsub.f32 %v2131_v2, %v2151_v29  ;;  %v2167_v31 = vmul.f32 1.442695, %v2162_v28  ;;  %v4277_v28 = vld [vmem:[#allocation2 + $0x1e8] ss:$16 sps:$4 sm:$0xff]   ;;  %v4279_v29 = vld [vmem:[#allocation2 + $0x1ec] ss:$16 sps:$4 sm:$0xff]  }
 0xab2   :  { %v4459_v30 = vpop.eup %4458  ;;  %v2024_v32 = vpop.xlane.xlu0 %2023  ;;  %2679 = vmatprep.subr.bf16.mxu0 %v4279_v29 }
 0xab3   :  { %v2165_v33 = vmul.f32 1.442695, %v2161_v27  ;;  %v2030_v34 = vsub.f32 %v2008_v6, %v2024_v32  ;;  %v2040_v59 = vsel %vm574_vm0, %v4459_v30, 0.0  ;;  %v4282_v27 = vld [vmem:[#allocation2 + $0x1c4] ss:$16 sps:$4 sm:$0xff]  }
 0xab4   :  { %v2157_v48 = vpop.xlane.xlu1 %2156  ;;  %2041 = vadd.xlane.f32.xlu0 %v2040_v59  ;;  %v4283_v32 = vld [vmem:[#allocation2 + $0x1c8] ss:$16 sps:$4 sm:$0xff]  }
 0xab5   :  { %4462 = vpow2.f32 %v2165_v33  ;;  %v2036_v37 = vmul.f32 1.442695, %v2030_v34  ;;  %v2163_v38 = vsub.f32 %v2141_v14, %v2157_v48 }
 0xab6   :  { %v4461_v18 = vpop.eup %4460  ;;  %4464 = vpow2.f32 %v2167_v31  ;;  %v2027_v12 = vpop.xlane.xlu0 %2026  ;;  %v4280_v31 = vld [vmem:[#allocation2 + $0x1c0] ss:$16 sps:$4 sm:$0xff]  }
 0xab7   :  { %4466 = vpow2.f32 %v2036_v37  ;;  %v2169_v40 = vmul.f32 1.442695, %v2163_v38  ;;  %v2031_v41 = vsub.f32 %v2013_v11, %v2027_v12  ;;  %v2043_v42 = vsel %vm574_vm0, %v4461_v18, 0.0 }
 0xab8   :  { %v2160_v61 = vpop.xlane.xlu1 %2159  ;;  %2044 = vadd.xlane.f32.xlu0 %v2043_v42 }
 0xab9   :  { %v2038_v44 = vmul.f32 1.442695, %v2031_v41  ;;  %v2164_v45 = vsub.f32 %v2146_v13, %v2160_v61  ;;  %4468 = vpow2.f32 %v2169_v40 }
 0xabb   :  { %4470 = vpow2.f32 %v2038_v44  ;;  %v2171_v9 = vmul.f32 1.442695, %v2164_v45 }
 0xabd   :  { %4472 = vpow2.f32 %v2171_v9 }
 0xac2   :  { %v4463_v47 = vpop.eup %4462 }
 0xac3   :  { %v4465_v49 = vpop.eup %4464  ;;  %v2173_v50 = vsel %vm574_vm0, %v4463_v47, 0.0 }
 0xac4   :  { %v4467_v51 = vpop.eup %4466  ;;  %2174 = vadd.xlane.f32.xlu1 %v2173_v50  ;;  %v2176_v55 = vsel %vm574_vm0, %v4465_v49, 0.0 }
 0xac5   :  { %v2046_v52 = vsel %vm574_vm0, %v4467_v51, 0.0 }
 0xac6   :  { %2047 = vadd.xlane.f32.xlu0 %v2046_v52  ;;  %v4469_v54 = vpop.eup %4468  ;;  %v4291_v52 = vld [vmem:[#allocation2 + $0x1ac] ss:$16 sps:$4 sm:$0xff]  }
 0xac7   :  { %v2179_v58 = vsel %vm574_vm0, %v4469_v54, 0.0 }
 0xac8   :  { %v4471_v53 = vpop.eup %4470  ;;  %2177 = vadd.xlane.f32.xlu1 %v2176_v55  ;;  %v4289_v55 = vld [vmem:[#allocation2 + $0x1a8] ss:$16 sps:$4 sm:$0xff]  }
 0xac9   :  { %v2049_v57 = vsel %vm574_vm0, %v4471_v53, 0.0 }
 0xaca   :  { %2050 = vadd.xlane.f32.xlu0 %v2049_v57  ;;  %v4473_v4 = vpop.eup %4472  ;;  %v4295_v57 = vld [vmem:[#allocation2 + $0x188] ss:$16 sps:$4 sm:$0xff]  }
 0xacb   :  { %v2182_v60 = vsel %vm574_vm0, %v4473_v4, 0.0 }
 0xacc   :  { %2180 = vadd.xlane.f32.xlu1 %v2179_v58  ;;  %v4300_v58 = vld [vmem:[#allocation2 + $0x164] ss:$16 sps:$4 sm:$0xff]  }
 0xad0   :  { %2183 = vadd.xlane.f32.xlu1 %v2182_v60  ;;  %v4298_v60 = vld [vmem:[#allocation2 + $0x160] ss:$16 sps:$4 sm:$0xff]  }
 0xb3d   :  { %v2042_v56 = vpop.xlane.xlu0 %2041 }
 0xb3e   :  { %4474 = vrcp.f32 %v2042_v56  ;;  %v4301_v56 = vld [vmem:[#allocation2 + $0x168] ss:$16 sps:$4 sm:$0xff]  }
 0xb41   :  { %v2045_v62 = vpop.xlane.xlu0 %2044 }
 0xb42   :  { %4476 = vrcp.f32 %v2045_v62  ;;  %v4306_v62 = vld [vmem:[#allocation2 + $0x144] ss:$16 sps:$4 sm:$0xff]  }
 0xb4b   :  { %v4475_v63 = vpop.eup %4474 }
 0xb4c   :  { %v2056_v3 = vmul.f32 %v4475_v63, %v4459_v30  ;;  %v4285_v30 = vld [vmem:[#allocation2 + $0x1cc] ss:$16 sps:$4 sm:$0xff]  }
 0xb4d   :  { %v2175_v0 = vpop.xlane.xlu1 %2174  ;;  %v4309_v63 = vld [vmem:[#allocation2 + $0x14c] ss:$16 sps:$4 sm:$0xff]  }
 0xb4e   :  { %4478 = vrcp.f32 %v2175_v0  ;;  %4076 = vmatprep.mubr.msk.f32.mxu0 %vm574_vm0, %v2056_v3  ;;  %v4304_v3 = vld [vmem:[#allocation2 + $0x140] ss:$16 sps:$4 sm:$0xff]   ;;  %v4307_v0 = vld [vmem:[#allocation2 + $0x148] ss:$16 sps:$4 sm:$0xff]  }
 0xb4f   :  { %v4477_v6 = vpop.eup %4476  ;;  %v2048_v2 = vpop.xlane.xlu0 %2047 }
 0xb50   :  { %v2057_v7 = vmul.f32 %v4477_v6, %v4461_v18  ;;  %4480 = vrcp.f32 %v2048_v2  ;;  %v4312_v6 = vld [vmem:[#allocation2 + $0x124] ss:$16 sps:$4 sm:$0xff]   ;;  %v4315_v2 = vld [vmem:[#allocation2 + $0x12c] ss:$16 sps:$4 sm:$0xff]  }
 0xb51   :  { %v2178_v8 = vpop.xlane.xlu1 %2177 }
 0xb52   :  { %4482 = vrcp.f32 %v2178_v8  ;;  %4077 = vmatmul.mubr.msk.f32.vlgmr.msra.gmra.mxu0 %vm574_vm0, %v2057_v7  ;;  %v4310_v7 = vld [vmem:[#allocation2 + $0x120] ss:$16 sps:$4 sm:$0xff]   ;;  %v4313_v8 = vld [vmem:[#allocation2 + $0x128] ss:$16 sps:$4 sm:$0xff]  }
 0xb53   :  { %v2051_v10 = vpop.xlane.xlu0 %2050  ;;  %2680 = vmatpush1.bf16.msra.mxu0 %v4277_v28 }
 0xb54   :  { %4484 = vrcp.f32 %v2051_v10  ;;  %2681 = vmatprep.subr.bf16.mxu0 %v4285_v30  ;;  %v4316_v10 = vld [vmem:[#allocation2 + $0x100] ss:$16 sps:$4 sm:$0xff]  }
 0xb55   :  { %v2181_v1 = vpop.xlane.xlu1 %2180 }
 0xb56   :  { %4486 = vrcp.f32 %v2181_v1  ;;  %v4318_v1 = vld [vmem:[#allocation2 + $0x104] ss:$16 sps:$4 sm:$0xff]  }
 0xb57   :  { %2682 = vmatpush1.bf16.msra.mxu0 %v4283_v32 }
 0xb58   :  { %2683 = vmatprep.subr.bf16.mxu0 %v4291_v52  ;;  %v4331_v52 = vld [vmem:[%s5618_s7 + $0x98] sm:$0xff]  }
 0xb59   :  { %v2184_v5 = vpop.xlane.xlu1 %2183 }
 0xb5a   :  { %4488 = vrcp.f32 %v2184_v5  ;;  %v4319_v5 = vld [vmem:[#allocation2 + $0x108] ss:$16 sps:$4 sm:$0xff]  }
 0xb5b   :  { %v4479_v11 = vpop.eup %4478  ;;  %2684 = vmatpush1.bf16.msra.mxu0 %v4289_v55  ;;  %v4333_v55 = vld [vmem:[%s5618_s7 + $0x90] sm:$0xff]  }
 0xb5c   :  { %v2189_v14 = vmul.f32 %v4479_v11, %v4463_v47  ;;  %v4321_v11 = vld [vmem:[#allocation2 + $0x10c] ss:$16 sps:$4 sm:$0xff]  }
 0xb5d   :  { %v4481_v15 = vpop.eup %4480 }
 0xb5e   :  { %4062 = vmatprep.mubr.msk.f32.mxu1 %vm574_vm0, %v2189_v14  ;;  %v2058_v13 = vmul.f32 %v4481_v15, %v4467_v51  ;;  %v4288_v51 = vld [vmem:[#allocation2 + $0x1a4] ss:$16 sps:$4 sm:$0xff]  }
 0xb5f   :  { %v4483_v16 = vpop.eup %4482 }
 0xb60   :  { %v2190_v17 = vmul.f32 %v4483_v16, %v4465_v49  ;;  %4079 = vmatprep.mubr.msk.f32.mxu0 %vm574_vm0, %v2058_v13 }
 0xb61   :  { %v4485_v20 = vpop.eup %4484 }
 0xb62   :  { %4063 = vmatmul.mubr.msk.f32.vlgmr.msra.gmra.mxu1 %vm574_vm0, %v2190_v17  ;;  %v2059_v19 = vmul.f32 %v4485_v20, %v4471_v53  ;;  %v4297_v53 = vld [vmem:[#allocation2 + $0x18c] ss:$16 sps:$4 sm:$0xff]  }
 0xb63   :  { %v4487_v21 = vpop.eup %4486  ;;  %2627 = vmatpush1.bf16.msra.mxu1 %v4274_v25  ;;  %2685 = vmatprep.subr.bf16.mxu0 %v4297_v53  ;;  %v4335_v53 = vld [vmem:[%s5618_s7 + $0x88] sm:$0xff]  }
 0xb64   :  { %4080 = vmatmul.mubr.msk.f32.gmra.mxu0 %vm574_vm0, %v2059_v19  ;;  %v2191_v22 = vmul.f32 %v4487_v21, %v4469_v54  ;;  %2628 = vmatprep.subr.bf16.mxu1 %v4282_v27  ;;  %v4286_v54 = vld [vmem:[#allocation2 + $0x1a0] ss:$16 sps:$4 sm:$0xff]  }
 0xb65   :  { %2711 = vmatprep.mubr.bf16.mxu0 %v4656_v36  ;;  %2686 = vmatpush1.bf16.msra.mxu0 %v4295_v57  ;;  %v3722_v27 = vld [vmem:[%s5620_s9 + $0x1] ss:$0 sm:$0xff] }
 0xb66   :  { %4065 = vmatprep.mubr.msk.f32.mxu1 %vm574_vm0, %v2191_v22  ;;  %v4337_v57 = vld [vmem:[%s5618_s7 + $0x80] sm:$0xff]  }
 0xb67   :  { %v4489_v23 = vpop.eup %4488  ;;  %2629 = vmatpush1.bf16.msra.mxu1 %v4280_v31 }
 0xb68   :  { %v2192_v24 = vmul.f32 %v4489_v23, %v4473_v4  ;;  %2630 = vmatprep.subr.bf16.mxu1 %v4288_v51  ;;  %v4303_v4 = vld [vmem:[#allocation2 + $0x16c] ss:$16 sps:$4 sm:$0xff]  }
 0xb69   :  { %2687 = vmatprep.subr.bf16.mxu0 %v4303_v4  ;;  %v4330_v51 = vld [vmem:[%s5618_s7 + $0xd8] sm:$0xff]  }
 0xb6a   :  { %4066 = vmatmul.mubr.msk.f32.gmra.mxu1 %vm574_vm0, %v2192_v24  ;;  %2688 = vmatpush1.bf16.msra.mxu0 %v4301_v56 }
 0xb6b   :  { %2658 = vmatprep.mubr.bf16.mxu1 %v4656_v36  ;;  %2631 = vmatpush1.bf16.msra.mxu1 %v4286_v54  ;;  %v4332_v54 = vld [vmem:[%s5618_s7 + $0xd0] sm:$0xff]  }
 0xb6c   :  { %2689 = vmatprep.subr.bf16.mxu0 %v4309_v63 }
 0xb6e   :  { %2690 = vmatpush1.bf16.msra.mxu0 %v4307_v0 }
 0xb6f   :  { %2691 = vmatprep.subr.bf16.mxu0 %v4315_v2 }
 0xb72   :  { %2692 = vmatpush1.bf16.msra.mxu0 %v4313_v8 }
 0xb73   :  { %2693 = vmatprep.subr.bf16.mxu0 %v4321_v11 }
 0xb76   :  { %2694 = vmatpush1.bf16.msra.mxu0 %v4319_v5 }
 0xc12   :  { %v4078_v33 = vpop.f32.mrf.mxu0 }
 0xc14   :  { %v2368_v48 = vpop.f32.mrf.mxu0 }
 0xc22   :  { %v4064_v34 = vpop.f32.mrf.mxu1 }
 0xc23   :  { %v2374_v59 = vadd.f32 %v4078_v33, %v4064_v34 }
 0xc24   :  { %v2271_v37 = vpop.f32.mrf.mxu1  ;;  %v4081_v41 = vpop.f32.mrf.mxu0 }
 0xc25   :  { %v5328_v38 = vadd.f32 %v2374_v59, %v5120_v39  ;;  %v2369_v18 = vadd.f32 %v2368_v48, %v2271_v37 }
 0xc26   :  { %v2378_v45 = vpop.f32.mrf.mxu0 }
 0xc27   :  { %v5331_v12 = vadd.f32 %v2369_v18, %v5115_v35  ;;  %v2394_v40 = vmul.f32 %v5328_v38, %v5328_v38 }
 0xc29   :  { %2399 = vadd.xlane.f32.xlu1 %v2394_v40  ;;  %v2393_v42 = vmul.f32 %v5331_v12, %v5331_v12 }
 0xc2a   :  { %v4067_v61 = vpop.f32.mrf.mxu1 }
 0xc2b   :  { %v2384_v44 = vadd.f32 %v4081_v41, %v4067_v61  ;;  %2397 = vadd.xlane.f32.xlu0 %v2393_v42  ;;  %v4322_v42 = vld [vmem:[%s5618_s7 + $0xf8] sm:$0xff]  }
 0xc2c   :  { %v2281_v9 = vpop.f32.mrf.mxu1  ;;  %v4323_v61 = vld [vmem:[%s5618_s7 + $0xb8] sm:$0xff]  }
 0xc2d   :  { %v5338_v39 = vadd.f32 %v2384_v44, %v5130_v46  ;;  %v2379_v47 = vadd.f32 %v2378_v45, %v2281_v9  ;;  %v4294_v46 = vld [vmem:[#allocation2 + $0x184] ss:$16 sps:$4 sm:$0xff]   ;;  %v4326_v9 = vld [vmem:[%s5618_s7 + $0xe8] sm:$0xff]  }
 0xc2e   :  { %2632 = vmatprep.subr.bf16.mxu1 %v4294_v46  ;;  %v4324_v44 = vld [vmem:[%s5618_s7 + $0xf0] sm:$0xff]   ;;  %v4334_v46 = vld [vmem:[%s5618_s7 + $0xc8] sm:$0xff]  }
 0xc2f   :  { %v5341_v35 = vadd.f32 %v2379_v47, %v5125_v43  ;;  %v2396_v49 = vmul.f32 %v5338_v39, %v5338_v39  ;;  %v4292_v43 = vld [vmem:[#allocation2 + $0x180] ss:$16 sps:$4 sm:$0xff]   ;;  %v4327_v47 = vld [vmem:[%s5618_s7 + $0xa8] sm:$0xff]  }
 0xc30   :  { %2633 = vmatpush1.bf16.msra.mxu1 %v4292_v43  ;;  %v4325_v45 = vld [vmem:[%s5618_s7 + $0xb0] sm:$0xff]   ;;  %v4336_v43 = vld [vmem:[%s5618_s7 + $0xc0] sm:$0xff]  }
 0xc31   :  { %2403 = vadd.xlane.f32.xlu1 %v2396_v49  ;;  %v2395_v50 = vmul.f32 %v5341_v35, %v5341_v35  ;;  %2634 = vmatprep.subr.bf16.mxu1 %v4300_v58  ;;  %v4328_v49 = vld [vmem:[%s5618_s7 + $0xe0] sm:$0xff]  }
 0xc33   :  { %2401 = vadd.xlane.f32.xlu0 %v2395_v50  ;;  %v4329_v50 = vld [vmem:[%s5618_s7 + $0xa0] sm:$0xff]  }
 0xc34   :  { %2635 = vmatpush1.bf16.msra.mxu1 %v4298_v60 }
 0xc35   :  { %2636 = vmatprep.subr.bf16.mxu1 %v4306_v62 }
 0xc38   :  { %2637 = vmatpush1.bf16.msra.mxu1 %v4304_v3 }
 0xc39   :  { %2638 = vmatprep.subr.bf16.mxu1 %v4312_v6 }
 0xc3c   :  { %2639 = vmatpush1.bf16.msra.mxu1 %v4310_v7 }
 0xc3d   :  { %2640 = vmatprep.subr.bf16.mxu1 %v4318_v1 }
 0xc40   :  { %2641 = vmatpush1.bf16.msra.mxu1 %v4316_v10 }
 0xc41   :  { %3932 = vmatprep.subr.bf16.mxu1 %v4322_v42 }
 0xcb2   :  { %v2400_v14 = vpop.xlane.xlu1 %2399 }
 0xcb3   :  { %v2406_v15 = vmul.f32 0.0078125, %v2400_v14 }
 0xcb4   :  { %v2398_v13 = vpop.xlane.xlu0 %2397 }
 0xcb5   :  { %v2410_v16 = vadd.f32 1e-06, %v2406_v15  ;;  %v2405_v17 = vmul.f32 0.0078125, %v2398_v13 }
 0xcb7   :  { %4490 = vrsqrt.f32 %v2410_v16  ;;  %v2409_v20 = vadd.f32 1e-06, %v2405_v17 }
 0xcb9   :  { %4492 = vrsqrt.f32 %v2409_v20 }
 0xcba   :  { %v2404_v19 = vpop.xlane.xlu1 %2403 }
 0xcbb   :  { %v2408_v21 = vmul.f32 0.0078125, %v2404_v19 }
 0xcbc   :  { %v2402_v22 = vpop.xlane.xlu0 %2401 }
 0xcbd   :  { %v2412_v23 = vadd.f32 1e-06, %v2408_v21  ;;  %v2407_v24 = vmul.f32 0.0078125, %v2402_v22 }
 0xcbf   :  { %4494 = vrsqrt.f32 %v2412_v23  ;;  %v2411_v25 = vadd.f32 1e-06, %v2407_v24 }
 0xcc1   :  { %4496 = vrsqrt.f32 %v2411_v25 }
 0xcc4   :  { %v4491_v26 = vpop.eup %4490 }
 0xcc5   :  { %v2418_v28 = vmul.f32 %v4491_v26, %v5328_v38 }
 0xcc6   :  { %v4493_v29 = vpop.eup %4492 }
 0xcc7   :  { %v2417_v30 = vmul.f32 %v4493_v29, %v5331_v12  ;;  %v2428_v32 = vmul.f32 %v3722_v27, %v2418_v28 }
 0xcc9   :  { %v2427_v31 = vmul.f32 %v3722_v27, %v2417_v30 }
 0xccb   :  { %v2431_v33 = vpack.c.bf16 %v2428_v32, %v2427_v31 }
 0xccc   :  { %v4495_v34 = vpop.eup %4494 }
 0xccd   :  { %2659 = vmatmul.mubr.bf16.vlgmr.msra.gmra.mxu1 %v2431_v33  ;;  %2712 = vmatmul.mubr.bf16.vlgmr.msra.gmra.mxu0 %v2431_v33  ;;  %v2420_v59 = vmul.f32 %v4495_v34, %v5338_v39 }
 0xcce   :  { %v4497_v48 = vpop.eup %4496  ;;  %2668 = vmatprep.mubr.bf16.mxu1 %v4656_v36  ;;  %2721 = vmatprep.mubr.bf16.mxu0 %v4656_v36 }
 0xccf   :  { %v2419_v37 = vmul.f32 %v4497_v48, %v5341_v35  ;;  %v2430_v40 = vmul.f32 %v3722_v27, %v2420_v59  ;;  %3933 = vmatpush3.bf16.msra.mxu1 %v4323_v61 }
 0xcd0   :  { %3934 = vmatprep.subr.bf16.mxu1 %v4324_v44 }
 0xcd1   :  { %v2429_v18 = vmul.f32 %v3722_v27, %v2419_v37 }
 0xcd3   :  { %v2432_v41 = vpack.c.bf16 %v2430_v40, %v2429_v18  ;;  %3935 = vmatpush3.bf16.msra.mxu1 %v4325_v45 }
 0xcd4   :  { %3936 = vmatprep.subr.bf16.mxu1 %v4326_v9 }
 0xcd5   :  { %2669 = vmatmul.mubr.bf16.gmra.mxu1 %v2432_v41  ;;  %2722 = vmatmul.mubr.bf16.gmra.mxu0 %v2432_v41 }
 0xcd6   :  { %3215 = vmatprep.mubr.bf16.mxu0 %v4656_v36 }
 0xcd7   :  { %3937 = vmatpush3.bf16.msra.mxu1 %v4327_v47 }
 0xcd8   :  { %3938 = vmatprep.subr.bf16.mxu1 %v4328_v49 }
 0xcdb   :  { %3939 = vmatpush3.bf16.msra.mxu1 %v4329_v50 }
 0xcdc   :  { %3940 = vmatprep.subr.bf16.mxu1 %v4330_v51 }
 0xcdf   :  { %3941 = vmatpush3.bf16.msra.mxu1 %v4331_v52 }
 0xce0   :  { %3942 = vmatprep.subr.bf16.mxu1 %v4332_v54 }
 0xce3   :  { %3943 = vmatpush3.bf16.msra.mxu1 %v4333_v55 }
 0xce4   :  { %3944 = vmatprep.subr.bf16.mxu1 %v4334_v46 }
 0xce7   :  { %3945 = vmatpush3.bf16.msra.mxu1 %v4335_v53 }
 0xce8   :  { %3946 = vmatprep.subr.bf16.mxu1 %v4336_v43 }
 0xceb   :  { %3947 = vmatpush3.bf16.msra.mxu1 %v4337_v57 }
 0xd8d   :  { %v2660_v58 = vpop.f32.mrf.mxu1  ;;  %v2713_v20 = vpop.f32.mrf.mxu0 }
 0xd8e   :  { %v3755_v4 = vmul.f32 -1.442695, %v2660_v58 }
 0xd8f   :  { %v2662_v60 = vpop.f32.mrf.mxu1  ;;  %v2715_v24 = vpop.f32.mrf.mxu0 }
 0xd90   :  { %4498 = vpow2.f32 %v3755_v4  ;;  %v3756_v56 = vmul.f32 -1.442695, %v2662_v60 }
 0xd91   :  { %v2664_v62 = vpop.f32.mrf.mxu1  ;;  %v2717_v27 = vpop.f32.mrf.mxu0 }
 0xd92   :  { %4500 = vpow2.f32 %v3756_v56  ;;  %v3757_v63 = vmul.f32 -1.442695, %v2664_v62 }
 0xd93   :  { %v2666_v3 = vpop.f32.mrf.mxu1  ;;  %v2719_v33 = vpop.f32.mrf.mxu0 }
 0xd94   :  { %4502 = vpow2.f32 %v3757_v63  ;;  %v3758_v0 = vmul.f32 -1.442695, %v2666_v3 }
 0xd95   :  { %v5405_v6 = vpop.f32.mrf.mxu1  ;;  %v2723_v37 = vpop.f32.mrf.mxu0 }
 0xd96   :  { %4504 = vpow2.f32 %v3758_v0  ;;  %v3759_v2 = vmul.f32 -1.442695, %v5405_v6 }
 0xd97   :  { %v2672_v7 = vpop.f32.mrf.mxu1  ;;  %v2725_v45 = vpop.f32.mrf.mxu0 }
 0xd98   :  { %4506 = vpow2.f32 %v3759_v2  ;;  %v3760_v8 = vmul.f32 -1.442695, %v2672_v7 }
 0xd99   :  { %v2674_v10 = vpop.f32.mrf.mxu1  ;;  %v2727_v46 = vpop.f32.mrf.mxu0 }
 0xd9a   :  { %4508 = vpow2.f32 %v3760_v8  ;;  %v3761_v1 = vmul.f32 -1.442695, %v2674_v10  ;;  %v4338_v8 = vld [vmem:[#allocation5 + $0xa8] ss:$12 sps:$4 sm:$0xff]  }
 0xd9b   :  { %v2676_v5 = vpop.f32.mrf.mxu1  ;;  %v2729_v56 = vpop.f32.mrf.mxu0 }
 0xd9c   :  { %4510 = vpow2.f32 %v3761_v1  ;;  %v3762_v11 = vmul.f32 -1.442695, %v2676_v5  ;;  %v4340_v1 = vld [vmem:[#allocation5 + $0xac] ss:$12 sps:$4 sm:$0xff]  }
 0xd9d   :  { %v4499_v14 = vpop.eup %4498  ;;  %3183 = vmatprep.subr.bf16.mxu0 %v4340_v1 }
 0xd9e   :  { %4512 = vpow2.f32 %v3762_v11  ;;  %v2756_v13 = vadd.f32 1.0, %v4499_v14  ;;  %3184 = vmatpush1.bf16.msra.mxu0 %v4338_v8 }
 0xd9f   :  { %v4501_v15 = vpop.eup %4500 }
 0xda0   :  { %v2757_v16 = vadd.f32 1.0, %v4501_v15 }
 0xda1   :  { %v4503_v17 = vpop.eup %4502 }
 0xda2   :  { %4514 = vrcp.f32 %v2757_v16  ;;  %v2758_v19 = vadd.f32 1.0, %v4503_v17 }
 0xda3   :  { %v4505_v21 = vpop.eup %4504  ;;  %4516 = vrcp.f32 %v2756_v13 }
 0xda4   :  { %4518 = vrcp.f32 %v2758_v19  ;;  %v2759_v22 = vadd.f32 1.0, %v4505_v21 }
 0xda5   :  { %v4507_v23 = vpop.eup %4506 }
 0xda6   :  { %4520 = vrcp.f32 %v2759_v22  ;;  %v2760_v26 = vadd.f32 1.0, %v4507_v23 }
 0xda7   :  { %v4509_v25 = vpop.eup %4508 }
 0xda8   :  { %v2761_v28 = vadd.f32 1.0, %v4509_v25 }
 0xda9   :  { %v4511_v29 = vpop.eup %4510 }
 0xdaa   :  { %4522 = vrcp.f32 %v2761_v28  ;;  %v2762_v30 = vadd.f32 1.0, %v4511_v29  ;;  %v4341_v28 = vld [vmem:[#allocation5 + $0x90] ss:$12 sps:$4 sm:$0xff]  }
 0xdab   :  { %v4513_v31 = vpop.eup %4512  ;;  %4524 = vrcp.f32 %v2760_v26 }
 0xdac   :  { %4526 = vrcp.f32 %v2762_v30  ;;  %v2763_v32 = vadd.f32 1.0, %v4513_v31  ;;  %v4344_v30 = vld [vmem:[#allocation5 + $0x78] ss:$12 sps:$4 sm:$0xff]  }
 0xdad   :  { %v4350_v31 = vld [vmem:[#allocation5 + $0x64] ss:$12 sps:$4 sm:$0xff]  }
 0xdae   :  { %4528 = vrcp.f32 %v2763_v32  ;;  %v4351_v32 = vld [vmem:[#allocation5 + $0x98] ss:$12 sps:$4 sm:$0xff]  }
 0xdaf   :  { %v4515_v34 = vpop.eup %4514 }
 0xdb0   :  { %v4517_v59 = vpop.eup %4516  ;;  %v2781_v18 = vmul.f32 %v4515_v34, %v2662_v60  ;;  %v4355_v34 = vld [vmem:[#allocation5 + $0x80] ss:$12 sps:$4 sm:$0xff]  }
 0xdb1   :  { %v4519_v48 = vpop.eup %4518  ;;  %v2780_v42 = vmul.f32 %v4517_v59, %v2660_v58  ;;  %v4352_v59 = vld [vmem:[#allocation5 + $0x48] ss:$12 sps:$4 sm:$0xff]  }
 0xdb2   :  { %v2782_v40 = vmul.f32 %v4519_v48, %v2664_v62  ;;  %v2789_v9 = vmul.f32 %v2781_v18, %v2715_v24  ;;  %v4358_v48 = vld [vmem:[#allocation5 + $0x34] ss:$12 sps:$4 sm:$0xff]   ;;  %v4356_v18 = vld [vmem:[#allocation5 + $0x30] ss:$12 sps:$4 sm:$0xff]  }
 0xdb3   :  { %v4521_v41 = vpop.eup %4520  ;;  %v2788_v50 = vmul.f32 %v2780_v42, %v2713_v20  ;;  %v4360_v42 = vld [vmem:[#allocation5 + $0x18] ss:$12 sps:$4 sm:$0xff]  }
 0xdb4   :  { %v2783_v61 = vmul.f32 %v4521_v41, %v2666_v3  ;;  %v2790_v44 = vmul.f32 %v2782_v40, %v2717_v27  ;;  %v4347_v27 = vld [vmem:[#allocation5 + $0xb0] ss:$12 sps:$4 sm:$0xff]  }
 0xdb5   :  { %4082 = vmatprep.subr.bf16.mxu1 %v4347_v27  ;;  %v4362_v40 = vld [vmem:[#allocation5 + $0x1c] ss:$12 sps:$4 sm:$0xff]  }
 0xdb6   :  { %v2791_v47 = vmul.f32 %v2783_v61, %v2719_v33  ;;  %v2796_v55 = vpack.c.bf16 %v2790_v44, %v2788_v50  ;;  %v4354_v33 = vld [vmem:[#allocation5 + $0x4c] ss:$12 sps:$4 sm:$0xff]   ;;  %v4363_v41 = vld [vmem:[#allocation5 + $0x50] ss:$12 sps:$4 sm:$0xff]  }
 0xdb7   :  { %v4523_v49 = vpop.eup %4522  ;;  %v4364_v61 = vld [vmem:[#allocation5] ss:$12 sps:$4 sm:$0xff]   ;;  %v4366_v44 = vld [vmem:[#allocation5 + $0x4] ss:$12 sps:$4 sm:$0xff]  }
 0xdb8   :  { %v4525_v51 = vpop.eup %4524  ;;  %v2797_v52 = vpack.c.bf16 %v2791_v47, %v2789_v9  ;;  %v2785_v53 = vmul.f32 %v4523_v49, %v2672_v7  ;;  %v4368_v9 = vld [vmem:[#allocation5 + $0x20] ss:$12 sps:$4 sm:$0xff]   ;;  %v4369_v47 = vld [vmem:[#allocation5 + $0x8] ss:$12 sps:$4 sm:$0xff]  }
 0xdb9   :  { %v4527_v54 = vpop.eup %4526  ;;  %v2784_v4 = vmul.f32 %v4525_v51, %v5405_v6 }
 0xdba   :  { %v2786_v43 = vmul.f32 %v4527_v54, %v2674_v10  ;;  %2961 = vmatprep.mubr.bf16.mxu1 %v2797_v52  ;;  %v2793_v62 = vmul.f32 %v2785_v53, %v2725_v45  ;;  %v4367_v45 = vld [vmem:[#allocation5 + $0x38] ss:$12 sps:$4 sm:$0xff]  }
 0xdbb   :  { %v4529_v57 = vpop.eup %4528  ;;  %2962 = vmatmul.mubr.bf16.vlgmr.msra.gmra.mxu1 %v2796_v55  ;;  %v2792_v3 = vmul.f32 %v2784_v4, %v2723_v37  ;;  %v4359_v37 = vld [vmem:[#allocation5 + $0x68] ss:$12 sps:$4 sm:$0xff]  }
 0xdbc   :  { %v2787_v58 = vmul.f32 %v4529_v57, %v2676_v5  ;;  %v2794_v60 = vmul.f32 %v2786_v43, %v2727_v46  ;;  %4083 = vmatpush3.bf16.msra.mxu1 %v4347_v27 }
 0xdbd   :  { %4084 = vmatprep.subr.bf16.mxu1 %v4351_v32 }
 0xdbe   :  { %v2795_v63 = vmul.f32 %v2787_v58, %v2729_v56  ;;  %v2798_v2 = vpack.c.bf16 %v2794_v60, %v2792_v3 }
 0xdc0   :  { %v2799_v0 = vpack.c.bf16 %v2795_v63, %v2793_v62  ;;  %4085 = vmatpush3.bf16.msra.mxu1 %v4351_v32  ;;  %v3811_v63 = vld [vmem:[%s5621_s10] ss:$0 sm:$0xff] }
 0xdc1   :  { %4086 = vmatprep.subr.bf16.mxu1 %v4355_v34 }
 0xdc2   :  { %2969 = vmatprep.mubr.bf16.mxu1 %v2799_v0 }
 0xdc3   :  { %2970 = vmatmul.mubr.bf16.gmra.mxu1 %v2798_v2 }
 0xdc4   :  { %4087 = vmatpush3.bf16.msra.mxu1 %v4355_v34 }
 0xdc5   :  { %4088 = vmatprep.subr.bf16.mxu1 %v4359_v37 }
 0xdc8   :  { %4089 = vmatpush3.bf16.msra.mxu1 %v4359_v37 }
 0xdc9   :  { %4090 = vmatprep.subr.bf16.mxu1 %v4363_v41 }
 0xdcc   :  { %4091 = vmatpush3.bf16.msra.mxu1 %v4363_v41 }
 0xdcd   :  { %4092 = vmatprep.subr.bf16.mxu1 %v4367_v45 }
 0xdd0   :  { %4093 = vmatpush3.bf16.msra.mxu1 %v4367_v45 }
 0xdd1   :  { %4094 = vmatprep.subr.bf16.mxu1 %v4368_v9 }
 0xdd4   :  { %4095 = vmatpush3.bf16.msra.mxu1 %v4368_v9 }
 0xdd5   :  { %4096 = vmatprep.subr.bf16.mxu1 %v4369_v47 }
 0xdd8   :  { %4097 = vmatpush3.bf16.msra.mxu1 %v4369_v47 }
 0xe7b   :  { %v3948_v7 = vpop.f32.mrf.mxu1 }
 0xe7d   :  { %v3949_v10 = vpop.f32.mrf.mxu1 }
 0xe7e   :  { %v3950_v11 = vadd.f32 %v3949_v10, %v3948_v7 }
 0xe7f   :  { %v3951_v14 = vpop.f32.mrf.mxu1 }
 0xe80   :  { %v5410_v6 = vadd.f32 %v3950_v11, %v5331_v12 }
 0xe81   :  { %v3952_v5 = vpop.f32.mrf.mxu1 }
 0xe82   :  { %v3953_v15 = vadd.f32 %v3952_v5, %v3951_v14  ;;  %v2983_v13 = vmul.f32 %v5410_v6, %v5410_v6 }
 0xe83   :  { %v3954_v16 = vpop.f32.mrf.mxu1 }
 0xe84   :  { %v5415_v17 = vadd.f32 %v3953_v15, %v5328_v38  ;;  %2987 = vadd.xlane.f32.xlu0 %v2983_v13  ;;  %v4343_v38 = vld [vmem:[#allocation5 + $0x94] ss:$12 sps:$4 sm:$0xff]  }
 0xe85   :  { %v3955_v20 = vpop.f32.mrf.mxu1  ;;  %3185 = vmatprep.subr.bf16.mxu0 %v4343_v38  ;;  %v5484_v38 = vld [vmem:[%s5623_s12 + $0x10] sm:$0xff] }
 0xe86   :  { %v3956_v19 = vadd.f32 %v3955_v20, %v3954_v16  ;;  %v2984_v21 = vmul.f32 %v5415_v17, %v5415_v17  ;;  %3186 = vmatpush1.bf16.msra.mxu0 %v4341_v28  ;;  %v5490_v28 = vld [vmem:[%s5623_s12 + $0x18] sm:$0xff]  ;;  %vm3402_vm12 = vcmp.ne.s32.totalorder %v5484_v38, 4294967196 }
 0xe87   :  { %v3957_v22 = vpop.f32.mrf.mxu1  ;;  %vm3403_vm13 = vcmp.ne.s32.totalorder %v5490_v28, 4294967196 }
 0xe88   :  { %v5420_v23 = vadd.f32 %v3956_v19, %v5341_v35  ;;  %2989 = vadd.xlane.f32.xlu1 %v2984_v21  ;;  %v4346_v35 = vld [vmem:[#allocation5 + $0x7c] ss:$12 sps:$4 sm:$0xff]  }
 0xe89   :  { %v3958_v12 = vpop.f32.mrf.mxu1  ;;  %3187 = vmatprep.subr.bf16.mxu0 %v4346_v35 }
 0xe8a   :  { %v3959_v24 = vadd.f32 %v3958_v12, %v3957_v22  ;;  %v2985_v25 = vmul.f32 %v5420_v23, %v5420_v23  ;;  %3188 = vmatpush1.bf16.msra.mxu0 %v4344_v30 }
 0xe8b   :  { %3189 = vmatprep.subr.bf16.mxu0 %v4350_v31 }
 0xe8c   :  { %v5425_v26 = vadd.f32 %v3959_v24, %v5338_v39  ;;  %2991 = vadd.xlane.f32.xlu0 %v2985_v25  ;;  %v4348_v39 = vld [vmem:[#allocation5 + $0x60] ss:$12 sps:$4 sm:$0xff]  }
 0xe8d   :  { %v5472_v25 = vld [vmem:[%s5623_s12 + $0x8] sm:$0xff] }
 0xe8e   :  { %v2986_v29 = vmul.f32 %v5425_v26, %v5425_v26  ;;  %3190 = vmatpush1.bf16.msra.mxu0 %v4348_v39  ;;  %vm3401_vm10 = vcmp.ne.s32.totalorder %v5472_v25, 4294967196 }
 0xe8f   :  { %3191 = vmatprep.subr.bf16.mxu0 %v4354_v33 }
 0xe90   :  { %2993 = vadd.xlane.f32.xlu1 %v2986_v29 }
 0xe92   :  { %3192 = vmatpush1.bf16.msra.mxu0 %v4352_v59 }
 0xe93   :  { %3193 = vmatprep.subr.bf16.mxu0 %v4358_v48 }
 0xe96   :  { %3194 = vmatpush1.bf16.msra.mxu0 %v4356_v18 }
 0xe97   :  { %3195 = vmatprep.subr.bf16.mxu0 %v4362_v40 }
 0xe9a   :  { %3196 = vmatpush1.bf16.msra.mxu0 %v4360_v42 }
 0xe9b   :  { %3197 = vmatprep.subr.bf16.mxu0 %v4366_v44 }
 0xe9e   :  { %3198 = vmatpush1.bf16.msra.mxu0 %v4364_v61  ;;  %v3357_v61 = vlaneseq }
 0xf0d   :  { %v2988_v49 = vpop.xlane.xlu0 %2987 }
 0xf0e   :  { %v2995_v50 = vmul.f32 0.0078125, %v2988_v49 }
 0xf10   :  { %v2999_v51 = vadd.f32 1e-06, %v2995_v50  ;;  %v5517_v50 = vand.u32 127, %v3357_v61 }
 0xf11   :  { %v2990_v52 = vpop.xlane.xlu1 %2989 }
 0xf12   :  { %4530 = vrsqrt.f32 %v2999_v51  ;;  %v2996_v54 = vmul.f32 0.0078125, %v2990_v52 }
 0xf14   :  { %v3000_v55 = vadd.f32 1e-06, %v2996_v54 }
 0xf15   :  { %v2992_v46 = vpop.xlane.xlu0 %2991 }
 0xf16   :  { %4532 = vrsqrt.f32 %v3000_v55  ;;  %v2997_v53 = vmul.f32 0.0078125, %v2992_v46  ;;  %v3359_v46 = vadd.s32 128, %v5517_v50 }
 0xf18   :  { %v3001_v43 = vadd.f32 1e-06, %v2997_v53 }
 0xf19   :  { %v2994_v57 = vpop.xlane.xlu1 %2993 }
 0xf1a   :  { %4534 = vrsqrt.f32 %v3001_v43  ;;  %v2998_v4 = vmul.f32 0.0078125, %v2994_v57 }
 0xf1c   :  { %v3002_v58 = vadd.f32 1e-06, %v2998_v4 }
 0xf1e   :  { %4536 = vrsqrt.f32 %v3002_v58 }
 0xf1f   :  { %v4531_v60 = vpop.eup %4530 }
 0xf20   :  { %v3007_v56 = vmul.f32 %v4531_v60, %v5410_v6 }
 0xf22   :  { %v3017_v0 = vmul.f32 %v3811_v63, %v3007_v56 }
 0xf23   :  { %v4533_v62 = vpop.eup %4532 }
 0xf24   :  { %v3008_v3 = vmul.f32 %v4533_v62, %v5415_v17  ;;  %v3421_v62 = vld [vmem:[%s5624_s13 + $0x8] sm:$0xff] }
 0xf26   :  { %v3018_v2 = vmul.f32 %v3811_v63, %v3008_v3 }
 0xf27   :  { %v4535_v8 = vpop.eup %4534 }
 0xf28   :  { %v3021_v1 = vpack.c.bf16 %v3018_v2, %v3017_v0  ;;  %v3009_v7 = vmul.f32 %v4535_v8, %v5420_v23 }
 0xf2a   :  { %3216 = vmatmul.mubr.bf16.vlgmr.msra.gmra.mxu0 %v3021_v1  ;;  %4098 = vmatprep.mubr.bf16.mxu1 %v3021_v1  ;;  %v3019_v14 = vmul.f32 %v3811_v63, %v3009_v7 }
 0xf2b   :  { %v4537_v10 = vpop.eup %4536  ;;  %3225 = vmatprep.mubr.bf16.mxu0 %v4656_v36 }
 0xf2c   :  { %v3010_v11 = vmul.f32 %v4537_v10, %v5425_v26  ;;  %v5477_v26 = vld [vmem:[%s5623_s12] sm:$0xff] }
 0xf2d   :  { %vm3400_vm9 = vcmp.ne.s32.totalorder %v5477_v26, 4294967196 }
 0xf2e   :  { %v3020_v6 = vmul.f32 %v3811_v63, %v3010_v11  ;;  %v3422_v11 = vld [vmem:[%s5624_s13 + $0x10] sm:$0xff] }
 0xf30   :  { %v3022_v5 = vpack.c.bf16 %v3020_v6, %v3019_v14 }
 0xf32   :  { %3226 = vmatmul.mubr.bf16.gmra.mxu0 %v3022_v5  ;;  %4099 = vmatmul.mubr.bf16.vlgmr.msra.gmra.mxu1 %v3022_v5 }
 0xfea   :  { %v5437_v15 = vpop.f32.mrf.mxu0 }
 0xfeb   :  { %3285 = vst [vmem:[#allocation7] sm:$0xff] %v5437_v15 }
 0xfec   :  { %v5440_v13 = vpop.f32.mrf.mxu0 }
 0xfed   :  { %3286 = vst [vmem:[#allocation7 + $0x8] sm:$0xff] %v5440_v13  ;;  %v3297_v16 = vmax.f32 %v5437_v15, %v5440_v13 }
 0xfee   :  { %v5445_v17 = vpop.f32.mrf.mxu0 }
 0xfef   :  { %3287 = vst [vmem:[#allocation7 + $0x10] sm:$0xff] %v5445_v17  ;;  %3298 = vmax.xlane.f32.xlu0 %v3297_v16 }
 0xff0   :  { %v5448_v36 = vpop.f32.mrf.mxu0 }
 0xff1   :  { %3288 = vst [vmem:[#allocation7 + $0x18] sm:$0xff] %v5448_v36  ;;  %v3300_v20 = vmax.f32 %v5445_v17, %v5448_v36 }
 0xff2   :  { %v5453_v19 = vpop.f32.mrf.mxu0  ;;  %v4100_v44 = vpop.f32.mrf.mxu1 }
 0xff3   :  { %3289 = vst [vmem:[#allocation7 + $0x20] sm:$0xff] %v5453_v19  ;;  %3301 = vmax.xlane.f32.xlu1 %v3300_v20  ;;  %v3426_v5 = vsub.f32 %v4100_v44, %v3422_v11 }
 0xff4   :  { %v5456_v21 = vpop.f32.mrf.mxu0  ;;  %v3270_v52 = vpop.f32.mrf.mxu1 }
 0xff5   :  { %3290 = vst [vmem:[#allocation7 + $0x28] sm:$0xff] %v5456_v21  ;;  %v3303_v22 = vmax.f32 %v5453_v19, %v5456_v21 }
 0xff6   :  { %v5461_v23 = vpop.f32.mrf.mxu0  ;;  %v4101_v57 = vpop.f32.mrf.mxu1 }
 0xff7   :  { %3291 = vst [vmem:[#allocation7 + $0x30] sm:$0xff] %v5461_v23  ;;  %3304 = vmax.xlane.f32.xlu0 %v3303_v22  ;;  %v3434_v22 = vmul.f32 %v3426_v5, %v3426_v5 }
 0xff8   :  { %v5464_v12 = vpop.f32.mrf.mxu0  ;;  %v3273_v56 = vpop.f32.mrf.mxu1 }
 0xff9   :  { %3292 = vst [vmem:[#allocation7 + $0x38] sm:$0xff] %v5464_v12  ;;  %v3306_v24 = vmax.f32 %v5461_v23, %v5464_v12  ;;  %v3425_v1 = vsub.f32 %v3273_v56, %v3421_v62 }
 0xffb   :  { %3307 = vmax.xlane.f32.xlu1 %v3306_v24  ;;  %v3433_v16 = vmul.f32 %v3425_v1, %v3425_v1 }
0x100c   :  { %3364 = vperm.xlu1 %4113, %v5472_v25   ;;  %v5560_v25 = vld [vmem:[%s5625_s14 + $0x10] sm:$0xff] }
0x100d   :  { %3361 = vperm.xlu0 %4112, %v5477_v26  }
0x1010   :  { %3367 = vperm.xlu1 %4113, %v5484_v38   ;;  %v3491_v38 = vsel %vm3448_vm11, %v5560_v25, 0.0 }
0x1014   :  { %3370 = vperm.xlu1 %4113, %v5490_v28  }
0x1078   :  { %v5493_v29 = vpop.xlane.xlu0 %3298 }
0x1079   :  { %v3309_v35 = vsub.f32 %v5437_v15, %v5493_v29  ;;  %v3310_v27 = vsub.f32 %v5440_v13, %v5493_v29 }
0x107b   :  { %v3317_v30 = vmul.f32 1.442695, %v3309_v35  ;;  %v3319_v31 = vmul.f32 1.442695, %v3310_v27  ;;  %v3420_v35 = vld [vmem:[%s5624_s13] sm:$0xff] }
0x107c   :  { %v5499_v32 = vpop.xlane.xlu1 %3301 }
0x107d   :  { %4538 = vpow2.f32 %v3317_v30  ;;  %v3311_v39 = vsub.f32 %v5445_v17, %v5499_v32  ;;  %v3312_v33 = vsub.f32 %v5448_v36, %v5499_v32 }
0x107e   :  { %4540 = vpow2.f32 %v3319_v31  ;;  %v3424_v31 = vsub.f32 %v3270_v52, %v3420_v35 }
0x107f   :  { %v3321_v34 = vmul.f32 1.442695, %v3311_v39  ;;  %v3323_v59 = vmul.f32 1.442695, %v3312_v33  ;;  %v3423_v33 = vld [vmem:[%s5624_s13 + $0x18] sm:$0xff] }
0x1080   :  { %v5505_v48 = vpop.xlane.xlu0 %3304  ;;  %v3432_v39 = vmul.f32 %v3424_v31, %v3424_v31 }
0x1081   :  { %4542 = vpow2.f32 %v3321_v34  ;;  %v3313_v37 = vsub.f32 %v5453_v19, %v5505_v48  ;;  %v3314_v18 = vsub.f32 %v5456_v21, %v5505_v48 }
0x1082   :  { %4544 = vpow2.f32 %v3323_v59 }
0x1083   :  { %v3325_v40 = vmul.f32 1.442695, %v3313_v37  ;;  %v3327_v41 = vmul.f32 1.442695, %v3314_v18  ;;  %v3429_v18 = vld [vmem:[%s5625_s14 + $0x8] sm:$0xff] }
0x1084   :  { %v5511_v42 = vpop.xlane.xlu1 %3307  ;;  %v3489_v61 = vsel %vm3448_vm11, %v3429_v18, 0.0 }
0x1085   :  { %4546 = vpow2.f32 %v3325_v40  ;;  %v3315_v45 = vsub.f32 %v5461_v23, %v5511_v42  ;;  %v3316_v9 = vsub.f32 %v5464_v12, %v5511_v42 }
0x1086   :  { %4548 = vpow2.f32 %v3327_v41 }
0x1087   :  { %v3329_v47 = vmul.f32 1.442695, %v3315_v45  ;;  %v3331_v49 = vmul.f32 1.442695, %v3316_v9 }
0x1088   :  { %v3365_v51 = vpop.permute.xlu1 %3364  ;;  %v3362_v8 = vpop.permute.xlu0 %3361 }
0x1089   :  { %4550 = vpow2.f32 %v3329_v47  ;;  %vm3372_vm3 = vcmp.eq.s32.totalorder %v5517_v50, %v3362_v8  ;;  %vm3373_vm4 = vcmp.eq.s32.totalorder %v3359_v46, %v3362_v8  ;;  %vm3374_vm5 = vcmp.eq.s32.totalorder %v5517_v50, %v3365_v51 }
0x108a   :  { %v4539_v54 = vpop.eup %4538  ;;  %4552 = vpow2.f32 %v3331_v49  ;;  %vm3375_vm6 = vcmp.eq.s32.totalorder %v3359_v46, %v3365_v51  ;;  %v3382_v27 = vsel %vm3374_vm5, %v5445_v17, 0.0  ;;  %v5573_v51 = vld [vmem:[%s5625_s14 + $0x18] sm:$0xff] }
0x108b   :  { %v4541_v55 = vpop.eup %4540  ;;  %v3383_v30 = vsel %vm3375_vm6, %v5448_v36, 0.0  ;;  %v3427_v36 = vsub.f32 %v4101_v57, %v3423_v33 }
0x108c   :  { %v3368_v53 = vpop.permute.xlu1 %3367  ;;  %v3333_v43 = vadd.f32 %v4541_v55, %v4539_v54 }
0x108d   :  { %vm3376_vm1 = vcmp.eq.s32.totalorder %v5517_v50, %v3368_v53  ;;  %vm3377_vm2 = vcmp.eq.s32.totalorder %v3359_v46, %v3368_v53  ;;  %v3435_v37 = vmul.f32 %v3427_v36, %v3427_v36 }
0x108e   :  { %v4543_v4 = vpop.eup %4542  ;;  %3334 = vadd.xlane.f32.xlu1 %v3333_v43  ;;  %v3384_v63 = vsel %vm3376_vm1, %v5453_v19, 0.0  ;;  %v3385_v3 = vsel %vm3377_vm2, %v5456_v21, 0.0  ;;  %v3380_v19 = vsel %vm3372_vm3, %v5437_v15, 0.0  ;;  %v3381_v21 = vsel %vm3373_vm4, %v5440_v13, 0.0 }
0x108f   :  { %v4545_v58 = vpop.eup %4544  ;;  %v3394_v7 = vadd.f32 %v3385_v3, %v3384_v63  ;;  %v3388_v24 = vadd.f32 %v3381_v21, %v3380_v19  ;;  %v3391_v13 = vadd.f32 %v3383_v30, %v3382_v27 }
0x1090   :  { %v3336_v60 = vadd.f32 %v4545_v58, %v4543_v4  ;;  %v3371_v15 = vpop.permute.xlu1 %3370 }
0x1091   :  { %vm3378_vm7 = vcmp.eq.s32.totalorder %v5517_v50, %v3371_v15  ;;  %vm3379_vm8 = vcmp.eq.s32.totalorder %v3359_v46, %v3371_v15  ;;  %v3493_v46 = vsel %vm3448_vm11, %v5573_v51, 0.0 }
0x1092   :  { %v4547_v0 = vpop.eup %4546  ;;  %3337 = vadd.xlane.f32.xlu0 %v3336_v60  ;;  %v3386_v34 = vsel %vm3378_vm7, %v5461_v23, 0.0  ;;  %v3387_v17 = vsel %vm3379_vm8, %v5464_v12, 0.0  ;;  %v3428_v23 = vld [vmem:[%s5625_s14] sm:$0xff]  ;;  %v4658_v12 = vmov 0.0   ;;  %s4659_s14 = smov [#allocation7]  }
0x1093   :  { %v4549_v2 = vpop.eup %4548  ;;  %v3397_v59 = vadd.f32 %v3387_v17, %v3386_v34  ;;  %v5552_v40 = vsel %vm3400_vm9, 1.0, %v4658_v12  ;;  %v3837_v41 = vsel %vm3401_vm10, 1.0, %v4658_v12  ;;  %v3488_v26 = vsel %vm3448_vm11, %v3428_v23, 0.0  ;;  %s3529_s7 = sshll.u32 %s4659_s14, 4  ;;  %s3530_s7 = int_to_ptr.vmem [resolvable:$true] %s3529_s7 }
0x1094   :  { %v3339_v10 = vadd.f32 %v4549_v2, %v4547_v0  ;;  %v3462_v44 = vsel %vm3448_vm11, %v5552_v40, 0.0  ;;  %v3463_v45 = vsel %vm3448_vm11, %v3837_v41, 0.0  ;;  %v5565_v9 = vsel %vm3402_vm12, 1.0, %v4658_v12  ;;  %s4624_s2 = scalar_lea.vmem %s3530_s7, 1024  ;;  %p4629_p11 = scmp.lt.s32.totalorder %s3530_s7, %s3530_s7 }
0x1095   :  { %v3490_v47 = vadd.f32 %v3489_v61, %v3488_v26  ;;  %v3464_v49 = vadd.f32 %v3463_v45, %v3462_v44  ;;  %v3465_v52 = vsel %vm3448_vm11, %v5565_v9, 0.0  ;;  %v5577_v54 = vsel %vm3403_vm13, 1.0, %v4658_v12  ;;  %p4625_p10 = scmp.ne.s32.totalorder %s3530_s7, %s4624_s2  ;;  %p4630_p12 = scmp.lt.s32.totalorder %s4624_s2, %s4624_s2 }
0x1096   :  { %v4551_v14 = vpop.eup %4550  ;;  %3395 = vadd.xlane.f32.xlu0 %v3394_v7  ;;  %3340 = vadd.xlane.f32.xlu1 %v3339_v10  ;;  %v3467_v28 = vsel %vm3448_vm11, %v5577_v54, 0.0 }
0x1097   :  { %v4553_v6 = vpop.eup %4552  ;;  %v3492_v55 = vadd.f32 %v3491_v38, %v3490_v47  ;;  %v3466_v53 = vadd.f32 %v3465_v52, %v3464_v49  ;;  %p4631_p13 = por %p4630_p12, %p4629_p11 }
0x1098   :  { %v3342_v20 = vadd.f32 %v4553_v6, %v4551_v14 }
0x1099   :  { %v3494_v43 = vadd.f32 %v3493_v46, %v3492_v55  ;;  %v3468_v4 = vadd.f32 %v3467_v28, %v3466_v53  ;;  %p4632_p0 = pnand %p4631_p13, %p4625_p10 }
0x109a   :  { %3438 = vadd.xlane.f32.xlu0 %v3433_v16  ;;  %3343 = vadd.xlane.f32.xlu1 %v3342_v20 }
0x109b   :  { %v3495_v58 = vrot.slane %v3494_v43, 4  ;;  %v3469_v56 = vrot.slane %v3468_v4, 4 }
0x109d   :  { %v3496_v62 = vadd.f32 %v3495_v58, %v3494_v43  ;;  %v3470_v3 = vadd.f32 %v3469_v56, %v3468_v4 }
0x109e   :  { %3440 = vadd.xlane.f32.xlu0 %v3434_v22  ;;  %3389 = vadd.xlane.f32.xlu1 %v3388_v24 }
0x109f   :  { %v3497_v0 = vrot.slane %v3496_v62, 2  ;;  %v3471_v8 = vrot.slane %v3470_v3, 2 }
0x10a1   :  { %v3498_v10 = vadd.f32 %v3497_v0, %v3496_v62  ;;  %v3472_v6 = vadd.f32 %v3471_v8, %v3470_v3 }
0x10a2   :  { %3392 = vadd.xlane.f32.xlu1 %v3391_v13 }
0x10a3   :  { %v3499_v16 = vrot.slane %v3498_v10, 1  ;;  %v3473_v24 = vrot.slane %v3472_v6, 1 }
0x10a5   :  { %v3500_v30 = vadd.f32 %v3499_v16, %v3498_v10  ;;  %v3474_v34 = vadd.f32 %v3473_v24, %v3472_v6 }
0x10a6   :  { %3436 = vadd.xlane.f32.xlu1 %v3432_v39 }
0x10a7   :  { %v3501_v47 = vmax.f32 %v3474_v34, 1.0 }
0x10aa   :  { %3398 = vadd.xlane.f32.xlu1 %v3397_v59 }
0x10ae   :  { %3442 = vadd.xlane.f32.xlu1 %v3435_v37 }
0x1117   :  { %v3335_v57 = vpop.xlane.xlu1 %3334 }
0x1118   :  { %4554 = vlog2.f32 %v3335_v57 }
0x111b   :  { %v3338_v60 = vpop.xlane.xlu0 %3337 }
0x111c   :  { %4556 = vlog2.f32 %v3338_v60 }
0x111f   :  { %v3341_v63 = vpop.xlane.xlu1 %3340  ;;  %v3396_v7 = vpop.xlane.xlu0 %3395 }
0x1120   :  { %4558 = vlog2.f32 %v3341_v63 }
0x1123   :  { %v3344_v2 = vpop.xlane.xlu1 %3343  ;;  %v3439_v21 = vpop.xlane.xlu0 %3438 }
0x1124   :  { %4560 = vlog2.f32 %v3344_v2  ;;  %v3445_v39 = vmul.f32 %v3439_v21, %v3429_v18 }
0x1125   :  { %v4555_v1 = vpop.eup %4554  ;;  %4562 = vrcp.f32 %v3501_v47 }
0x1126   :  { %v3346_v11 = vmul.f32 0.6931472, %v4555_v1  ;;  %v3476_v45 = vsel %vm3448_vm11, %v3445_v39, 0.0 }
0x1127   :  { %v3390_v14 = vpop.xlane.xlu1 %3389  ;;  %v3441_v12 = vpop.xlane.xlu0 %3440 }
0x1128   :  { %v3353_v19 = vadd.f32 %v3346_v11, %v5493_v29  ;;  %v3504_v29 = vmul.f32 128.0, %v3500_v30  ;;  %v3446_v49 = vmul.f32 %v3441_v12, %v5560_v25 }
0x1129   :  { %v4557_v5 = vpop.eup %4556 }
0x112a   :  { %v3348_v20 = vmul.f32 0.6931472, %v4557_v5  ;;  %v3412_v31 = vsub.f32 %v3353_v19, %v3390_v14  ;;  %v3505_v52 = vmax.f32 %v3504_v29, 1.0  ;;  %v3478_v43 = vsel %vm3448_vm11, %v3446_v49, 0.0 }
0x112b   :  { %v3393_v22 = vpop.xlane.xlu1 %3392 }
0x112c   :  { %v3354_v35 = vadd.f32 %v3348_v20, %v5499_v32  ;;  %v3416_v44 = vmul.f32 %v5552_v40, %v3412_v31  ;;  %4564 = vrcp.f32 %v3505_v52 }
0x112d   :  { %v4559_v27 = vpop.eup %4558 }
0x112e   :  { %v3350_v15 = vmul.f32 0.6931472, %v4559_v27  ;;  %v3413_v13 = vsub.f32 %v3354_v35, %v3393_v22  ;;  %v3449_v40 = vsel %vm3448_vm11, %v3416_v44, 0.0 }
0x112f   :  { %v3437_v33 = vpop.xlane.xlu1 %3436 }
0x1130   :  { %v3355_v17 = vadd.f32 %v3350_v15, %v5505_v48  ;;  %v3417_v36 = vmul.f32 %v3837_v41, %v3413_v13  ;;  %v3444_v59 = vmul.f32 %v3437_v33, %v3428_v23 }
0x1131   :  { %v4561_v37 = vpop.eup %4560 }
0x1132   :  { %v3414_v61 = vsub.f32 %v3355_v17, %v3396_v7  ;;  %v3352_v26 = vmul.f32 0.6931472, %v4561_v37  ;;  %v3475_v32 = vsel %vm3448_vm11, %v3444_v59, 0.0  ;;  %v3450_v48 = vsel %vm3448_vm11, %v3417_v36, 0.0 }
0x1133   :  { %v3399_v38 = vpop.xlane.xlu1 %3398  ;;  %v3477_v41 = vadd.f32 %v3476_v45, %v3475_v32  ;;  %v3451_v53 = vadd.f32 %v3450_v48, %v3449_v40 }
0x1134   :  { %v3418_v18 = vmul.f32 %v5565_v9, %v3414_v61  ;;  %v3356_v23 = vadd.f32 %v3352_v26, %v5511_v42 }
0x1135   :  { %v3479_v4 = vadd.f32 %v3478_v43, %v3477_v41 }
0x1136   :  { %v3452_v55 = vsel %vm3448_vm11, %v3418_v18, 0.0  ;;  %v3415_v46 = vsub.f32 %v3356_v23, %v3399_v38 }
0x1137   :  { %v3443_v28 = vpop.xlane.xlu1 %3442  ;;  %v3453_v57 = vadd.f32 %v3452_v55, %v3451_v53 }
0x1138   :  { %v3419_v9 = vmul.f32 %v5577_v54, %v3415_v46  ;;  %v3447_v25 = vmul.f32 %v3443_v28, %v5573_v51  ;;  %v4563_v54 = vpop.eup %4562 }
0x1139   :  { %v4565_v11 = vpop.eup %4564 }
0x113a   :  { %v3454_v42 = vsel %vm3448_vm11, %v3419_v9, 0.0  ;;  %v3480_v58 = vsel %vm3448_vm11, %v3447_v25, 0.0 }
0x113b   :  { %v3455_v60 = vadd.f32 %v3454_v42, %v3453_v57  ;;  %v3481_v56 = vadd.f32 %v3480_v58, %v3479_v4 }
0x113d   :  { %v3456_v62 = vrot.slane %v3455_v60, 4  ;;  %v3482_v63 = vrot.slane %v3481_v56, 4 }
0x113f   :  { %v3457_v3 = vadd.f32 %v3456_v62, %v3455_v60  ;;  %v3483_v0 = vadd.f32 %v3482_v63, %v3481_v56 }
0x1141   :  { %v3458_v2 = vrot.slane %v3457_v3, 2  ;;  %v3484_v8 = vrot.slane %v3483_v0, 2 }
0x1143   :  { %v3485_v1 = vadd.f32 %v3484_v8, %v3483_v0  ;;  %v3459_v7 = vadd.f32 %v3458_v2, %v3457_v3 }
0x1145   :  { %v3460_v10 = vrot.slane %v3459_v7, 1  ;;  %v3486_v51 = vrot.slane %v3485_v1, 1 }
0x1147   :  { %v3461_v14 = vadd.f32 %v3460_v10, %v3459_v7  ;;  %v3487_v6 = vadd.f32 %v3486_v51, %v3485_v1 }
0x1149   :  { %v3503_v5 = vmul.f32 %v4563_v54, %v3461_v14  ;;  %v3507_v16 = vmul.f32 %v4565_v11, %v3487_v6 }
0x114a   :  { %4635 = shalt.err (!%p4632_p0)
}
0x114b   :  { %3535 = dma.vmem_to_hbm [thread:$0]  %s3530_s7, 1024, %s5626_s15, [#allocation4], %s4651_s24, %s4651_s24, %s4652_s25   ;;  %3511 = vperm.xlu0 %4112, %v3503_v5   ;;  %3518 = vperm.xlu1 %4113, %v3507_v16   ;;  %vm3515_vm14 = vcmp.eq.s32.totalorder %v5517_v50, 1  ;;  %vm3508_vm15 = vcmp.eq.s32.totalorder %v5517_v50, 0 }
0x11c6   :  { %v3519_v20 = vpop.permute.xlu1 %3518  ;;  %v3512_v19 = vpop.permute.xlu0 %3511 }
0x11c7   :  { %v3521_v21 = vsel %vm3515_vm14, %v3519_v20, 0.0  ;;  %v3514_v22 = vsel %vm3508_vm15, %v3512_v19, 0.0 }
0x11c8   :  { %v3522_v24 = vadd.f32 %v3521_v21, %v3514_v22 }
0x11ca   :  { %3523 = vst [vmem:[%s5627_s16] sm:$0x1] %v3522_v24 }
0x11cb   :  { %4648 = dma.done.wait [#allocation4], 1024  }
0x11cc   :  { %4649 = vsyncadd [#allocation4], 4294966272 }
0x11cd   :  { %3543 = vsyncpa [#allocation3], 1 }
0x11ce   :  { %3544 = vsyncpa [#allocation6], 1 }
0x11cf   :  { %3545 = vsyncpa [#allocation4], 1 }

</bundles_post_ra>
